<compile_context>
chip_gen: v6e
topology: v6e:2x2x1
jax: 0.10.0
libtpu: 0.0.40
codegen_flags: <defaults>
</compile_context>

<pallas_src>
import functools

import jax
import jax.numpy as jnp
from jax import lax
from jax.experimental import pallas as pl
from jax.experimental.pallas import tpu as pltpu

BN_EPS = 1e-5
_W_OFF = 8   # tile-aligned sublane offset of the valid data inside the padded
             # scratch; the left halo column lives at _W_OFF - 1.


# ------------------------------ kernel -------------------------------------- #

def _conv3x3_bn_relu(x, pad_ref, w_ref, b_ref, g_ref, beta_ref, use_bf16):
    """x: (N, H, W, Cin) f32 value. conv3x3(SAME) -> BN(batch stats) -> ReLU."""
    n, h, w, cin = x.shape
    cout = w_ref.shape[-1]

    # Zero the halo scratch, then place the activation at a tile-aligned offset
    # (H offset lives on an untiled dim; W offset 8 is a sublane-tile boundary).
    pad_ref[...] = jnp.zeros_like(pad_ref)
    pad_ref[:, 1:h + 1, _W_OFF:_W_OFF + w, :] = x

    # im2col: 9 shifted windows concatenated along the lane (channel) axis,
    # then a single MXU matmul with K = 9*Cin.
    slabs = []
    for dh in range(3):
        for dw in range(3):
            woff = _W_OFF - 1 + dw
            slabs.append(pad_ref[:, dh:dh + h, woff:woff + w, :])
    patches = jnp.concatenate(slabs, axis=-1)           # (N, H, W, 9*Cin)

    wmat = w_ref[...]                                   # (9*Cin, Cout)
    if use_bf16:
        patches = patches.astype(jnp.bfloat16)
        wmat = wmat.astype(jnp.bfloat16)
    acc = lax.dot_general(
        patches, wmat,
        dimension_numbers=(((3,), (0,)), ((), ())),
        preferred_element_type=jnp.float32)             # (N, H, W, Cout) f32
    acc = acc + b_ref[...]                              # (1, Cout) broadcast

    # BatchNorm2d over (N, H, W) with biased variance, then ReLU (all f32).
    mean = jnp.mean(acc, axis=(0, 1, 2), keepdims=True)
    var = jnp.mean((acc - mean) ** 2, axis=(0, 1, 2), keepdims=True)
    y = (acc - mean) * lax.rsqrt(var + BN_EPS)
    y = y * g_ref[...] + beta_ref[...]
    return jnp.maximum(y, 0.0)


def _down_kernel(x_ref, w1_ref, b1_ref, g1_ref, beta1_ref,
                 w2_ref, b2_ref, g2_ref, beta2_ref,
                 o_ref, pad1_ref, pad2_ref, *, cin, use_bf16):
    # x_ref: (N, Ho, 2, Wo, 2*Cin) -- pool pairs pre-folded by a free bitcast.
    x5 = x_ref[...]
    hmax = jnp.maximum(x5[:, :, 0], x5[:, :, 1])              # max over H pair
    pooled = jnp.maximum(hmax[..., :cin], hmax[..., cin:])    # max over W pair

    h1 = _conv3x3_bn_relu(pooled, pad1_ref, w1_ref, b1_ref, g1_ref, beta1_ref,
                          use_bf16)
    h2 = _conv3x3_bn_relu(h1, pad2_ref, w2_ref, b2_ref, g2_ref, beta2_ref,
                          use_bf16)
    o_ref[...] = h2.astype(o_ref.dtype)


# ------------------------------ wrapper ------------------------------------- #

def down_forward(x_nchw, params, *, use_bf16_mxu=False):
    """Pallas `down`: MaxPool2d(2) -> (conv3x3 -> BN -> ReLU) x 2. NCHW in/out."""
    n, cin, h, w = x_nchw.shape
    cout = params["w1"].shape[-1]
    ho, wo = h // 2, w // 2

    x = jnp.transpose(x_nchw, (0, 2, 3, 1))          # NCHW -> NHWC (HBM pass)
    x5 = x.reshape(n, ho, 2, wo, 2 * cin)            # free row-major bitcast

    w1 = params["w1"].reshape(9 * cin, cout)         # HWIO -> (9*Cin, Cout)
    w2 = params["w2"].reshape(9 * cout, cout)

    flops = 2 * n * ho * wo * 9 * cout * (cin + cout)
    bytes_accessed = 4 * (x.size + w1.size + w2.size + 8 * cout
                          + n * ho * wo * cout)

    kernel = functools.partial(_down_kernel, cin=cin, use_bf16=use_bf16_mxu)
    vmem = lambda: pl.BlockSpec(memory_space=pltpu.MemorySpace.VMEM)

    out_nhwc = pl.pallas_call(
        kernel,
        out_shape=jax.ShapeDtypeStruct((n, ho, wo, cout), jnp.float32),
        in_specs=[vmem() for _ in range(9)],
        out_specs=vmem(),
        scratch_shapes=[
            pltpu.VMEM((n, ho + 2, wo + _W_OFF + 2, cin), jnp.float32),
            pltpu.VMEM((n, ho + 2, wo + _W_OFF + 2, cout), jnp.float32),
        ],
        compiler_params=pltpu.CompilerParams(vmem_limit_bytes=64 * 1024 * 1024),
        cost_estimate=pl.CostEstimate(flops=flops,
                                      transcendentals=2 * cout,
                                      bytes_accessed=bytes_accessed),
    )(x5, w1, params["b1"], params["g1"], params["beta1"],
      w2, params["b2"], params["g2"], params["beta2"])

    return jnp.transpose(out_nhwc, (0, 3, 1, 2))     # NHWC -> NCHW


# ----------------------------- reference ------------------------------------ #

def ref_forward(x_nchw, params):
    x = jnp.transpose(x_nchw, (0, 2, 3, 1))
    x = jax.lax.reduce_window(x, -jnp.inf, jax.lax.max,
                              (1, 2, 2, 1), (1, 2, 2, 1), "VALID")

    def cbr(x, w, b, g, be):
        y = jax.lax.conv_general_dilated(
            x, w, (1, 1), "SAME", dimension_numbers=("NHWC", "HWIO", "NHWC"))
        y = y + b
        m = jnp.mean(y, axis=(0, 1, 2), keepdims=True)
        v = jnp.mean((y - m) ** 2, axis=(0, 1, 2), keepdims=True)
        y = (y - m) / jnp.sqrt(v + BN_EPS) * g + be
        return jnp.maximum(y, 0.0)

    x = cbr(x, params["w1"], params["b1"], params["g1"], params["beta1"])
    x = cbr(x, params["w2"], params["b2"], params["g2"], params["beta2"])
    return jnp.transpose(x, (0, 3, 1, 2))


# ------------------------------- main ---------------------------------------- #

if __name__ == "__main__":
    key = jax.random.PRNGKey(0)
    in_ch, out_ch = 4, 8
    n, hh, ww = 2, 16, 16
    ks = jax.random.split(key, 9)

    x = jax.random.normal(ks[0], (n, in_ch, hh, ww), jnp.float32)
    params = {
        "w1": 0.3 * jax.random.normal(ks[1], (3, 3, in_ch, out_ch), jnp.float32),
        "b1": 0.1 * jax.random.normal(ks[2], (1, out_ch), jnp.float32),
        "g1": 1.0 + 0.1 * jax.random.normal(ks[3], (1, out_ch), jnp.float32),
        "beta1": 0.1 * jax.random.normal(ks[4], (1, out_ch), jnp.float32),
        "w2": 0.3 * jax.random.normal(ks[5], (3, 3, out_ch, out_ch), jnp.float32),
        "b2": 0.1 * jax.random.normal(ks[6], (1, out_ch), jnp.float32),
        "g2": 1.0 + 0.1 * jax.random.normal(ks[7], (1, out_ch), jnp.float32),
        "beta2": 0.1 * jax.random.normal(ks[8], (1, out_ch), jnp.float32),
    }

    out = jax.block_until_ready(jax.jit(down_forward)(x, params))
    ref = jax.block_until_ready(ref_forward(x, params))

    assert out.shape == (n, out_ch, hh // 2, ww // 2), out.shape
    err = float(jnp.max(jnp.abs(out - ref)))
    assert jnp.allclose(out, ref, atol=1e-4, rtol=1e-4), err
    print("KERNEL_OK")
</pallas_src>

<mosaic_0001>
module attributes {stable_mosaic.version = 11 : i64} {
  func.func @_down_kernel(%arg0: memref<2x8x2x8x8xf32, #tpu.memory_space<vmem>>, %arg1: memref<36x8xf32, #tpu.memory_space<vmem>>, %arg2: memref<1x8xf32, #tpu.memory_space<vmem>>, %arg3: memref<1x8xf32, #tpu.memory_space<vmem>>, %arg4: memref<1x8xf32, #tpu.memory_space<vmem>>, %arg5: memref<72x8xf32, #tpu.memory_space<vmem>>, %arg6: memref<1x8xf32, #tpu.memory_space<vmem>>, %arg7: memref<1x8xf32, #tpu.memory_space<vmem>>, %arg8: memref<1x8xf32, #tpu.memory_space<vmem>>, %arg9: memref<2x8x8x8xf32, #tpu.memory_space<vmem>>, %arg10: memref<2x10x18x4xf32, #tpu.memory_space<vmem>>, %arg11: memref<2x10x18x8xf32, #tpu.memory_space<vmem>>) attributes {dimension_semantics = [], scalar_prefetch = 0 : i64, scratch_operands = 2 : i64, tpu.core_type = #tpu.core_type<tc>} {
    %c0 = arith.constant 0 : index
    %c0_0 = arith.constant 0 : index
    %c0_1 = arith.constant 0 : index
    %c0_2 = arith.constant 0 : index
    %c0_3 = arith.constant 0 : index
    %0 = vector.load %arg0[%c0, %c0_0, %c0_1, %c0_2, %c0_3] : memref<2x8x2x8x8xf32, #tpu.memory_space<vmem>>, vector<2x8x2x8x8xf32>
    %1 = vector.extract_strided_slice %0 {offsets = [0, 0, 0, 0, 0], sizes = [2, 8, 1, 8, 8], strides = [1, 1, 1, 1, 1]} : vector<2x8x2x8x8xf32> to vector<2x8x1x8x8xf32>
    %2 = vector.shape_cast %1 : vector<2x8x1x8x8xf32> to vector<2x8x8x8xf32>
    %3 = vector.extract_strided_slice %0 {offsets = [0, 0, 1, 0, 0], sizes = [2, 8, 1, 8, 8], strides = [1, 1, 1, 1, 1]} : vector<2x8x2x8x8xf32> to vector<2x8x1x8x8xf32>
    %4 = vector.shape_cast %3 : vector<2x8x1x8x8xf32> to vector<2x8x8x8xf32>
    %5 = arith.maximumf %2, %4 : vector<2x8x8x8xf32>
    %6 = vector.extract_strided_slice %5 {offsets = [0, 0, 0, 0], sizes = [2, 8, 8, 4], strides = [1, 1, 1, 1]} : vector<2x8x8x8xf32> to vector<2x8x8x4xf32>
    %7 = vector.extract_strided_slice %5 {offsets = [0, 0, 0, 4], sizes = [2, 8, 8, 4], strides = [1, 1, 1, 1]} : vector<2x8x8x8xf32> to vector<2x8x8x4xf32>
    %8 = arith.maximumf %6, %7 : vector<2x8x8x4xf32>
    %cst = arith.constant 0.000000e+00 : f32
    %9 = vector.broadcast %cst : f32 to vector<2x10x18x4xf32>
    %c0_4 = arith.constant 0 : index
    %c0_5 = arith.constant 0 : index
    %c0_6 = arith.constant 0 : index
    %c0_7 = arith.constant 0 : index
    %10 = vector.load %arg10[%c0_4, %c0_5, %c0_6, %c0_7] : memref<2x10x18x4xf32, #tpu.memory_space<vmem>>, vector<2x10x18x4xf32>
    tpu.vector_store %arg10[%c0_4, %c0_5, %c0_6, %c0_7], %9 {strides = array<i32>} : memref<2x10x18x4xf32, #tpu.memory_space<vmem>>, vector<2x10x18x4xf32>,
    %c0_8 = arith.constant 0 : index
    %c1 = arith.constant 1 : index
    %c8 = arith.constant 8 : index
    %c0_9 = arith.constant 0 : index
    %11 = vector.load %arg10[%c0_8, %c1, %c8, %c0_9] : memref<2x10x18x4xf32, #tpu.memory_space<vmem>>, vector<2x8x8x4xf32>
    tpu.vector_store %arg10[%c0_8, %c1, %c8, %c0_9], %8 {strides = array<i32>} : memref<2x10x18x4xf32, #tpu.memory_space<vmem>>, vector<2x8x8x4xf32>,
    %c0_10 = arith.constant 0 : index
    %c0_11 = arith.constant 0 : index
    %c7 = arith.constant 7 : index
    %c0_12 = arith.constant 0 : index
    %12 = vector.load %arg10[%c0_10, %c0_11, %c7, %c0_12] : memref<2x10x18x4xf32, #tpu.memory_space<vmem>>, vector<2x8x8x4xf32>
    %c0_13 = arith.constant 0 : index
    %c0_14 = arith.constant 0 : index
    %c8_15 = arith.constant 8 : index
    %c0_16 = arith.constant 0 : index
    %13 = vector.load %arg10[%c0_13, %c0_14, %c8_15, %c0_16] : memref<2x10x18x4xf32, #tpu.memory_space<vmem>>, vector<2x8x8x4xf32>
    %c0_17 = arith.constant 0 : index
    %c0_18 = arith.constant 0 : index
    %c9 = arith.constant 9 : index
    %c0_19 = arith.constant 0 : index
    %14 = vector.load %arg10[%c0_17, %c0_18, %c9, %c0_19] : memref<2x10x18x4xf32, #tpu.memory_space<vmem>>, vector<2x8x8x4xf32>
    %c0_20 = arith.constant 0 : index
    %c1_21 = arith.constant 1 : index
    %c7_22 = arith.constant 7 : index
    %c0_23 = arith.constant 0 : index
    %15 = vector.load %arg10[%c0_20, %c1_21, %c7_22, %c0_23] : memref<2x10x18x4xf32, #tpu.memory_space<vmem>>, vector<2x8x8x4xf32>
    %c0_24 = arith.constant 0 : index
    %c1_25 = arith.constant 1 : index
    %c8_26 = arith.constant 8 : index
    %c0_27 = arith.constant 0 : index
    %16 = vector.load %arg10[%c0_24, %c1_25, %c8_26, %c0_27] : memref<2x10x18x4xf32, #tpu.memory_space<vmem>>, vector<2x8x8x4xf32>
    %c0_28 = arith.constant 0 : index
    %c1_29 = arith.constant 1 : index
    %c9_30 = arith.constant 9 : index
    %c0_31 = arith.constant 0 : index
    %17 = vector.load %arg10[%c0_28, %c1_29, %c9_30, %c0_31] : memref<2x10x18x4xf32, #tpu.memory_space<vmem>>, vector<2x8x8x4xf32>
    %c0_32 = arith.constant 0 : index
    %c2 = arith.constant 2 : index
    %c7_33 = arith.constant 7 : index
    %c0_34 = arith.constant 0 : index
    %18 = vector.load %arg10[%c0_32, %c2, %c7_33, %c0_34] : memref<2x10x18x4xf32, #tpu.memory_space<vmem>>, vector<2x8x8x4xf32>
    %c0_35 = arith.constant 0 : index
    %c2_36 = arith.constant 2 : index
    %c8_37 = arith.constant 8 : index
    %c0_38 = arith.constant 0 : index
    %19 = vector.load %arg10[%c0_35, %c2_36, %c8_37, %c0_38] : memref<2x10x18x4xf32, #tpu.memory_space<vmem>>, vector<2x8x8x4xf32>
    %c0_39 = arith.constant 0 : index
    %c2_40 = arith.constant 2 : index
    %c9_41 = arith.constant 9 : index
    %c0_42 = arith.constant 0 : index
    %20 = vector.load %arg10[%c0_39, %c2_40, %c9_41, %c0_42] : memref<2x10x18x4xf32, #tpu.memory_space<vmem>>, vector<2x8x8x4xf32>
    %21 = tpu.concatenate %12, %13, %14, %15, %16, %17, %18, %19, %20 in 3 : vector<2x8x8x4xf32>, vector<2x8x8x4xf32>, vector<2x8x8x4xf32>, vector<2x8x8x4xf32>, vector<2x8x8x4xf32>, vector<2x8x8x4xf32>, vector<2x8x8x4xf32>, vector<2x8x8x4xf32>, vector<2x8x8x4xf32> -> vector<2x8x8x36xf32>
    %c0_43 = arith.constant 0 : index
    %c0_44 = arith.constant 0 : index
    %22 = vector.load %arg1[%c0_43, %c0_44] : memref<36x8xf32, #tpu.memory_space<vmem>>, vector<36x8xf32>
    %cst_45 = arith.constant dense<0.000000e+00> : vector<2x8x8x8xf32>
    %23 = tpu.matmul %21, %22, %cst_45 {dimension_numbers = #tpu.dot_dimension_numbers<[3], [0], [0, 1, 2], [1], [0, 0, 0, 1, 0, 2, 1, 1], [], []>} : vector<2x8x8x36xf32>, vector<36x8xf32>, vector<2x8x8x8xf32> -> vector<2x8x8x8xf32>
    %c0_46 = arith.constant 0 : index
    %c0_47 = arith.constant 0 : index
    %24 = vector.load %arg2[%c0_46, %c0_47] : memref<1x8xf32, #tpu.memory_space<vmem>>, vector<1x8xf32>
    %25 = vector.shape_cast %24 : vector<1x8xf32> to vector<1x1x1x8xf32>
    %26 = vector.broadcast %25 : vector<1x1x1x8xf32> to vector<2x8x8x8xf32>
    %27 = arith.addf %23, %26 : vector<2x8x8x8xf32>
    %cst_48 = arith.constant dense<0.000000e+00> : vector<8xf32>
    %28 = vector.multi_reduction <add>, %27, %cst_48 [0, 1, 2] : vector<2x8x8x8xf32> to vector<8xf32>
    %29 = vector.shape_cast %28 : vector<8xf32> to vector<1x1x1x8xf32>
    %cst_49 = arith.constant 1.280000e+02 : f32
    %30 = vector.broadcast %cst_49 : f32 to vector<1x1x1x8xf32>
    %31 = arith.divf %29, %30 : vector<1x1x1x8xf32>
    %32 = vector.broadcast %31 : vector<1x1x1x8xf32> to vector<2x8x8x8xf32>
    %33 = arith.subf %27, %32 : vector<2x8x8x8xf32>
    %34 = arith.mulf %33, %33 : vector<2x8x8x8xf32>
    %cst_50 = arith.constant dense<0.000000e+00> : vector<8xf32>
    %35 = vector.multi_reduction <add>, %34, %cst_50 [0, 1, 2] : vector<2x8x8x8xf32> to vector<8xf32>
    %36 = vector.shape_cast %35 : vector<8xf32> to vector<1x1x1x8xf32>
    %cst_51 = arith.constant 1.280000e+02 : f32
    %37 = vector.broadcast %cst_51 : f32 to vector<1x1x1x8xf32>
    %38 = arith.divf %36, %37 : vector<1x1x1x8xf32>
    %39 = vector.broadcast %31 : vector<1x1x1x8xf32> to vector<2x8x8x8xf32>
    %40 = arith.subf %27, %39 : vector<2x8x8x8xf32>
    %cst_52 = arith.constant 9.99999974E-6 : f32
    %41 = vector.broadcast %cst_52 : f32 to vector<1x1x1x8xf32>
    %42 = arith.addf %38, %41 : vector<1x1x1x8xf32>
    %43 = math.rsqrt %42 : vector<1x1x1x8xf32>
    %44 = vector.broadcast %43 : vector<1x1x1x8xf32> to vector<2x8x8x8xf32>
    %45 = arith.mulf %40, %44 : vector<2x8x8x8xf32>
    %c0_53 = arith.constant 0 : index
    %c0_54 = arith.constant 0 : index
    %46 = vector.load %arg3[%c0_53, %c0_54] : memref<1x8xf32, #tpu.memory_space<vmem>>, vector<1x8xf32>
    %47 = vector.shape_cast %46 : vector<1x8xf32> to vector<1x1x1x8xf32>
    %48 = vector.broadcast %47 : vector<1x1x1x8xf32> to vector<2x8x8x8xf32>
    %49 = arith.mulf %45, %48 : vector<2x8x8x8xf32>
    %c0_55 = arith.constant 0 : index
    %c0_56 = arith.constant 0 : index
    %50 = vector.load %arg4[%c0_55, %c0_56] : memref<1x8xf32, #tpu.memory_space<vmem>>, vector<1x8xf32>
    %51 = vector.shape_cast %50 : vector<1x8xf32> to vector<1x1x1x8xf32>
    %52 = vector.broadcast %51 : vector<1x1x1x8xf32> to vector<2x8x8x8xf32>
    %53 = arith.addf %49, %52 : vector<2x8x8x8xf32>
    %cst_57 = arith.constant 0.000000e+00 : f32
    %54 = vector.broadcast %cst_57 : f32 to vector<2x8x8x8xf32>
    %55 = arith.maximumf %53, %54 : vector<2x8x8x8xf32>
    %cst_58 = arith.constant 0.000000e+00 : f32
    %56 = vector.broadcast %cst_58 : f32 to vector<2x10x18x8xf32>
    %c0_59 = arith.constant 0 : index
    %c0_60 = arith.constant 0 : index
    %c0_61 = arith.constant 0 : index
    %c0_62 = arith.constant 0 : index
    %57 = vector.load %arg11[%c0_59, %c0_60, %c0_61, %c0_62] : memref<2x10x18x8xf32, #tpu.memory_space<vmem>>, vector<2x10x18x8xf32>
    tpu.vector_store %arg11[%c0_59, %c0_60, %c0_61, %c0_62], %56 {strides = array<i32>} : memref<2x10x18x8xf32, #tpu.memory_space<vmem>>, vector<2x10x18x8xf32>,
    %c0_63 = arith.constant 0 : index
    %c1_64 = arith.constant 1 : index
    %c8_65 = arith.constant 8 : index
    %c0_66 = arith.constant 0 : index
    %58 = vector.load %arg11[%c0_63, %c1_64, %c8_65, %c0_66] : memref<2x10x18x8xf32, #tpu.memory_space<vmem>>, vector<2x8x8x8xf32>
    tpu.vector_store %arg11[%c0_63, %c1_64, %c8_65, %c0_66], %55 {strides = array<i32>} : memref<2x10x18x8xf32, #tpu.memory_space<vmem>>, vector<2x8x8x8xf32>,
    %c0_67 = arith.constant 0 : index
    %c0_68 = arith.constant 0 : index
    %c7_69 = arith.constant 7 : index
    %c0_70 = arith.constant 0 : index
    %59 = vector.load %arg11[%c0_67, %c0_68, %c7_69, %c0_70] : memref<2x10x18x8xf32, #tpu.memory_space<vmem>>, vector<2x8x8x8xf32>
    %c0_71 = arith.constant 0 : index
    %c0_72 = arith.constant 0 : index
    %c8_73 = arith.constant 8 : index
    %c0_74 = arith.constant 0 : index
    %60 = vector.load %arg11[%c0_71, %c0_72, %c8_73, %c0_74] : memref<2x10x18x8xf32, #tpu.memory_space<vmem>>, vector<2x8x8x8xf32>
    %c0_75 = arith.constant 0 : index
    %c0_76 = arith.constant 0 : index
    %c9_77 = arith.constant 9 : index
    %c0_78 = arith.constant 0 : index
    %61 = vector.load %arg11[%c0_75, %c0_76, %c9_77, %c0_78] : memref<2x10x18x8xf32, #tpu.memory_space<vmem>>, vector<2x8x8x8xf32>
    %c0_79 = arith.constant 0 : index
    %c1_80 = arith.constant 1 : index
    %c7_81 = arith.constant 7 : index
    %c0_82 = arith.constant 0 : index
    %62 = vector.load %arg11[%c0_79, %c1_80, %c7_81, %c0_82] : memref<2x10x18x8xf32, #tpu.memory_space<vmem>>, vector<2x8x8x8xf32>
    %c0_83 = arith.constant 0 : index
    %c1_84 = arith.constant 1 : index
    %c8_85 = arith.constant 8 : index
    %c0_86 = arith.constant 0 : index
    %63 = vector.load %arg11[%c0_83, %c1_84, %c8_85, %c0_86] : memref<2x10x18x8xf32, #tpu.memory_space<vmem>>, vector<2x8x8x8xf32>
    %c0_87 = arith.constant 0 : index
    %c1_88 = arith.constant 1 : index
    %c9_89 = arith.constant 9 : index
    %c0_90 = arith.constant 0 : index
    %64 = vector.load %arg11[%c0_87, %c1_88, %c9_89, %c0_90] : memref<2x10x18x8xf32, #tpu.memory_space<vmem>>, vector<2x8x8x8xf32>
    %c0_91 = arith.constant 0 : index
    %c2_92 = arith.constant 2 : index
    %c7_93 = arith.constant 7 : index
    %c0_94 = arith.constant 0 : index
    %65 = vector.load %arg11[%c0_91, %c2_92, %c7_93, %c0_94] : memref<2x10x18x8xf32, #tpu.memory_space<vmem>>, vector<2x8x8x8xf32>
    %c0_95 = arith.constant 0 : index
    %c2_96 = arith.constant 2 : index
    %c8_97 = arith.constant 8 : index
    %c0_98 = arith.constant 0 : index
    %66 = vector.load %arg11[%c0_95, %c2_96, %c8_97, %c0_98] : memref<2x10x18x8xf32, #tpu.memory_space<vmem>>, vector<2x8x8x8xf32>
    %c0_99 = arith.constant 0 : index
    %c2_100 = arith.constant 2 : index
    %c9_101 = arith.constant 9 : index
    %c0_102 = arith.constant 0 : index
    %67 = vector.load %arg11[%c0_99, %c2_100, %c9_101, %c0_102] : memref<2x10x18x8xf32, #tpu.memory_space<vmem>>, vector<2x8x8x8xf32>
    %68 = tpu.concatenate %59, %60, %61, %62, %63, %64, %65, %66, %67 in 3 : vector<2x8x8x8xf32>, vector<2x8x8x8xf32>, vector<2x8x8x8xf32>, vector<2x8x8x8xf32>, vector<2x8x8x8xf32>, vector<2x8x8x8xf32>, vector<2x8x8x8xf32>, vector<2x8x8x8xf32>, vector<2x8x8x8xf32> -> vector<2x8x8x72xf32>
    %c0_103 = arith.constant 0 : index
    %c0_104 = arith.constant 0 : index
    %69 = vector.load %arg5[%c0_103, %c0_104] : memref<72x8xf32, #tpu.memory_space<vmem>>, vector<72x8xf32>
    %cst_105 = arith.constant dense<0.000000e+00> : vector<2x8x8x8xf32>
    %70 = tpu.matmul %68, %69, %cst_105 {dimension_numbers = #tpu.dot_dimension_numbers<[3], [0], [0, 1, 2], [1], [0, 0, 0, 1, 0, 2, 1, 1], [], []>} : vector<2x8x8x72xf32>, vector<72x8xf32>, vector<2x8x8x8xf32> -> vector<2x8x8x8xf32>
    %c0_106 = arith.constant 0 : index
    %c0_107 = arith.constant 0 : index
    %71 = vector.load %arg6[%c0_106, %c0_107] : memref<1x8xf32, #tpu.memory_space<vmem>>, vector<1x8xf32>
    %72 = vector.shape_cast %71 : vector<1x8xf32> to vector<1x1x1x8xf32>
    %73 = vector.broadcast %72 : vector<1x1x1x8xf32> to vector<2x8x8x8xf32>
    %74 = arith.addf %70, %73 : vector<2x8x8x8xf32>
    %cst_108 = arith.constant dense<0.000000e+00> : vector<8xf32>
    %75 = vector.multi_reduction <add>, %74, %cst_108 [0, 1, 2] : vector<2x8x8x8xf32> to vector<8xf32>
    %76 = vector.shape_cast %75 : vector<8xf32> to vector<1x1x1x8xf32>
    %cst_109 = arith.constant 1.280000e+02 : f32
    %77 = vector.broadcast %cst_109 : f32 to vector<1x1x1x8xf32>
    %78 = arith.divf %76, %77 : vector<1x1x1x8xf32>
    %79 = vector.broadcast %78 : vector<1x1x1x8xf32> to vector<2x8x8x8xf32>
    %80 = arith.subf %74, %79 : vector<2x8x8x8xf32>
    %81 = arith.mulf %80, %80 : vector<2x8x8x8xf32>
    %cst_110 = arith.constant dense<0.000000e+00> : vector<8xf32>
    %82 = vector.multi_reduction <add>, %81, %cst_110 [0, 1, 2] : vector<2x8x8x8xf32> to vector<8xf32>
    %83 = vector.shape_cast %82 : vector<8xf32> to vector<1x1x1x8xf32>
    %cst_111 = arith.constant 1.280000e+02 : f32
    %84 = vector.broadcast %cst_111 : f32 to vector<1x1x1x8xf32>
    %85 = arith.divf %83, %84 : vector<1x1x1x8xf32>
    %86 = vector.broadcast %78 : vector<1x1x1x8xf32> to vector<2x8x8x8xf32>
    %87 = arith.subf %74, %86 : vector<2x8x8x8xf32>
    %cst_112 = arith.constant 9.99999974E-6 : f32
    %88 = vector.broadcast %cst_112 : f32 to vector<1x1x1x8xf32>
    %89 = arith.addf %85, %88 : vector<1x1x1x8xf32>
    %90 = math.rsqrt %89 : vector<1x1x1x8xf32>
    %91 = vector.broadcast %90 : vector<1x1x1x8xf32> to vector<2x8x8x8xf32>
    %92 = arith.mulf %87, %91 : vector<2x8x8x8xf32>
    %c0_113 = arith.constant 0 : index
    %c0_114 = arith.constant 0 : index
    %93 = vector.load %arg7[%c0_113, %c0_114] : memref<1x8xf32, #tpu.memory_space<vmem>>, vector<1x8xf32>
    %94 = vector.shape_cast %93 : vector<1x8xf32> to vector<1x1x1x8xf32>
    %95 = vector.broadcast %94 : vector<1x1x1x8xf32> to vector<2x8x8x8xf32>
    %96 = arith.mulf %92, %95 : vector<2x8x8x8xf32>
    %c0_115 = arith.constant 0 : index
    %c0_116 = arith.constant 0 : index
    %97 = vector.load %arg8[%c0_115, %c0_116] : memref<1x8xf32, #tpu.memory_space<vmem>>, vector<1x8xf32>
    %98 = vector.shape_cast %97 : vector<1x8xf32> to vector<1x1x1x8xf32>
    %99 = vector.broadcast %98 : vector<1x1x1x8xf32> to vector<2x8x8x8xf32>
    %100 = arith.addf %96, %99 : vector<2x8x8x8xf32>
    %cst_117 = arith.constant 0.000000e+00 : f32
    %101 = vector.broadcast %cst_117 : f32 to vector<2x8x8x8xf32>
    %102 = arith.maximumf %100, %101 : vector<2x8x8x8xf32>
    %c0_118 = arith.constant 0 : index
    %c0_119 = arith.constant 0 : index
    %c0_120 = arith.constant 0 : index
    %c0_121 = arith.constant 0 : index
    %103 = vector.load %arg9[%c0_118, %c0_119, %c0_120, %c0_121] : memref<2x8x8x8xf32, #tpu.memory_space<vmem>>, vector<2x8x8x8xf32>
    tpu.vector_store %arg9[%c0_118, %c0_119, %c0_120, %c0_121], %102 {strides = array<i32>} : memref<2x8x8x8xf32, #tpu.memory_space<vmem>>, vector<2x8x8x8xf32>,
    return
  }
}

</mosaic_0001>

<bundles_post_ra>
// kernel: down_forward.1
= control target key start
LH: loop header
LB: loop body
LE: loop exit
PB: predicated region body
PF: predicated region fallthrough
CT: control target
= control target key end

     0   :  { %vm160_vm0 = vcmask 31744   ;;  %vm163_vm1 = vcmask 25600   ;;  %v2912_v3 = vmov 0.0   ;;  %s2913_s25 = smov 124   ;;  %s2914_s13 = smov 4   ;;  %vm912_vm2 = vcmask 64512   ;;  %s4685_s0 = inlined_call_operand.vmem [shape: f32[2,8,2,8,8], index: 0, kind: input, shape index: {}]   ;;  %s4686_s1 = inlined_call_operand.vmem [shape: f32[36,8], index: 1, kind: input, shape index: {}]   ;;  %s4687_s2 = inlined_call_operand.vmem [shape: f32[1,8], index: 2, kind: input, shape index: {}]   ;;  %s4688_s3 = inlined_call_operand.vmem [shape: f32[1,8], index: 3, kind: input, shape index: {}]   ;;  %s4689_s4 = inlined_call_operand.vmem [shape: f32[1,8], index: 4, kind: input, shape index: {}]   ;;  %s4690_s5 = inlined_call_operand.vmem [shape: f32[72,8], index: 5, kind: input, shape index: {}]   ;;  %s4691_s6 = inlined_call_operand.vmem [shape: f32[1,8], index: 6, kind: input, shape index: {}]   ;;  %s4692_s7 = inlined_call_operand.vmem [shape: f32[1,8], index: 7, kind: input, shape index: {}]   ;;  %s4693_s8 = inlined_call_operand.vmem [shape: f32[1,8], index: 8, kind: input, shape index: {}]   ;;  %s4694_s9 = inlined_call_operand.vmem [shape: f32[2,8,8,8], index: 9, kind: output, shape index: {}]  }
   0x1   :  { %v2979_v0 = vld [vmem:[%s4685_s0] sm:$0xff]  ;;  %v2984_v1 = vld [vmem:[%s4685_s0 + $0x8] sm:$0xff]  ;;  %v2989_v2 = vld [vmem:[%s4685_s0 + $0x10] sm:$0xff]  ;;  %166 = vst.msk [vmem:[#allocation2 + $0x20] sm:$0xff] %vm160_vm0, %v2912_v3  ;;  %s2917_s14 = smov 16   ;;  %s2918_s15 = smov 20  }
   0x2   :  { %161 = vst.msk [vmem:[#allocation2] sm:$0xff] %vm160_vm0, %v2912_v3  ;;  %162 = vst.msk [vmem:[#allocation2 + $0x8] sm:$0xff] %vm160_vm0, %v2912_v3  ;;  %v3113_v4 = vmax.f32 %v2979_v0, %v2984_v1  ;;  %v35_v5 = vld [vmem:[%s4685_s0 + $0x18] sm:$0xff]  ;;  %v36_v6 = vld [vmem:[%s4685_s0 + $0x20] sm:$0xff]  ;;  %s2919_s16 = smov 24   ;;  %vm1092_vm3 = vcmask 1043456  }
   0x3   :  { %165 = vst.msk [vmem:[#allocation2 + $0x18] sm:$0xff] %vm160_vm0, %v2912_v3  ;;  %168 = vst.msk [vmem:[#allocation2 + $0x30] sm:$0xff] %vm160_vm0, %v2912_v3  ;;  %v37_v7 = vld [vmem:[%s4685_s0 + $0x28] sm:$0xff]  ;;  %v38_v9 = vld [vmem:[%s4685_s0 + $0x30] sm:$0xff]  ;;  %v3135_v11 = vmax.f32 %v2989_v2, %v35_v5  ;;  %s2920_s26 = smov 28   ;;  %s2921_s29 = smov 32  }
   0x4   :  { %169 = vst.msk [vmem:[#allocation2 + $0x38] sm:$0xff] %vm160_vm0, %v2912_v3  ;;  %171 = vst.msk [vmem:[#allocation2 + $0x48] sm:$0xff] %vm160_vm0, %v2912_v3  ;;  %v3124_v8 = vmax.f32 %v36_v6, %v37_v7  ;;  %v39_v10 = vld [vmem:[%s4685_s0 + $0x38] sm:$0xff]  ;;  %96 = vrot.lane.b32.xlu0 %v3113_v4, %s2913_s25  ;;  %v40_v13 = vld [vmem:[%s4685_s0 + $0x40] sm:$0xff]  ;;  %vm929_vm4 = vcmask 97280   ;;  %vm946_vm5 = vcmask 130048  }
   0x5   :  { %172 = vst.msk [vmem:[#allocation2 + $0x50] sm:$0xff] %vm160_vm0, %v2912_v3  ;;  %174 = vst.msk [vmem:[#allocation2 + $0x60] sm:$0xff] %vm160_vm0, %v2912_v3  ;;  %v3139_v12 = vmax.f32 %v38_v9, %v39_v10  ;;  %v41_v14 = vld [vmem:[%s4685_s0 + $0x48] sm:$0xff]  ;;  %v42_v15 = vld [vmem:[%s4685_s0 + $0x50] sm:$0xff]  ;;  %vm963_vm6 = vcmask 162816   ;;  %vm980_vm7 = vcmask 195584  }
   0x6   :  { %175 = vst.msk [vmem:[#allocation2 + $0x68] sm:$0xff] %vm160_vm0, %v2912_v3  ;;  %177 = vst.msk [vmem:[#allocation2 + $0x78] sm:$0xff] %vm160_vm0, %v2912_v3  ;;  %100 = vrot.lane.b32.xlu1 %v3124_v8, %s2913_s25  ;;  %v43_v16 = vld [vmem:[%s4685_s0 + $0x58] sm:$0xff]  ;;  %v3155_v17 = vmax.f32 %v40_v13, %v41_v14  ;;  %v44_v19 = vld [vmem:[%s4685_s0 + $0x60] sm:$0xff]  ;;  %vm997_vm8 = vcmask 228352   ;;  %vm1014_vm9 = vcmask 261120  }
   0x7   :  { %178 = vst.msk [vmem:[#allocation2 + $0x80] sm:$0xff] %vm160_vm0, %v2912_v3  ;;  %180 = vst.msk [vmem:[#allocation2 + $0x90] sm:$0xff] %vm160_vm0, %v2912_v3  ;;  %v3159_v18 = vmax.f32 %v42_v15, %v43_v16  ;;  %v45_v20 = vld [vmem:[%s4685_s0 + $0x68] sm:$0xff]  ;;  %v46_v21 = vld [vmem:[%s4685_s0 + $0x70] sm:$0xff]  ;;  %vm1043_vm10 = vcmask 293888   ;;  %vm1432_vm11 = vcmask 58368  }
   0x8   :  { %181 = vst.msk [vmem:[#allocation2 + $0x98] sm:$0xff] %vm160_vm0, %v2912_v3  ;;  %183 = vst.msk [vmem:[#allocation2 + $0xa8] sm:$0xff] %vm160_vm0, %v2912_v3  ;;  %98 = vrot.lane.b32.xlu0 %v3135_v11, %s2913_s25  ;;  %v47_v22 = vld [vmem:[%s4685_s0 + $0x78] sm:$0xff]  ;;  %v3175_v23 = vmax.f32 %v44_v19, %v45_v20  ;;  %v48_v25 = vld [vmem:[%s4685_s0 + $0x80] sm:$0xff]  ;;  %s2923_s10 = smov 48   ;;  %s2924_s11 = smov 56  }
   0x9   :  { %184 = vst.msk [vmem:[#allocation2 + $0xb0] sm:$0xff] %vm160_vm0, %v2912_v3  ;;  %186 = vst.msk [vmem:[#allocation2 + $0xc0] sm:$0xff] %vm160_vm0, %v2912_v3  ;;  %v3179_v24 = vmax.f32 %v46_v21, %v47_v22  ;;  %v49_v26 = vld [vmem:[%s4685_s0 + $0x88] sm:$0xff]  ;;  %v50_v27 = vld [vmem:[%s4685_s0 + $0x90] sm:$0xff]  ;;  %vm2229_vm12 = vcmask 326656   ;;  %vm2246_vm13 = vcmask 392192  }
   0xa   :  { %187 = vst.msk [vmem:[#allocation2 + $0xc8] sm:$0xff] %vm160_vm0, %v2912_v3  ;;  %189 = vst.msk [vmem:[#allocation2 + $0xd8] sm:$0xff] %vm160_vm0, %v2912_v3  ;;  %102 = vrot.lane.b32.xlu1 %v3139_v12, %s2913_s25  ;;  %v51_v28 = vld [vmem:[%s4685_s0 + $0x98] sm:$0xff]  ;;  %v3195_v29 = vmax.f32 %v48_v25, %v49_v26  ;;  %v52_v30 = vld [vmem:[%s4685_s0 + $0xa0] sm:$0xff]  ;;  %vm2263_vm14 = vcmask 457728   ;;  %vm2280_vm15 = vcmask 523264  }
   0xb   :  { %190 = vst.msk [vmem:[#allocation2 + $0xe0] sm:$0xff] %vm160_vm0, %v2912_v3  ;;  %192 = vst.msk [vmem:[#allocation2 + $0xf0] sm:$0xff] %vm160_vm0, %v2912_v3  ;;  %v53_v31 = vld [vmem:[%s4685_s0 + $0xa8] sm:$0xff]  ;;  %v3205_v32 = vmax.f32 %v50_v27, %v51_v28  ;;  %v54_v33 = vld [vmem:[%s4685_s0 + $0xb0] sm:$0xff] }
   0xc   :  { %193 = vst.msk [vmem:[#allocation2 + $0xf8] sm:$0xff] %vm160_vm0, %v2912_v3  ;;  %195 = vst.msk [vmem:[#allocation2 + $0x108] sm:$0xff] %vm160_vm0, %v2912_v3  ;;  %104 = vrot.lane.b32.xlu0 %v3155_v17, %s2913_s25  ;;  %v55_v34 = vld [vmem:[%s4685_s0 + $0xb8] sm:$0xff]  ;;  %v3215_v35 = vmax.f32 %v52_v30, %v53_v31  ;;  %v56_v36 = vld [vmem:[%s4685_s0 + $0xc0] sm:$0xff] }
   0xd   :  { %196 = vst.msk [vmem:[#allocation2 + $0x110] sm:$0xff] %vm160_vm0, %v2912_v3  ;;  %198 = vst.msk [vmem:[#allocation2 + $0x120] sm:$0xff] %vm160_vm0, %v2912_v3  ;;  %v57_v37 = vld [vmem:[%s4685_s0 + $0xc8] sm:$0xff]  ;;  %v3225_v38 = vmax.f32 %v54_v33, %v55_v34  ;;  %v58_v39 = vld [vmem:[%s4685_s0 + $0xd0] sm:$0xff] }
   0xe   :  { %199 = vst.msk [vmem:[#allocation2 + $0x128] sm:$0xff] %vm160_vm0, %v2912_v3  ;;  %201 = vst.msk [vmem:[#allocation2 + $0x138] sm:$0xff] %vm160_vm0, %v2912_v3  ;;  %106 = vrot.lane.b32.xlu1 %v3159_v18, %s2913_s25  ;;  %v59_v40 = vld [vmem:[%s4685_s0 + $0xd8] sm:$0xff]  ;;  %v3235_v41 = vmax.f32 %v56_v36, %v57_v37  ;;  %v60_v42 = vld [vmem:[%s4685_s0 + $0xe0] sm:$0xff] }
   0xf   :  { %202 = vst.msk [vmem:[#allocation2 + $0x140] sm:$0xff] %vm160_vm0, %v2912_v3  ;;  %204 = vst.msk [vmem:[#allocation2 + $0x150] sm:$0xff] %vm160_vm0, %v2912_v3  ;;  %v61_v43 = vld [vmem:[%s4685_s0 + $0xe8] sm:$0xff]  ;;  %v3245_v44 = vmax.f32 %v58_v39, %v59_v40  ;;  %v62_v45 = vld [vmem:[%s4685_s0 + $0xf0] sm:$0xff] }
  0x10   :  { %205 = vst.msk [vmem:[#allocation2 + $0x158] sm:$0xff] %vm160_vm0, %v2912_v3  ;;  %207 = vst.msk [vmem:[#allocation2 + $0x168] sm:$0xff] %vm160_vm0, %v2912_v3  ;;  %108 = vrot.lane.b32.xlu0 %v3175_v23, %s2913_s25  ;;  %v63_v46 = vld [vmem:[%s4685_s0 + $0xf8] sm:$0xff]  ;;  %v3255_v47 = vmax.f32 %v60_v42, %v61_v43  ;;  %v255_v49 = vld [vmem:[#allocation2 + $0x8] sm:$0xff]  ;;  %s2915_s0 = smov 8  }
  0x11   :  { %208 = vst.msk [vmem:[#allocation2 + $0x170] sm:$0xff] %vm160_vm0, %v2912_v3  ;;  %210 = vst.msk [vmem:[#allocation2 + $0x180] sm:$0xff] %vm160_vm0, %v2912_v3  ;;  %v3259_v48 = vmax.f32 %v62_v45, %v63_v46  ;;  %v1035_v30 = vld [vmem:[%s4686_s1 + $0x20] sm:$0xf]  ;;  %v1034_v31 = vld [vmem:[%s4686_s1 + $0x18] sm:$0xff] }
  0x12   :  { %211 = vst.msk [vmem:[#allocation2 + $0x188] sm:$0xff] %vm160_vm0, %v2912_v3  ;;  %213 = vst.msk [vmem:[#allocation2 + $0x198] sm:$0xff] %vm160_vm0, %v2912_v3  ;;  %110 = vrot.lane.b32.xlu1 %v3179_v24, %s2913_s25  ;;  %2800 = vmatprep.subr.msk.mxu0 %vm1092_vm3, %v1035_v30  ;;  %v1032_v33 = vld [vmem:[%s4686_s1 + $0x8] sm:$0xff] }
  0x13   :  { %214 = vst.msk [vmem:[#allocation2 + $0x1a0] sm:$0xff] %vm160_vm0, %v2912_v3  ;;  %216 = vst.msk [vmem:[#allocation2 + $0x1b0] sm:$0xff] %vm160_vm0, %v2912_v3  ;;  %2801 = vmatpush3.msk.msra.mxu0 %vm1092_vm3, %v1035_v30 }
  0x14   :  { %217 = vst.msk [vmem:[#allocation2 + $0x1b8] sm:$0xff] %vm160_vm0, %v2912_v3  ;;  %219 = vst.msk [vmem:[#allocation2 + $0x1c8] sm:$0xff] %vm160_vm0, %v2912_v3  ;;  %112 = vrot.lane.b32.xlu0 %v3195_v29, %s2913_s25  ;;  %2802 = vmatprep.subr.mxu0 %v1034_v31 }
  0x15   :  { %220 = vst.msk [vmem:[#allocation2 + $0x1d0] sm:$0xff] %vm160_vm0, %v2912_v3  ;;  %2803 = vmatpush3.msra.mxu0 %v1034_v31 }
  0x16   :  { %164 = vst.msk [vmem:[#allocation2 + $0x10] sm:$0x3] %vm163_vm1, %v2912_v3  ;;  %167 = vst.msk [vmem:[#allocation2 + $0x28] sm:$0x3] %vm163_vm1, %v2912_v3  ;;  %114 = vrot.lane.b32.xlu1 %v3205_v32, %s2913_s25 }
  0x17   :  { %170 = vst.msk [vmem:[#allocation2 + $0x40] sm:$0x3] %vm163_vm1, %v2912_v3  ;;  %173 = vst.msk [vmem:[#allocation2 + $0x58] sm:$0x3] %vm163_vm1, %v2912_v3 }
  0x18   :  { %176 = vst.msk [vmem:[#allocation2 + $0x70] sm:$0x3] %vm163_vm1, %v2912_v3  ;;  %179 = vst.msk [vmem:[#allocation2 + $0x88] sm:$0x3] %vm163_vm1, %v2912_v3  ;;  %116 = vrot.lane.b32.xlu0 %v3215_v35, %s2913_s25 }
  0x19   :  { %182 = vst.msk [vmem:[#allocation2 + $0xa0] sm:$0x3] %vm163_vm1, %v2912_v3  ;;  %185 = vst.msk [vmem:[#allocation2 + $0xb8] sm:$0x3] %vm163_vm1, %v2912_v3 }
  0x1a   :  { %188 = vst.msk [vmem:[#allocation2 + $0xd0] sm:$0x3] %vm163_vm1, %v2912_v3  ;;  %191 = vst.msk [vmem:[#allocation2 + $0xe8] sm:$0x3] %vm163_vm1, %v2912_v3  ;;  %118 = vrot.lane.b32.xlu1 %v3225_v38, %s2913_s25 }
  0x1b   :  { %194 = vst.msk [vmem:[#allocation2 + $0x100] sm:$0x3] %vm163_vm1, %v2912_v3  ;;  %197 = vst.msk [vmem:[#allocation2 + $0x118] sm:$0x3] %vm163_vm1, %v2912_v3 }
  0x1c   :  { %200 = vst.msk [vmem:[#allocation2 + $0x130] sm:$0x3] %vm163_vm1, %v2912_v3  ;;  %203 = vst.msk [vmem:[#allocation2 + $0x148] sm:$0x3] %vm163_vm1, %v2912_v3  ;;  %120 = vrot.lane.b32.xlu0 %v3235_v41, %s2913_s25 }
  0x1d   :  { %206 = vst.msk [vmem:[#allocation2 + $0x160] sm:$0x3] %vm163_vm1, %v2912_v3  ;;  %209 = vst.msk [vmem:[#allocation2 + $0x178] sm:$0x3] %vm163_vm1, %v2912_v3  ;;  %v271_v50 = vld [vmem:[#allocation2 + $0x9] sm:$0xff] }
  0x1e   :  { %212 = vst.msk [vmem:[#allocation2 + $0x190] sm:$0x3] %vm163_vm1, %v2912_v3  ;;  %215 = vst.msk [vmem:[#allocation2 + $0x1a8] sm:$0x3] %vm163_vm1, %v2912_v3  ;;  %122 = vrot.lane.b32.xlu1 %v3245_v44, %s2913_s25 }
  0x1f   :  { %218 = vst.msk [vmem:[#allocation2 + $0x1c0] sm:$0x3] %vm163_vm1, %v2912_v3  ;;  %221 = vst.msk [vmem:[#allocation2 + $0x1d8] sm:$0x3] %vm163_vm1, %v2912_v3 }
  0x20   :  { %124 = vrot.lane.b32.xlu0 %v3255_v47, %s2913_s25  ;;  %1430 = vst.msk [vmem:[#allocation3] sm:$0xff] %vm912_vm2, %v2912_v3  ;;  %1431 = vst.msk [vmem:[#allocation3 + $0x8] sm:$0xff] %vm912_vm2, %v2912_v3 }
  0x21   :  { %1434 = vst.msk [vmem:[#allocation3 + $0x18] sm:$0xff] %vm912_vm2, %v2912_v3  ;;  %1435 = vst.msk [vmem:[#allocation3 + $0x20] sm:$0xff] %vm912_vm2, %v2912_v3 }
  0x22   :  { %126 = vrot.lane.b32.xlu1 %v3259_v48, %s2913_s25  ;;  %1437 = vst.msk [vmem:[#allocation3 + $0x30] sm:$0xff] %vm912_vm2, %v2912_v3  ;;  %1438 = vst.msk [vmem:[#allocation3 + $0x38] sm:$0xff] %vm912_vm2, %v2912_v3  ;;  %s2916_s25 = smov 12  }
  0x23   :  { %1440 = vst.msk [vmem:[#allocation3 + $0x48] sm:$0xff] %vm912_vm2, %v2912_v3  ;;  %1441 = vst.msk [vmem:[#allocation3 + $0x50] sm:$0xff] %vm912_vm2, %v2912_v3 }
  0x24   :  { %400 = vrot.lane.b32.xlu0 %v255_v49, %s2914_s13  ;;  %1443 = vst.msk [vmem:[#allocation3 + $0x60] sm:$0xff] %vm912_vm2, %v2912_v3  ;;  %1444 = vst.msk [vmem:[#allocation3 + $0x68] sm:$0xff] %vm912_vm2, %v2912_v3 }
  0x25   :  { %1446 = vst.msk [vmem:[#allocation3 + $0x78] sm:$0xff] %vm912_vm2, %v2912_v3  ;;  %1447 = vst.msk [vmem:[#allocation3 + $0x80] sm:$0xff] %vm912_vm2, %v2912_v3 }
  0x26   :  { %1449 = vst.msk [vmem:[#allocation3 + $0x90] sm:$0xff] %vm912_vm2, %v2912_v3  ;;  %1450 = vst.msk [vmem:[#allocation3 + $0x98] sm:$0xff] %vm912_vm2, %v2912_v3 }
  0x27   :  { %1452 = vst.msk [vmem:[#allocation3 + $0xa8] sm:$0xff] %vm912_vm2, %v2912_v3  ;;  %1453 = vst.msk [vmem:[#allocation3 + $0xb0] sm:$0xff] %vm912_vm2, %v2912_v3 }
  0x28   :  { %464 = vrot.lane.b32.xlu0 %v271_v50, %s2915_s0  ;;  %1455 = vst.msk [vmem:[#allocation3 + $0xc0] sm:$0xff] %vm912_vm2, %v2912_v3  ;;  %1456 = vst.msk [vmem:[#allocation3 + $0xc8] sm:$0xff] %vm912_vm2, %v2912_v3 }
  0x29   :  { %1458 = vst.msk [vmem:[#allocation3 + $0xd8] sm:$0xff] %vm912_vm2, %v2912_v3  ;;  %1459 = vst.msk [vmem:[#allocation3 + $0xe0] sm:$0xff] %vm912_vm2, %v2912_v3 }
  0x2a   :  { %1461 = vst.msk [vmem:[#allocation3 + $0xf0] sm:$0xff] %vm912_vm2, %v2912_v3  ;;  %1462 = vst.msk [vmem:[#allocation3 + $0xf8] sm:$0xff] %vm912_vm2, %v2912_v3 }
  0x2b   :  { %1464 = vst.msk [vmem:[#allocation3 + $0x108] sm:$0xff] %vm912_vm2, %v2912_v3  ;;  %1465 = vst.msk [vmem:[#allocation3 + $0x110] sm:$0xff] %vm912_vm2, %v2912_v3 }
  0x2c   :  { %1467 = vst.msk [vmem:[#allocation3 + $0x120] sm:$0xff] %vm912_vm2, %v2912_v3  ;;  %1468 = vst.msk [vmem:[#allocation3 + $0x128] sm:$0xff] %vm912_vm2, %v2912_v3 }
  0x2d   :  { %1470 = vst.msk [vmem:[#allocation3 + $0x138] sm:$0xff] %vm912_vm2, %v2912_v3  ;;  %1471 = vst.msk [vmem:[#allocation3 + $0x140] sm:$0xff] %vm912_vm2, %v2912_v3 }
  0x2e   :  { %1473 = vst.msk [vmem:[#allocation3 + $0x150] sm:$0xff] %vm912_vm2, %v2912_v3  ;;  %1474 = vst.msk [vmem:[#allocation3 + $0x158] sm:$0xff] %vm912_vm2, %v2912_v3 }
  0x2f   :  { %1476 = vst.msk [vmem:[#allocation3 + $0x168] sm:$0xff] %vm912_vm2, %v2912_v3  ;;  %1477 = vst.msk [vmem:[#allocation3 + $0x170] sm:$0xff] %vm912_vm2, %v2912_v3 }
  0x30   :  { %1479 = vst.msk [vmem:[#allocation3 + $0x180] sm:$0xff] %vm912_vm2, %v2912_v3  ;;  %1480 = vst.msk [vmem:[#allocation3 + $0x188] sm:$0xff] %vm912_vm2, %v2912_v3 }
  0x31   :  { %1482 = vst.msk [vmem:[#allocation3 + $0x198] sm:$0xff] %vm912_vm2, %v2912_v3  ;;  %1483 = vst.msk [vmem:[#allocation3 + $0x1a0] sm:$0xff] %vm912_vm2, %v2912_v3 }
  0x32   :  { %1485 = vst.msk [vmem:[#allocation3 + $0x1b0] sm:$0xff] %vm912_vm2, %v2912_v3  ;;  %1486 = vst.msk [vmem:[#allocation3 + $0x1b8] sm:$0xff] %vm912_vm2, %v2912_v3 }
  0x33   :  { %1488 = vst.msk [vmem:[#allocation3 + $0x1c8] sm:$0xff] %vm912_vm2, %v2912_v3  ;;  %1489 = vst.msk [vmem:[#allocation3 + $0x1d0] sm:$0xff] %vm912_vm2, %v2912_v3 }
  0x34   :  { %1433 = vst.msk [vmem:[#allocation3 + $0x10] sm:$0x3] %vm1432_vm11, %v2912_v3  ;;  %1436 = vst.msk [vmem:[#allocation3 + $0x28] sm:$0x3] %vm1432_vm11, %v2912_v3 }
  0x35   :  { %1439 = vst.msk [vmem:[#allocation3 + $0x40] sm:$0x3] %vm1432_vm11, %v2912_v3  ;;  %1442 = vst.msk [vmem:[#allocation3 + $0x58] sm:$0x3] %vm1432_vm11, %v2912_v3 }
  0x36   :  { %1445 = vst.msk [vmem:[#allocation3 + $0x70] sm:$0x3] %vm1432_vm11, %v2912_v3  ;;  %1448 = vst.msk [vmem:[#allocation3 + $0x88] sm:$0x3] %vm1432_vm11, %v2912_v3 }
  0x37   :  { %1451 = vst.msk [vmem:[#allocation3 + $0xa0] sm:$0x3] %vm1432_vm11, %v2912_v3  ;;  %1454 = vst.msk [vmem:[#allocation3 + $0xb8] sm:$0x3] %vm1432_vm11, %v2912_v3 }
  0x38   :  { %1457 = vst.msk [vmem:[#allocation3 + $0xd0] sm:$0x3] %vm1432_vm11, %v2912_v3  ;;  %1460 = vst.msk [vmem:[#allocation3 + $0xe8] sm:$0x3] %vm1432_vm11, %v2912_v3 }
  0x39   :  { %1463 = vst.msk [vmem:[#allocation3 + $0x100] sm:$0x3] %vm1432_vm11, %v2912_v3  ;;  %1466 = vst.msk [vmem:[#allocation3 + $0x118] sm:$0x3] %vm1432_vm11, %v2912_v3 }
  0x3a   :  { %1469 = vst.msk [vmem:[#allocation3 + $0x130] sm:$0x3] %vm1432_vm11, %v2912_v3  ;;  %1472 = vst.msk [vmem:[#allocation3 + $0x148] sm:$0x3] %vm1432_vm11, %v2912_v3 }
  0x3b   :  { %1475 = vst.msk [vmem:[#allocation3 + $0x160] sm:$0x3] %vm1432_vm11, %v2912_v3  ;;  %1478 = vst.msk [vmem:[#allocation3 + $0x178] sm:$0x3] %vm1432_vm11, %v2912_v3 }
  0x3c   :  { %1481 = vst.msk [vmem:[#allocation3 + $0x190] sm:$0x3] %vm1432_vm11, %v2912_v3  ;;  %1484 = vst.msk [vmem:[#allocation3 + $0x1a8] sm:$0x3] %vm1432_vm11, %v2912_v3 }
  0x3d   :  { %1487 = vst.msk [vmem:[#allocation3 + $0x1c0] sm:$0x3] %vm1432_vm11, %v2912_v3  ;;  %1490 = vst.msk [vmem:[#allocation3 + $0x1d8] sm:$0x3] %vm1432_vm11, %v2912_v3 }
  0x76   :  { %v97_v51 = vpop.permute.xlu0 %96 }
  0x77   :  { %v144_v52 = vmax.f32 %v3113_v4, %v97_v51 }
  0x78   :  { %v101_v53 = vpop.permute.xlu1 %100 }
  0x79   :  { %v146_v54 = vmax.f32 %v3124_v8, %v101_v53  ;;  %223 = vst.msk [vmem:[#allocation2 + $0x20] sm:$0xff] %vm160_vm0, %v144_v52  ;;  %v279_v53 = vld [vmem:[#allocation2 + $0xf9] sm:$0xff] }
  0x7a   :  { %v99_v55 = vpop.permute.xlu0 %98 }
  0x7b   :  { %225 = vst.msk [vmem:[#allocation2 + $0x50] sm:$0xff] %vm160_vm0, %v146_v54  ;;  %v145_v56 = vmax.f32 %v3135_v11, %v99_v55 }
  0x7c   :  { %v103_v57 = vpop.permute.xlu1 %102 }
  0x7d   :  { %v147_v58 = vmax.f32 %v3139_v12, %v103_v57  ;;  %224 = vst.msk [vmem:[#allocation2 + $0x38] sm:$0xff] %vm160_vm0, %v145_v56  ;;  %v343_v57 = vld [vmem:[#allocation2 + $0xdf] sm:$0xff] }
  0x7e   :  { %v105_v59 = vpop.permute.xlu0 %104 }
  0x7f   :  { %226 = vst.msk [vmem:[#allocation2 + $0x68] sm:$0xff] %vm160_vm0, %v147_v58  ;;  %v148_v60 = vmax.f32 %v3155_v17, %v105_v59 }
  0x80   :  { %v107_v61 = vpop.permute.xlu1 %106  ;;  %v3356_v62 = vld [vmem:[#allocation2 + $0x1f] sm:$0xff] }
  0x81   :  { %v256_v63 = vld [vmem:[#allocation2 + $0x20] sm:$0xff]  ;;  %v149_v0 = vmax.f32 %v3159_v18, %v107_v61  ;;  %528 = vrot.lane.b32.xlu0 %v3356_v62, %s2916_s25  ;;  %227 = vst.msk [vmem:[#allocation2 + $0x80] sm:$0xff] %vm160_vm0, %v148_v60 }
  0x82   :  { %402 = vrot.lane.b32.xlu1 %v256_v63, %s2914_s13  ;;  %v109_v1 = vpop.permute.xlu0 %108  ;;  %v272_v5 = vld [vmem:[#allocation2 + $0x21] sm:$0xff]  ;;  %v258_v13 = vld [vmem:[#allocation2 + $0x50] sm:$0xff] }
  0x83   :  { %228 = vst.msk [vmem:[#allocation2 + $0x98] sm:$0xff] %vm160_vm0, %v149_v0  ;;  %v150_v2 = vmax.f32 %v3175_v23, %v109_v1  ;;  %v274_v23 = vld [vmem:[#allocation2 + $0x51] sm:$0xff]  ;;  %v359_v1 = vld [vmem:[#allocation2 + $0xe0] sm:$0xff] }
  0x84   :  { %v111_v4 = vpop.permute.xlu1 %110  ;;  %v304_v7 = vld [vmem:[#allocation2 + $0x38] sm:$0xff]  ;;  %v3397_v28 = vld [vmem:[#allocation2 + $0x4f] sm:$0xff] }
  0x85   :  { %v151_v6 = vmax.f32 %v3179_v24, %v111_v4  ;;  %592 = vrot.lane.b32.xlu0 %v256_v63, %s2917_s14  ;;  %229 = vst.msk [vmem:[#allocation2 + $0xb0] sm:$0xff] %vm160_vm0, %v150_v2  ;;  %v3369_v8 = vld [vmem:[#allocation2 + $0x37] sm:$0xff] }
  0x86   :  { %466 = vrot.lane.b32.xlu1 %v272_v5, %s2915_s0  ;;  %v113_v9 = vpop.permute.xlu0 %112  ;;  %v320_v21 = vld [vmem:[#allocation2 + $0x39] sm:$0xff]  ;;  %v259_v34 = vld [vmem:[#allocation2 + $0x68] sm:$0xff] }
  0x87   :  { %230 = vst.msk [vmem:[#allocation2 + $0xc8] sm:$0xff] %vm160_vm0, %v151_v6  ;;  %v152_v10 = vmax.f32 %v3195_v29, %v113_v9  ;;  %v3403_v29 = vld [vmem:[#allocation2 + $0x67] sm:$0xff] }
  0x88   :  { %v115_v11 = vpop.permute.xlu1 %114  ;;  %v260_v36 = vld [vmem:[#allocation2 + $0x80] sm:$0xff]  ;;  %v322_v37 = vld [vmem:[#allocation2 + $0x69] sm:$0xff] }
  0x89   :  { %v153_v12 = vmax.f32 %v3205_v32, %v115_v11  ;;  %594 = vrot.lane.b32.xlu0 %v304_v7, %s2917_s14  ;;  %231 = vst.msk [vmem:[#allocation2 + $0x110] sm:$0xff] %vm160_vm0, %v152_v10  ;;  %v1033_v32 = vld [vmem:[%s4686_s1 + $0x10] sm:$0xff]  ;;  %v3436_v39 = vld [vmem:[#allocation2 + $0x7f] sm:$0xff] }
  0x8a   :  { %530 = vrot.lane.b32.xlu1 %v3369_v8, %s2916_s25  ;;  %v117_v14 = vpop.permute.xlu0 %116  ;;  %2804 = vmatprep.subr.mxu0 %v1033_v32  ;;  %v3442_v40 = vld [vmem:[#allocation2 + $0x97] sm:$0xff] }
  0x8b   :  { %232 = vst.msk [vmem:[#allocation2 + $0x128] sm:$0xff] %vm160_vm0, %v153_v12  ;;  %v154_v15 = vmax.f32 %v3215_v35, %v117_v14  ;;  %2805 = vmatpush3.msra.mxu0 %v1033_v32  ;;  %v1031_v35 = vld [vmem:[%s4686_s1] sm:$0xff] }
  0x8c   :  { %v119_v16 = vpop.permute.xlu1 %118  ;;  %2806 = vmatprep.subr.mxu0 %v1032_v33  ;;  %v262_v42 = vld [vmem:[#allocation2 + $0xb0] sm:$0xff]  ;;  %v324_v43 = vld [vmem:[#allocation2 + $0x99] sm:$0xff]  ;;  %v239_v14 = vld [vmem:[#allocation2 + $0x7] sm:$0xff] }
  0x8d   :  { %v155_v17 = vmax.f32 %v3225_v38, %v119_v16  ;;  %406 = vrot.lane.b32.xlu0 %v258_v13, %s2914_s13  ;;  %233 = vst.msk [vmem:[#allocation2 + $0x140] sm:$0xff] %vm160_vm0, %v154_v15  ;;  %2807 = vmatpush3.msra.mxu0 %v1032_v33  ;;  %v276_v38 = vld [vmem:[#allocation2 + $0x81] sm:$0xff]  ;;  %v3460_v45 = vld [vmem:[#allocation2 + $0xaf] sm:$0xff] }
  0x8e   :  { %404 = vrot.lane.b32.xlu1 %v304_v7, %s2914_s13  ;;  %v121_v18 = vpop.permute.xlu0 %120  ;;  %2808 = vmatprep.subr.mxu0 %v1031_v35  ;;  %v294_v46 = vld [vmem:[#allocation2 + $0xc7] sm:$0xff] }
  0x8f   :  { %234 = vst.msk [vmem:[#allocation2 + $0x158] sm:$0xff] %vm160_vm0, %v155_v17  ;;  %v156_v19 = vmax.f32 %v3235_v41, %v121_v18  ;;  %2809 = vmatpush3.msra.mxu0 %v1031_v35  ;;  %v261_v41 = vld [vmem:[#allocation2 + $0x98] sm:$0xff]  ;;  %v310_v50 = vld [vmem:[#allocation2 + $0xc8] sm:$0xff] }
  0x90   :  { %v123_v20 = vpop.permute.xlu1 %122  ;;  %v264_v49 = vld [vmem:[#allocation2 + $0x110] sm:$0xff]  ;;  %v375_v15 = vld [vmem:[#allocation2 + $0xe1] sm:$0xff] }
  0x91   :  { %v157_v22 = vmax.f32 %v3245_v44, %v123_v20  ;;  %658 = vrot.lane.b32.xlu0 %v320_v21, %s2918_s15  ;;  %235 = vst.msk [vmem:[#allocation2 + $0x170] sm:$0xff] %vm160_vm0, %v156_v19  ;;  %v278_v44 = vld [vmem:[#allocation2 + $0xb1] sm:$0xff]  ;;  %v326_v52 = vld [vmem:[#allocation2 + $0xc9] sm:$0xff] }
  0x92   :  { %656 = vrot.lane.b32.xlu1 %v272_v5, %s2918_s15  ;;  %v125_v24 = vpop.permute.xlu0 %124  ;;  %v280_v56 = vld [vmem:[#allocation2 + $0x111] sm:$0xff]  ;;  %v3493_v0 = vld [vmem:[#allocation2 + $0x127] sm:$0xff] }
  0x93   :  { %236 = vst.msk [vmem:[#allocation2 + $0x188] sm:$0xff] %vm160_vm0, %v157_v22  ;;  %v158_v25 = vmax.f32 %v3255_v47, %v125_v24  ;;  %v263_v47 = vld [vmem:[#allocation2 + $0xf8] sm:$0xff]  ;;  %v3491_v63 = vld [vmem:[#allocation2 + $0x10f] sm:$0xff] }
  0x94   :  { %v127_v26 = vpop.permute.xlu1 %126  ;;  %v328_v18 = vld [vmem:[#allocation2 + $0x129] sm:$0xff]  ;;  %v3529_v30 = vld [vmem:[#allocation2 + $0x13f] sm:$0xff] }
  0x95   :  { %v159_v27 = vmax.f32 %v3259_v48, %v127_v26  ;;  %470 = vrot.lane.b32.xlu0 %v274_v23, %s2915_s0  ;;  %237 = vst.msk [vmem:[#allocation2 + $0x1a0] sm:$0xff] %vm160_vm0, %v158_v25 }
  0x96   :  { %468 = vrot.lane.b32.xlu1 %v320_v21, %s2915_s0  ;;  %v401_v48 = vpop.permute.xlu0 %400 }
  0x97   :  { %238 = vst.msk [vmem:[#allocation2 + $0x1b8] sm:$0xff] %vm160_vm0, %v159_v27  ;;  %v896_v19 = vsel %vm160_vm0, %v239_v14, %v401_v48 }
  0x99   :  { %722 = vrot.lane.b32.xlu0 %v3397_v28, %s2919_s16 }
  0x9a   :  { %720 = vrot.lane.b32.xlu1 %v3369_v8, %s2919_s16  ;;  %v465_v51 = vpop.permute.xlu0 %464 }
  0x9b   :  { %v913_v22 = vsel %vm912_vm2, %v896_v19, %v465_v51 }
  0x9d   :  { %534 = vrot.lane.b32.xlu0 %v3403_v29, %s2916_s25 }
  0x9e   :  { %532 = vrot.lane.b32.xlu1 %v3397_v28, %s2916_s25 }
  0xa1   :  { %786 = vrot.lane.b32.xlu0 %v258_v13, %s2920_s26 }
  0xa2   :  { %784 = vrot.lane.b32.xlu1 %v304_v7, %s2920_s26  ;;  %v265_v7 = vld [vmem:[#allocation2 + $0x128] sm:$0xff] }
  0xa5   :  { %408 = vrot.lane.b32.xlu0 %v259_v34, %s2914_s13 }
  0xa6   :  { %596 = vrot.lane.b32.xlu1 %v258_v13, %s2917_s14  ;;  %v266_v13 = vld [vmem:[#allocation2 + $0x140] sm:$0xff] }
  0xa9   :  { %660 = vrot.lane.b32.xlu0 %v274_v23, %s2918_s15 }
  0xaa   :  { %848 = vrot.lane.b32.xlu1 %v320_v21, %s2921_s29 }
  0xad   :  { %410 = vrot.lane.b32.xlu0 %v260_v36, %s2914_s13 }
  0xae   :  { %598 = vrot.lane.b32.xlu1 %v259_v34, %s2917_s14 }
  0xb1   :  { %662 = vrot.lane.b32.xlu0 %v322_v37, %s2918_s15 }
  0xb2   :  { %850 = vrot.lane.b32.xlu1 %v274_v23, %s2921_s29  ;;  %v282_v23 = vld [vmem:[#allocation2 + $0x141] sm:$0xff] }
  0xb5   :  { %474 = vrot.lane.b32.xlu0 %v276_v38, %s2915_s0 }
  0xb6   :  { %472 = vrot.lane.b32.xlu1 %v322_v37, %s2915_s0 }
  0xb9   :  { %726 = vrot.lane.b32.xlu0 %v3436_v39, %s2919_s16 }
  0xba   :  { %724 = vrot.lane.b32.xlu1 %v3403_v29, %s2919_s16 }
  0xbd   :  { %538 = vrot.lane.b32.xlu0 %v3442_v40, %s2916_s25 }
  0xbe   :  { %536 = vrot.lane.b32.xlu1 %v3436_v39, %s2916_s25 }
  0xc1   :  { %790 = vrot.lane.b32.xlu0 %v260_v36, %s2920_s26 }
  0xc2   :  { %788 = vrot.lane.b32.xlu1 %v259_v34, %s2920_s26 }
  0xc5   :  { %412 = vrot.lane.b32.xlu0 %v261_v41, %s2914_s13 }
  0xc6   :  { %600 = vrot.lane.b32.xlu1 %v260_v36, %s2917_s14 }
  0xc9   :  { %664 = vrot.lane.b32.xlu0 %v276_v38, %s2918_s15 }
  0xca   :  { %852 = vrot.lane.b32.xlu1 %v322_v37, %s2921_s29 }
  0xcd   :  { %414 = vrot.lane.b32.xlu0 %v262_v42, %s2914_s13 }
  0xce   :  { %602 = vrot.lane.b32.xlu1 %v261_v41, %s2917_s14 }
  0xd1   :  { %666 = vrot.lane.b32.xlu0 %v324_v43, %s2918_s15 }
  0xd2   :  { %854 = vrot.lane.b32.xlu1 %v276_v38, %s2921_s29  ;;  %v3543_v38 = vld [vmem:[#allocation2 + $0x157] sm:$0xff] }
  0xd5   :  { %478 = vrot.lane.b32.xlu0 %v278_v44, %s2915_s0 }
  0xd6   :  { %476 = vrot.lane.b32.xlu1 %v324_v43, %s2915_s0 }
  0xd9   :  { %730 = vrot.lane.b32.xlu0 %v3460_v45, %s2919_s16 }
  0xda   :  { %728 = vrot.lane.b32.xlu1 %v3442_v40, %s2919_s16 }
  0xdd   :  { %542 = vrot.lane.b32.xlu0 %v294_v46, %s2916_s25 }
  0xde   :  { %540 = vrot.lane.b32.xlu1 %v3460_v45, %s2916_s25 }
  0xe1   :  { %794 = vrot.lane.b32.xlu0 %v262_v42, %s2920_s26 }
  0xe2   :  { %792 = vrot.lane.b32.xlu1 %v261_v41, %s2920_s26 }
  0xe5   :  { %416 = vrot.lane.b32.xlu0 %v263_v47, %s2914_s13 }
  0xe6   :  { %604 = vrot.lane.b32.xlu1 %v262_v42, %s2917_s14 }
  0xe9   :  { %668 = vrot.lane.b32.xlu0 %v278_v44, %s2918_s15 }
  0xea   :  { %856 = vrot.lane.b32.xlu1 %v324_v43, %s2921_s29 }
  0xed   :  { %418 = vrot.lane.b32.xlu0 %v264_v49, %s2914_s13 }
  0xee   :  { %606 = vrot.lane.b32.xlu1 %v310_v50, %s2917_s14 }
  0xf1   :  { %670 = vrot.lane.b32.xlu0 %v326_v52, %s2918_s15 }
  0xf2   :  { %858 = vrot.lane.b32.xlu1 %v278_v44, %s2921_s29 }
  0xf3   :  { %v529_v55 = vpop.permute.xlu0 %528 }
  0xf4   :  { %v3479_v54 = vpop.permute.xlu1 %402  ;;  %v930_v24 = vsel %vm929_vm4, %v913_v22, %v529_v55 }
  0xf5   :  { %482 = vrot.lane.b32.xlu0 %v280_v56, %s2915_s0  ;;  %v897_v33 = vsel %vm160_vm0, %v3356_v62, %v3479_v54 }
  0xf6   :  { %480 = vrot.lane.b32.xlu1 %v279_v53, %s2915_s0 }
  0xf7   :  { %v593_v59 = vpop.permute.xlu0 %592 }
  0xf8   :  { %v3483_v58 = vpop.permute.xlu1 %466  ;;  %v947_v27 = vsel %vm946_vm5, %v930_v24, %v593_v59 }
  0xf9   :  { %734 = vrot.lane.b32.xlu0 %v343_v57, %s2919_s16  ;;  %v914_v37 = vsel %vm912_vm2, %v897_v33, %v3483_v58  ;;  %v268_v57 = vld [vmem:[#allocation2 + $0x170] sm:$0xff] }
  0xfa   :  { %732 = vrot.lane.b32.xlu1 %v294_v46, %s2919_s16 }
  0xfb   :  { %v3489_v61 = vpop.permute.xlu0 %594 }
  0xfc   :  { %v3487_v60 = vpop.permute.xlu1 %530 }
  0xfd   :  { %546 = vrot.lane.b32.xlu0 %v3493_v0, %s2916_s25  ;;  %v931_v42 = vsel %vm929_vm4, %v914_v37, %v3487_v60  ;;  %v330_v60 = vld [vmem:[#allocation2 + $0x159] sm:$0xff] }
  0xfe   :  { %544 = vrot.lane.b32.xlu1 %v3491_v63, %s2916_s25  ;;  %v948_v44 = vsel %vm946_vm5, %v931_v42, %v3489_v61 }
  0xff   :  { %v3501_v4 = vpop.permute.xlu0 %406 }
 0x100   :  { %v3499_v2 = vpop.permute.xlu1 %404 }
 0x101   :  { %798 = vrot.lane.b32.xlu0 %v359_v1, %s2920_s26 }
 0x102   :  { %796 = vrot.lane.b32.xlu1 %v310_v50, %s2920_s26 }
 0x103   :  { %v659_v6 = vpop.permute.xlu0 %658 }
 0x104   :  { %v657_v5 = vpop.permute.xlu1 %656  ;;  %v965_v46 = vsel %vm963_vm6, %v948_v44, %v659_v6  ;;  %v898_v6 = vsel %vm160_vm0, %v3369_v8, %v3499_v2  ;;  %v332_v44 = vld [vmem:[#allocation2 + $0x189] sm:$0xff] }
 0x105   :  { %420 = vrot.lane.b32.xlu0 %v265_v7, %s2914_s13  ;;  %v964_v31 = vsel %vm963_vm6, %v947_v27, %v657_v5  ;;  %v284_v5 = vld [vmem:[#allocation2 + $0x171] sm:$0xff] }
 0x106   :  { %608 = vrot.lane.b32.xlu1 %v264_v49, %s2917_s14 }
 0x107   :  { %v3509_v10 = vpop.permute.xlu0 %470 }
 0x108   :  { %v3507_v9 = vpop.permute.xlu1 %468 }
 0x109   :  { %672 = vrot.lane.b32.xlu0 %v280_v56, %s2918_s15 }
 0x10a   :  { %860 = vrot.lane.b32.xlu1 %v326_v52, %s2921_s29  ;;  %v267_v52 = vld [vmem:[#allocation2 + $0x158] sm:$0xff] }
 0x10b   :  { %v723_v12 = vpop.permute.xlu0 %722 }
 0x10c   :  { %v721_v11 = vpop.permute.xlu1 %720  ;;  %v982_v47 = vsel %vm980_vm7, %v965_v46, %v723_v12 }
 0x10d   :  { %422 = vrot.lane.b32.xlu0 %v266_v13, %s2914_s13  ;;  %v981_v32 = vsel %vm980_vm7, %v964_v31, %v721_v11 }
 0x10e   :  { %610 = vrot.lane.b32.xlu1 %v265_v7, %s2917_s14 }
 0x10f   :  { %v3517_v17 = vpop.permute.xlu0 %534 }
 0x110   :  { %v3515_v16 = vpop.permute.xlu1 %532 }
 0x111   :  { %674 = vrot.lane.b32.xlu0 %v328_v18, %s2918_s15 }
 0x112   :  { %862 = vrot.lane.b32.xlu1 %v375_v15, %s2921_s29  ;;  %v3592_v15 = vld [vmem:[#allocation2 + $0x16f] sm:$0xff] }
 0x113   :  { %v787_v21 = vpop.permute.xlu0 %786 }
 0x114   :  { %v785_v20 = vpop.permute.xlu1 %784  ;;  %v999_v48 = vsel %vm997_vm8, %v982_v47, %v787_v21  ;;  %v899_v21 = vsel %vm160_vm0, %v3397_v28, %v3501_v4 }
 0x115   :  { %486 = vrot.lane.b32.xlu0 %v282_v23, %s2915_s0  ;;  %v998_v34 = vsel %vm997_vm8, %v981_v32, %v785_v20  ;;  %v3602_v20 = vld [vmem:[#allocation2 + $0x187] sm:$0xff]  ;;  %v916_v22 = vsel %vm912_vm2, %v899_v21, %v3509_v10 }
 0x116   :  { %484 = vrot.lane.b32.xlu1 %v328_v18, %s2915_s0 }
 0x117   :  { %v3526_v26 = vpop.permute.xlu0 %408 }
 0x118   :  { %v597_v25 = vpop.permute.xlu1 %596 }
 0x119   :  { %738 = vrot.lane.b32.xlu0 %v3529_v30, %s2919_s16 }
 0x11a   :  { %736 = vrot.lane.b32.xlu1 %v3493_v0, %s2919_s16 }
 0x11b   :  { %v661_v36 = vpop.permute.xlu0 %660 }
 0x11c   :  { %v849_v35 = vpop.permute.xlu1 %848 }
 0x11d   :  { %v1015_v41 = vsel %vm1014_vm9, %v998_v34, %v849_v35  ;;  %550 = vrot.lane.b32.xlu0 %v3543_v38, %s2916_s25 }
 0x11e   :  { %548 = vrot.lane.b32.xlu1 %v3529_v30, %s2916_s25  ;;  %2810 = vmatprep.mubr.msk.f32.mxu0 %vm1043_vm10, %v1015_v41  ;;  %v270_v41 = vld [vmem:[#allocation2 + $0x1a0] sm:$0xff] }
 0x11f   :  { %v3553_v43 = vpop.permute.xlu0 %410 }
 0x120   :  { %v599_v62 = vpop.permute.xlu1 %598 }
 0x121   :  { %802 = vrot.lane.b32.xlu0 %v266_v13, %s2920_s26 }
 0x122   :  { %800 = vrot.lane.b32.xlu1 %v265_v7, %s2920_s26  ;;  %v915_v7 = vsel %vm912_vm2, %v898_v6, %v3507_v9 }
 0x123   :  { %v663_v50 = vpop.permute.xlu0 %662  ;;  %v932_v11 = vsel %vm929_vm4, %v915_v7, %v3515_v16 }
 0x124   :  { %v851_v49 = vpop.permute.xlu1 %850  ;;  %v949_v14 = vsel %vm946_vm5, %v932_v11, %v597_v25 }
 0x125   :  { %v1016_v51 = vsel %vm1014_vm9, %v999_v48, %v851_v49  ;;  %424 = vrot.lane.b32.xlu0 %v267_v52, %s2914_s13  ;;  %v286_v48 = vld [vmem:[#allocation2 + $0x1a1] sm:$0xff]  ;;  %v900_v49 = vsel %vm160_vm0, %v3403_v29, %v3526_v26 }
 0x126   :  { %612 = vrot.lane.b32.xlu1 %v266_v13, %s2917_s14  ;;  %2811 = vmatmul.mubr.msk.f32.vlgmr.msra.gmra.mxu0 %vm1043_vm10, %v1016_v51 }
 0x127   :  { %v3568_v54 = vpop.permute.xlu0 %474 }
 0x128   :  { %v3566_v53 = vpop.permute.xlu1 %472 }
 0x129   :  { %676 = vrot.lane.b32.xlu0 %v282_v23, %s2918_s15 }
 0x12a   :  { %864 = vrot.lane.b32.xlu1 %v328_v18, %s2921_s29  ;;  %v966_v18 = vsel %vm963_vm6, %v949_v14, %v661_v36 }
 0x12b   :  { %v727_v56 = vpop.permute.xlu0 %726 }
 0x12c   :  { %v725_v55 = vpop.permute.xlu1 %724 }
 0x12d   :  { %426 = vrot.lane.b32.xlu0 %v268_v57, %s2914_s13  ;;  %v983_v8 = vsel %vm980_vm7, %v966_v18, %v725_v55 }
 0x12e   :  { %614 = vrot.lane.b32.xlu1 %v267_v52, %s2917_s14 }
 0x12f   :  { %v3576_v59 = vpop.permute.xlu0 %538 }
 0x130   :  { %v3574_v58 = vpop.permute.xlu1 %536 }
 0x131   :  { %678 = vrot.lane.b32.xlu0 %v330_v60, %s2918_s15 }
 0x132   :  { %866 = vrot.lane.b32.xlu1 %v282_v23, %s2921_s29  ;;  %v933_v23 = vsel %vm929_vm4, %v916_v22, %v3517_v17  ;;  %v269_v17 = vld [vmem:[#allocation2 + $0x188] sm:$0xff] }
 0x133   :  { %v791_v1 = vpop.permute.xlu0 %790  ;;  %v950_v27 = vsel %vm946_vm5, %v933_v23, %v599_v62 }
 0x134   :  { %v789_v61 = vpop.permute.xlu1 %788  ;;  %v967_v28 = vsel %vm963_vm6, %v950_v27, %v663_v50  ;;  %v917_v50 = vsel %vm912_vm2, %v900_v49, %v3566_v53  ;;  %v351_v27 = vld [vmem:[#allocation2 + $0x1cf] sm:$0xff] }
 0x135   :  { %490 = vrot.lane.b32.xlu0 %v284_v5, %s2915_s0  ;;  %v1000_v2 = vsel %vm997_vm8, %v983_v8, %v789_v61  ;;  %v984_v4 = vsel %vm980_vm7, %v967_v28, %v727_v56  ;;  %v934_v51 = vsel %vm929_vm4, %v917_v50, %v3574_v58 }
 0x136   :  { %488 = vrot.lane.b32.xlu1 %v330_v60, %s2915_s0  ;;  %v1001_v10 = vsel %vm997_vm8, %v984_v4, %v791_v1  ;;  %v302_v1 = vld [vmem:[#allocation2 + $0x1b7] sm:$0xff] }
 0x137   :  { %v3589_v13 = vpop.permute.xlu0 %412 }
 0x138   :  { %v601_v12 = vpop.permute.xlu1 %600 }
 0x139   :  { %742 = vrot.lane.b32.xlu0 %v3592_v15, %s2919_s16  ;;  %v951_v56 = vsel %vm946_vm5, %v934_v51, %v601_v12 }
 0x13a   :  { %740 = vrot.lane.b32.xlu1 %v3543_v38, %s2919_s16 }
 0x13b   :  { %v665_v16 = vpop.permute.xlu0 %664 }
 0x13c   :  { %v853_v9 = vpop.permute.xlu1 %852 }
 0x13d   :  { %v1017_v19 = vsel %vm1014_vm9, %v1000_v2, %v853_v9  ;;  %554 = vrot.lane.b32.xlu0 %v3602_v20, %s2916_s25 }
 0x13e   :  { %552 = vrot.lane.b32.xlu1 %v3592_v15, %s2916_s25  ;;  %2813 = vmatprep.mubr.msk.f32.mxu0 %vm1043_vm10, %v1017_v19 }
 0x13f   :  { %v3616_v25 = vpop.permute.xlu0 %414 }
 0x140   :  { %v603_v24 = vpop.permute.xlu1 %602 }
 0x141   :  { %806 = vrot.lane.b32.xlu0 %v268_v57, %s2920_s26 }
 0x142   :  { %804 = vrot.lane.b32.xlu1 %v267_v52, %s2920_s26 }
 0x143   :  { %v667_v32 = vpop.permute.xlu0 %666 }
 0x144   :  { %v855_v31 = vpop.permute.xlu1 %854 }
 0x145   :  { %v1018_v33 = vsel %vm1014_vm9, %v1001_v10, %v855_v31  ;;  %428 = vrot.lane.b32.xlu0 %v269_v17, %s2914_s13  ;;  %v902_v10 = vsel %vm160_vm0, %v3442_v40, %v3589_v13  ;;  %v383_v13 = vld [vmem:[#allocation2 + $0x1d1] sm:$0xff] }
 0x146   :  { %616 = vrot.lane.b32.xlu1 %v268_v57, %s2917_s14  ;;  %2814 = vmatmul.mubr.msk.f32.gmra.mxu0 %vm1043_vm10, %v1018_v33  ;;  %v3654_v57 = vld [vmem:[#allocation2 + $0x19f] sm:$0xff] }
 0x147   :  { %v3630_v35 = vpop.permute.xlu0 %478 }
 0x148   :  { %v3628_v34 = vpop.permute.xlu1 %476 }
 0x149   :  { %680 = vrot.lane.b32.xlu0 %v284_v5, %s2918_s15  ;;  %v919_v31 = vsel %vm912_vm2, %v902_v10, %v3628_v34 }
 0x14a   :  { %868 = vrot.lane.b32.xlu1 %v330_v60, %s2921_s29  ;;  %v968_v60 = vsel %vm963_vm6, %v951_v56, %v665_v16 }
 0x14b   :  { %v731_v37 = vpop.permute.xlu0 %730 }
 0x14c   :  { %v729_v36 = vpop.permute.xlu1 %728 }
 0x14d   :  { %430 = vrot.lane.b32.xlu0 %v270_v41, %s2914_s13  ;;  %v985_v29 = vsel %vm980_vm7, %v968_v60, %v729_v36 }
 0x14e   :  { %618 = vrot.lane.b32.xlu1 %v269_v17, %s2917_s14 }
 0x14f   :  { %v3638_v62 = vpop.permute.xlu0 %542 }
 0x150   :  { %v3636_v42 = vpop.permute.xlu1 %540 }
 0x151   :  { %682 = vrot.lane.b32.xlu0 %v332_v44, %s2918_s15  ;;  %v936_v33 = vsel %vm929_vm4, %v919_v31, %v3636_v42  ;;  %v903_v42 = vsel %vm160_vm0, %v3460_v45, %v3616_v25 }
 0x152   :  { %870 = vrot.lane.b32.xlu1 %v284_v5, %s2921_s29  ;;  %v901_v5 = vsel %vm160_vm0, %v3436_v39, %v3553_v43 }
 0x153   :  { %v795_v47 = vpop.permute.xlu0 %794  ;;  %v918_v6 = vsel %vm912_vm2, %v901_v5, %v3568_v54  ;;  %v247_v5 = vld [vmem:[#allocation2 + $0xf7] sm:$0xff] }
 0x154   :  { %v793_v46 = vpop.permute.xlu1 %792  ;;  %v935_v7 = vsel %vm929_vm4, %v918_v6, %v3576_v59  ;;  %v318_v59 = vld [vmem:[#allocation2 + $0x1b8] sm:$0xff] }
 0x155   :  { %494 = vrot.lane.b32.xlu0 %v286_v48, %s2915_s0  ;;  %v1002_v26 = vsel %vm997_vm8, %v985_v29, %v793_v46  ;;  %v952_v14 = vsel %vm946_vm5, %v935_v7, %v603_v24  ;;  %v334_v24 = vld [vmem:[#allocation2 + $0x1b9] sm:$0xff] }
 0x156   :  { %492 = vrot.lane.b32.xlu1 %v332_v44, %s2915_s0  ;;  %v969_v39 = vsel %vm963_vm6, %v952_v14, %v667_v32  ;;  %v367_v32 = vld [vmem:[#allocation2 + $0x1d0] sm:$0xff] }
 0x157   :  { %v3651_v55 = vpop.permute.xlu0 %416  ;;  %v986_v43 = vsel %vm980_vm7, %v969_v39, %v731_v37 }
 0x158   :  { %v605_v52 = vpop.permute.xlu1 %604  ;;  %v1003_v54 = vsel %vm997_vm8, %v986_v43, %v795_v47 }
 0x159   :  { %746 = vrot.lane.b32.xlu0 %v3654_v57, %s2919_s16  ;;  %v953_v37 = vsel %vm946_vm5, %v936_v33, %v605_v52 }
 0x15a   :  { %744 = vrot.lane.b32.xlu1 %v3602_v20, %s2919_s16 }
 0x15b   :  { %v669_v58 = vpop.permute.xlu0 %668 }
 0x15c   :  { %v857_v53 = vpop.permute.xlu1 %856 }
 0x15d   :  { %v1019_v61 = vsel %vm1014_vm9, %v1002_v26, %v857_v53  ;;  %558 = vrot.lane.b32.xlu0 %v302_v1, %s2916_s25 }
 0x15e   :  { %556 = vrot.lane.b32.xlu1 %v3654_v57, %s2916_s25  ;;  %2816 = vmatprep.mubr.msk.f32.mxu0 %vm1043_vm10, %v1019_v61 }
 0x15f   :  { %v3675_v12 = vpop.permute.xlu0 %418 }
 0x160   :  { %v607_v11 = vpop.permute.xlu1 %606 }
 0x161   :  { %810 = vrot.lane.b32.xlu0 %v270_v41, %s2920_s26 }
 0x162   :  { %808 = vrot.lane.b32.xlu1 %v269_v17, %s2920_s26 }
 0x163   :  { %v671_v8 = vpop.permute.xlu0 %670 }
 0x164   :  { %v859_v18 = vpop.permute.xlu1 %858 }
 0x165   :  { %v1020_v2 = vsel %vm1014_vm9, %v1003_v54, %v859_v18  ;;  %622 = vrot.lane.b32.xlu0 %v318_v59, %s2917_s14 }
 0x166   :  { %620 = vrot.lane.b32.xlu1 %v270_v41, %s2917_s14  ;;  %2817 = vmatmul.mubr.msk.f32.gmra.mxu0 %vm1043_vm10, %v1020_v2  ;;  %v970_v41 = vsel %vm963_vm6, %v953_v37, %v669_v58 }
 0x167   :  { %v3687_v16 = vpop.permute.xlu0 %482 }
 0x168   :  { %v481_v9 = vpop.permute.xlu1 %480 }
 0x169   :  { %874 = vrot.lane.b32.xlu0 %v286_v48, %s2921_s29 }
 0x16a   :  { %872 = vrot.lane.b32.xlu1 %v332_v44, %s2921_s29 }
 0x16b   :  { %v735_v21 = vpop.permute.xlu0 %734 }
 0x16c   :  { %v733_v19 = vpop.permute.xlu1 %732 }
 0x16d   :  { %748 = vrot.lane.b32.xlu0 %v302_v1, %s2919_s16  ;;  %v987_v40 = vsel %vm980_vm7, %v970_v41, %v733_v19 }
 0x16e   :  { %684 = vrot.lane.b32.xlu1 %v286_v48, %s2918_s15  ;;  %v920_v48 = vsel %vm912_vm2, %v903_v42, %v3630_v35 }
 0x16f   :  { %v3693_v23 = vpop.permute.xlu0 %546  ;;  %v937_v49 = vsel %vm929_vm4, %v920_v48, %v3638_v62 }
 0x170   :  { %v545_v22 = vpop.permute.xlu1 %544  ;;  %v954_v52 = vsel %vm946_vm5, %v937_v49, %v607_v11  ;;  %v904_v11 = vsel %vm160_vm0, %v247_v5, %v3651_v55  ;;  %v905_v55 = vsel %vm160_vm0, %v3491_v63, %v3675_v12 }
 0x171   :  { %812 = vrot.lane.b32.xlu0 %v318_v59, %s2920_s26  ;;  %v971_v56 = vsel %vm963_vm6, %v954_v52, %v671_v8  ;;  %v921_v14 = vsel %vm912_vm2, %v904_v11, %v481_v9  ;;  %v922_v9 = vsel %vm912_vm2, %v905_v55, %v3687_v16 }
 0x172   :  { %686 = vrot.lane.b32.xlu1 %v334_v24, %s2918_s15  ;;  %v988_v60 = vsel %vm980_vm7, %v971_v56, %v735_v21  ;;  %v938_v39 = vsel %vm929_vm4, %v921_v14, %v545_v22  ;;  %v939_v22 = vsel %vm929_vm4, %v922_v9, %v3693_v23 }
 0x173   :  { %v799_v4 = vpop.permute.xlu0 %798 }
 0x174   :  { %v797_v28 = vpop.permute.xlu1 %796  ;;  %v1005_v45 = vsel %vm997_vm8, %v988_v60, %v799_v4 }
 0x175   :  { %876 = vrot.lane.b32.xlu0 %v334_v24, %s2921_s29  ;;  %v1004_v44 = vsel %vm997_vm8, %v987_v40, %v797_v28 }
 0x176   :  { %750 = vrot.lane.b32.xlu1 %v351_v27, %s2919_s16 }
 0x177   :  { %v3706_v36 = vpop.permute.xlu0 %420 }
 0x178   :  { %v609_v17 = vpop.permute.xlu1 %608 }
 0x179   :  { %v955_v18 = vsel %vm946_vm5, %v938_v39, %v609_v17 }
 0x17a   :  { %814 = vrot.lane.b32.xlu1 %v367_v32, %s2920_s26 }
 0x17b   :  { %v673_v34 = vpop.permute.xlu0 %672 }
 0x17c   :  { %v861_v46 = vpop.permute.xlu1 %860  ;;  %v972_v8 = vsel %vm963_vm6, %v955_v18, %v673_v34 }
 0x17d   :  { %v1021_v47 = vsel %vm1014_vm9, %v1004_v44, %v861_v46  ;;  %v906_v46 = vsel %vm160_vm0, %v3493_v0, %v3706_v36 }
 0x17e   :  { %878 = vrot.lane.b32.xlu1 %v383_v13, %s2921_s29  ;;  %2819 = vmatprep.mubr.msk.f32.mxu0 %vm1043_vm10, %v1021_v47 }
 0x17f   :  { %v3723_v51 = vpop.permute.xlu0 %422 }
 0x180   :  { %v611_v50 = vpop.permute.xlu1 %610  ;;  %v907_v0 = vsel %vm160_vm0, %v3529_v30, %v3723_v51 }
 0x181   :  { %v956_v4 = vsel %vm946_vm5, %v939_v22, %v611_v50 }
 0x183   :  { %v675_v29 = vpop.permute.xlu0 %674 }
 0x184   :  { %v863_v25 = vpop.permute.xlu1 %862  ;;  %v973_v10 = vsel %vm963_vm6, %v956_v4, %v675_v29 }
 0x185   :  { %v1022_v26 = vsel %vm1014_vm9, %v1005_v45, %v863_v25 }
 0x186   :  { %2820 = vmatmul.mubr.msk.f32.gmra.mxu0 %vm1043_vm10, %v1022_v26 }
 0x187   :  { %v487_v53 = vpop.permute.xlu0 %486 }
 0x188   :  { %v485_v35 = vpop.permute.xlu1 %484  ;;  %v924_v36 = vsel %vm912_vm2, %v907_v0, %v487_v53 }
 0x189   :  { %v923_v34 = vsel %vm912_vm2, %v906_v46, %v485_v35 }
 0x18b   :  { %v739_v58 = vpop.permute.xlu0 %738 }
 0x18c   :  { %v737_v62 = vpop.permute.xlu1 %736  ;;  %v990_v31 = vsel %vm980_vm7, %v973_v10, %v739_v58 }
 0x18d   :  { %v989_v2 = vsel %vm980_vm7, %v972_v8, %v737_v62 }
 0x18f   :  { %v551_v1 = vpop.permute.xlu0 %550 }
 0x190   :  { %v549_v61 = vpop.permute.xlu1 %548  ;;  %v941_v29 = vsel %vm929_vm4, %v924_v36, %v551_v1 }
 0x191   :  { %v940_v47 = vsel %vm929_vm4, %v923_v34, %v549_v61 }
 0x193   :  { %v803_v7 = vpop.permute.xlu0 %802 }
 0x194   :  { %v801_v6 = vpop.permute.xlu1 %800  ;;  %v1007_v32 = vsel %vm997_vm8, %v990_v31, %v803_v7 }
 0x195   :  { %v1006_v59 = vsel %vm997_vm8, %v989_v2, %v801_v6 }
 0x197   :  { %v3735_v54 = vpop.permute.xlu0 %424 }
 0x198   :  { %v613_v43 = vpop.permute.xlu1 %612  ;;  %v908_v8 = vsel %vm160_vm0, %v3543_v38, %v3735_v54 }
 0x199   :  { %v957_v49 = vsel %vm946_vm5, %v940_v47, %v613_v43 }
 0x19b   :  { %v677_v21 = vpop.permute.xlu0 %676 }
 0x19c   :  { %v865_v19 = vpop.permute.xlu1 %864  ;;  %v974_v50 = vsel %vm963_vm6, %v957_v49, %v677_v21 }
 0x19d   :  { %v1023_v24 = vsel %vm1014_vm9, %v1006_v59, %v865_v19 }
 0x19e   :  { %2822 = vmatprep.mubr.msk.f32.mxu0 %vm1043_vm10, %v1023_v24 }
 0x19f   :  { %v427_v28 = vpop.permute.xlu0 %426 }
 0x1a0   :  { %v615_v27 = vpop.permute.xlu1 %614  ;;  %v909_v2 = vsel %vm160_vm0, %v3592_v15, %v427_v28 }
 0x1a1   :  { %v958_v62 = vsel %vm946_vm5, %v941_v29, %v615_v27 }
 0x1a3   :  { %v679_v63 = vpop.permute.xlu0 %678 }
 0x1a4   :  { %v867_v33 = vpop.permute.xlu1 %866  ;;  %v975_v58 = vsel %vm963_vm6, %v958_v62, %v679_v63 }
 0x1a5   :  { %v1024_v12 = vsel %vm1014_vm9, %v1007_v32, %v867_v33 }
 0x1a6   :  { %2823 = vmatmul.mubr.msk.f32.gmra.mxu0 %vm1043_vm10, %v1024_v12 }
 0x1a7   :  { %v491_v17 = vpop.permute.xlu0 %490 }
 0x1a8   :  { %v489_v16 = vpop.permute.xlu1 %488  ;;  %v926_v19 = vsel %vm912_vm2, %v909_v2, %v491_v17  ;;  %v1548_v2 = vld [vmem:[#allocation3 + $0xf9] sm:$0xff] }
 0x1a9   :  { %v925_v59 = vsel %vm912_vm2, %v908_v8, %v489_v16  ;;  %v1532_v8 = vld [vmem:[#allocation3 + $0xf8] sm:$0xff]  ;;  %1749 = vrot.lane.b32.xlu1 %v1548_v2, %s2917_s14 }
 0x1ab   :  { %v743_v23 = vpop.permute.xlu0 %742 }
 0x1ac   :  { %v741_v37 = vpop.permute.xlu1 %740  ;;  %v992_v61 = vsel %vm980_vm7, %v975_v58, %v743_v23 }
 0x1ad   :  { %v991_v52 = vsel %vm980_vm7, %v974_v50, %v741_v37 }
 0x1af   :  { %v555_v40 = vpop.permute.xlu0 %554 }
 0x1b0   :  { %v553_v41 = vpop.permute.xlu1 %552  ;;  %v943_v24 = vsel %vm929_vm4, %v926_v19, %v555_v40 }
 0x1b1   :  { %v942_v21 = vsel %vm929_vm4, %v925_v59, %v553_v41 }
 0x1b3   :  { %v807_v44 = vpop.permute.xlu0 %806 }
 0x1b4   :  { %v805_v13 = vpop.permute.xlu1 %804  ;;  %v1009_v5 = vsel %vm997_vm8, %v992_v61, %v807_v44 }
 0x1b5   :  { %v1008_v56 = vsel %vm997_vm8, %v991_v52, %v805_v13 }
 0x1b7   :  { %v429_v48 = vpop.permute.xlu0 %428 }
 0x1b8   :  { %v617_v42 = vpop.permute.xlu1 %616  ;;  %v910_v12 = vsel %vm160_vm0, %v3602_v20, %v429_v48 }
 0x1b9   :  { %v959_v22 = vsel %vm946_vm5, %v942_v21, %v617_v42 }
 0x1bb   :  { %v681_v45 = vpop.permute.xlu0 %680 }
 0x1bc   :  { %v869_v60 = vpop.permute.xlu1 %868  ;;  %v976_v4 = vsel %vm963_vm6, %v959_v22, %v681_v45 }
 0x1bd   :  { %v1025_v25 = vsel %vm1014_vm9, %v1008_v56, %v869_v60 }
 0x1be   :  { %2825 = vmatprep.mubr.msk.f32.mxu0 %vm1043_vm10, %v1025_v25 }
 0x1bf   :  { %v431_v35 = vpop.permute.xlu0 %430 }
 0x1c0   :  { %v619_v26 = vpop.permute.xlu1 %618  ;;  %v911_v48 = vsel %vm160_vm0, %v3654_v57, %v431_v35  ;;  %v3862_v35 = vld [vmem:[%s4687_s2] ss:$0 sm:$0xff]  ;;  %s2922_s2 = smov 64   ;;  %vm2313_vm0 = vcmask 588800  }
 0x1c1   :  { %v960_v27 = vsel %vm946_vm5, %v943_v24, %v619_v26 }
 0x1c3   :  { %v683_v7 = vpop.permute.xlu0 %682 }
 0x1c4   :  { %v871_v6 = vpop.permute.xlu1 %870  ;;  %v977_v38 = vsel %vm963_vm6, %v960_v27, %v683_v7  ;;  %v1644_v27 = vld [vmem:[#allocation3 + $0xe1] sm:$0xff] }
 0x1c5   :  { %v1026_v30 = vsel %vm1014_vm9, %v1009_v5, %v871_v6  ;;  %v1524_v5 = vld [vmem:[#allocation3 + $0x8] sm:$0xff]  ;;  %2131 = vrot.lane.b32.xlu1 %v1644_v27, %s2922_s2 }
 0x1c6   :  { %2826 = vmatmul.mubr.msk.f32.gmra.mxu0 %vm1043_vm10, %v1026_v30  ;;  %1669 = vrot.lane.b32.xlu0 %v1524_v5, %s2915_s0 }
 0x1c7   :  { %v495_v53 = vpop.permute.xlu0 %494 }
 0x1c8   :  { %v493_v51 = vpop.permute.xlu1 %492  ;;  %v928_v49 = vsel %vm912_vm2, %v911_v48, %v495_v53 }
 0x1c9   :  { %v927_v37 = vsel %vm912_vm2, %v910_v12, %v493_v51  ;;  %v1540_v51 = vld [vmem:[#allocation3 + $0x9] sm:$0xff] }
 0x1ca   :  { %1733 = vrot.lane.b32.xlu0 %v1540_v51, %s2917_s14  ;;  %v1636_v12 = vld [vmem:[#allocation3 + $0x1d0] sm:$0xff] }
 0x1cb   :  { %v747_v1 = vpop.permute.xlu0 %746 }
 0x1cc   :  { %v745_v11 = vpop.permute.xlu1 %744  ;;  %v994_v54 = vsel %vm980_vm7, %v977_v38, %v747_v1 }
 0x1cd   :  { %v993_v15 = vsel %vm980_vm7, %v976_v4, %v745_v11 }
 0x1ce   :  { %1685 = vrot.lane.b32.xlu0 %v1532_v8, %s2915_s0 }
 0x1cf   :  { %v559_v39 = vpop.permute.xlu0 %558 }
 0x1d0   :  { %v557_v14 = vpop.permute.xlu1 %556  ;;  %v945_v50 = vsel %vm929_vm4, %v928_v49, %v559_v39 }
 0x1d1   :  { %v944_v23 = vsel %vm929_vm4, %v927_v37, %v557_v14 }
 0x1d3   :  { %v811_v18 = vpop.permute.xlu0 %810 }
 0x1d4   :  { %v809_v43 = vpop.permute.xlu1 %808  ;;  %v1011_v10 = vsel %vm997_vm8, %v994_v54, %v811_v18 }
 0x1d5   :  { %v1010_v28 = vsel %vm997_vm8, %v993_v15, %v809_v43 }
 0x1d7   :  { %v623_v9 = vpop.permute.xlu0 %622 }
 0x1d8   :  { %v621_v55 = vpop.permute.xlu1 %620  ;;  %v962_v56 = vsel %vm946_vm5, %v945_v50, %v623_v9 }
 0x1d9   :  { %v961_v41 = vsel %vm946_vm5, %v944_v23, %v621_v55 }
 0x1db   :  { %v875_v32 = vpop.permute.xlu0 %874 }
 0x1dc   :  { %v873_v31 = vpop.permute.xlu1 %872  ;;  %v1028_v63 = vsel %vm1014_vm9, %v1011_v10, %v875_v32  ;;  %v1612_v10 = vld [vmem:[#allocation3 + $0xdf] sm:$0xff] }
 0x1dd   :  { %v1027_v33 = vsel %vm1014_vm9, %v1010_v28, %v873_v31  ;;  %v1620_v28 = vld [vmem:[#allocation3 + $0x1cf] sm:$0xff]  ;;  %2003 = vrot.lane.b32.xlu0 %v1612_v10, %s2923_s10 }
 0x1de   :  { %2828 = vmatprep.mubr.msk.f32.mxu0 %vm1043_vm10, %v1027_v33  ;;  %2019 = vrot.lane.b32.xlu1 %v1620_v28, %s2923_s10 }
 0x1df   :  { %2829 = vmatmul.mubr.msk.f32.gmra.mxu0 %vm1043_vm10, %v1028_v63  ;;  %v749_v17 = vpop.permute.xlu0 %748 }
 0x1e0   :  { %v685_v16 = vpop.permute.xlu1 %684 }
 0x1e1   :  { %v978_v40 = vsel %vm963_vm6, %v961_v41, %v685_v16  ;;  %v1628_v16 = vld [vmem:[#allocation3 + $0xe0] sm:$0xff] }
 0x1e2   :  { %v995_v46 = vsel %vm980_vm7, %v978_v40, %v749_v17  ;;  %2083 = vrot.lane.b32.xlu1 %v1636_v12, %s2924_s11  ;;  %2067 = vrot.lane.b32.xlu0 %v1628_v16, %s2924_s11 }
 0x1e3   :  { %v813_v44 = vpop.permute.xlu0 %812 }
 0x1e4   :  { %v687_v13 = vpop.permute.xlu1 %686  ;;  %v1012_v34 = vsel %vm997_vm8, %v995_v46, %v813_v44 }
 0x1e5   :  { %v979_v60 = vsel %vm963_vm6, %v962_v56, %v687_v13 }
 0x1e6   :  { %v2812_v57 = vpop.f32.mrf.mxu0 }
 0x1e7   :  { %v877_v42 = vpop.permute.xlu0 %876  ;;  %v3868_v6 = vadd.f32 %v2812_v57, %v3862_v35 }
 0x1e8   :  { %v751_v47 = vpop.permute.xlu1 %750  ;;  %v1029_v20 = vsel %vm1014_vm9, %v1012_v34, %v877_v42  ;;  %v1162_v29 = vpop.f32.mrf.mxu0 }
 0x1e9   :  { %2831 = vmatprep.mubr.msk.f32.mxu0 %vm1043_vm10, %v1029_v20  ;;  %v996_v45 = vsel %vm980_vm7, %v979_v60, %v751_v47  ;;  %v3865_v58 = vadd.f32 %v3862_v35, %v1162_v29  ;;  %v1242_v53 = vsel %vm912_vm2, %v3868_v6, 0.0 }
 0x1eb   :  { %v1241_v3 = vsel %vm912_vm2, %v3865_v58, 0.0 }
 0x1ec   :  { %v815_v52 = vpop.permute.xlu1 %814  ;;  %v1243_v1 = vadd.f32 %v1242_v53, %v1241_v3 }
 0x1ed   :  { %v1013_v25 = vsel %vm997_vm8, %v996_v45, %v815_v52 }
 0x1f0   :  { %v879_v0 = vpop.permute.xlu1 %878 }
 0x1f1   :  { %v1030_v36 = vsel %vm1014_vm9, %v1013_v25, %v879_v0 }
 0x1f2   :  { %2832 = vmatmul.mubr.msk.f32.gmra.mxu0 %vm1043_vm10, %v1030_v36 }
 0x206   :  { %v2815_v26 = vpop.f32.mrf.mxu0 }
 0x207   :  { %v3882_v39 = vadd.f32 %v2815_v26, %v3862_v35 }
 0x208   :  { %v1172_v62 = vpop.f32.mrf.mxu0 }
 0x209   :  { %v3871_v7 = vadd.f32 %v3862_v35, %v1172_v62  ;;  %v1246_v19 = vsel %vm912_vm2, %v3882_v39, 0.0 }
 0x20b   :  { %v1244_v11 = vsel %vm912_vm2, %v3871_v7, 0.0 }
 0x20c   :  { %v1245_v18 = vadd.f32 %v1244_v11, %v1243_v1 }
 0x20e   :  { %v1247_v24 = vadd.f32 %v1246_v19, %v1245_v18 }
 0x226   :  { %v2818_v61 = vpop.f32.mrf.mxu0 }
 0x227   :  { %v3894_v9 = vadd.f32 %v2818_v61, %v3862_v35 }
 0x228   :  { %v1182_v30 = vpop.f32.mrf.mxu0 }
 0x229   :  { %v3885_v43 = vadd.f32 %v3862_v35, %v1182_v30  ;;  %v1250_v15 = vsel %vm912_vm2, %v3894_v9, 0.0 }
 0x22b   :  { %v1248_v21 = vsel %vm912_vm2, %v3885_v43, 0.0 }
 0x22c   :  { %v1249_v4 = vadd.f32 %v1248_v21, %v1247_v24 }
 0x22e   :  { %v1251_v31 = vadd.f32 %v1250_v15, %v1249_v4 }
 0x246   :  { %v2821_v14 = vpop.f32.mrf.mxu0 }
 0x247   :  { %v1198_v33 = vadd.f32 %v2821_v14, %v3862_v35 }
 0x248   :  { %v1192_v59 = vpop.f32.mrf.mxu0 }
 0x249   :  { %v3897_v22 = vadd.f32 %v3862_v35, %v1192_v59  ;;  %v1254_v23 = vsel %vm912_vm2, %v1198_v33, 0.0 }
 0x24b   :  { %v1252_v54 = vsel %vm912_vm2, %v3897_v22, 0.0 }
 0x24c   :  { %v1253_v17 = vadd.f32 %v1252_v54, %v1251_v31 }
 0x24e   :  { %v1255_v40 = vadd.f32 %v1254_v23, %v1253_v17 }
 0x266   :  { %v2824_v55 = vpop.f32.mrf.mxu0 }
 0x267   :  { %v1208_v44 = vadd.f32 %v2824_v55, %v3862_v35 }
 0x268   :  { %v1202_v38 = vpop.f32.mrf.mxu0 }
 0x269   :  { %v3908_v63 = vadd.f32 %v3862_v35, %v1202_v38  ;;  %v1258_v42 = vsel %vm912_vm2, %v1208_v44, 0.0 }
 0x26b   :  { %v1256_v41 = vsel %vm912_vm2, %v3908_v63, 0.0 }
 0x26c   :  { %v1257_v34 = vadd.f32 %v1256_v41, %v1255_v40 }
 0x26e   :  { %v1259_v48 = vadd.f32 %v1258_v42, %v1257_v34 }
 0x286   :  { %v2827_v32 = vpop.f32.mrf.mxu0 }
 0x287   :  { %v1218_v49 = vadd.f32 %v2827_v32, %v3862_v35 }
 0x288   :  { %v1212_v37 = vpop.f32.mrf.mxu0 }
 0x289   :  { %v1213_v46 = vadd.f32 %v3862_v35, %v1212_v37  ;;  %v1262_v56 = vsel %vm912_vm2, %v1218_v49, 0.0 }
 0x28b   :  { %v1260_v20 = vsel %vm912_vm2, %v1213_v46, 0.0 }
 0x28c   :  { %v1261_v52 = vadd.f32 %v1260_v20, %v1259_v48 }
 0x28e   :  { %v1263_v45 = vadd.f32 %v1262_v56, %v1261_v52 }
 0x29f   :  { %v2830_v13 = vpop.f32.mrf.mxu0 }
 0x2a0   :  { %v1228_v25 = vadd.f32 %v2830_v13, %v3862_v35 }
 0x2a1   :  { %v1222_v47 = vpop.f32.mrf.mxu0 }
 0x2a2   :  { %v1223_v50 = vadd.f32 %v3862_v35, %v1222_v47  ;;  %v1266_v29 = vsel %vm912_vm2, %v1228_v25, 0.0 }
 0x2a4   :  { %v1264_v60 = vsel %vm912_vm2, %v1223_v50, 0.0 }
 0x2a5   :  { %v1265_v0 = vadd.f32 %v1264_v60, %v1263_v45 }
 0x2a7   :  { %v1267_v61 = vadd.f32 %v1266_v29, %v1265_v0 }
 0x2b2   :  { %v2833_v36 = vpop.f32.mrf.mxu0 }
 0x2b3   :  { %v3926_v26 = vadd.f32 %v2833_v36, %v3862_v35 }
 0x2b4   :  { %v1232_v57 = vpop.f32.mrf.mxu0 }
 0x2b5   :  { %v1233_v62 = vadd.f32 %v3862_v35, %v1232_v57  ;;  %v1270_v30 = vsel %vm912_vm2, %v3926_v26, 0.0 }
 0x2b7   :  { %v1268_v5 = vsel %vm912_vm2, %v1233_v62, 0.0 }
 0x2b8   :  { %v1269_v3 = vadd.f32 %v1268_v5, %v1267_v61 }
 0x2ba   :  { %v1271_v51 = vadd.f32 %v1270_v30, %v1269_v3 }
 0x2bc   :  { %v1272_v53 = vrot.slane %v1271_v51, 4 }
 0x2be   :  { %v1273_v11 = vadd.f32 %v1272_v53, %v1271_v51 }
 0x2c0   :  { %v1274_v1 = vrot.slane %v1273_v11, 2 }
 0x2c2   :  { %v1275_v14 = vadd.f32 %v1274_v1, %v1273_v11 }
 0x2c4   :  { %v1276_v18 = vrot.slane %v1275_v14, 1 }
 0x2c6   :  { %v1277_v8 = vadd.f32 %v1276_v18, %v1275_v14 }
 0x2c8   :  { %v1279_v2 = vmul.f32 0.0078125, %v1277_v8 }
 0x2ca   :  { %v3933_v59 = vsub.f32 %v3865_v58, %v1279_v2  ;;  %v3936_v35 = vsub.f32 %v3868_v6, %v1279_v2  ;;  %v3939_v19 = vsub.f32 %v3871_v7, %v1279_v2  ;;  %v3942_v21 = vsub.f32 %v3882_v39, %v1279_v2 }
 0x2cb   :  { %v3949_v27 = vsub.f32 %v3885_v43, %v1279_v2  ;;  %v3954_v6 = vsub.f32 %v3894_v9, %v1279_v2  ;;  %v3961_v15 = vsub.f32 %v3897_v22, %v1279_v2  ;;  %v3966_v10 = vsub.f32 %v1198_v33, %v1279_v2 }
 0x2cc   :  { %v1296_v24 = vmul.f32 %v3933_v59, %v3933_v59  ;;  %v1297_v55 = vmul.f32 %v3936_v35, %v3936_v35  ;;  %v1298_v58 = vmul.f32 %v3939_v19, %v3939_v19  ;;  %v1299_v7 = vmul.f32 %v3942_v21, %v3942_v21 }
 0x2cd   :  { %v1300_v43 = vmul.f32 %v3949_v27, %v3949_v27  ;;  %v1301_v9 = vmul.f32 %v3954_v6, %v3954_v6  ;;  %v3972_v12 = vsub.f32 %v3908_v63, %v1279_v2  ;;  %v1302_v22 = vmul.f32 %v3961_v15, %v3961_v15 }
 0x2ce   :  { %v1312_v39 = vsel %vm912_vm2, %v1296_v24, 0.0  ;;  %v1313_v4 = vsel %vm912_vm2, %v1297_v55, 0.0  ;;  %v1315_v54 = vsel %vm912_vm2, %v1298_v58, 0.0  ;;  %v1317_v31 = vsel %vm912_vm2, %v1299_v7, 0.0 }
 0x2cf   :  { %v1314_v38 = vadd.f32 %v1313_v4, %v1312_v39  ;;  %v1319_v16 = vsel %vm912_vm2, %v1300_v43, 0.0  ;;  %v1289_v37 = vsub.f32 %v1208_v44, %v1279_v2  ;;  %v1303_v33 = vmul.f32 %v3966_v10, %v3966_v10 }
 0x2d0   :  { %v1321_v23 = vsel %vm912_vm2, %v1301_v9, 0.0  ;;  %v1290_v40 = vsub.f32 %v1213_v46, %v1279_v2  ;;  %v1304_v13 = vmul.f32 %v3972_v12, %v3972_v12  ;;  %v1323_v63 = vsel %vm912_vm2, %v1302_v22, 0.0 }
 0x2d1   :  { %v1316_v28 = vadd.f32 %v1315_v54, %v1314_v38  ;;  %v1291_v47 = vsub.f32 %v1218_v49, %v1279_v2  ;;  %v1305_v42 = vmul.f32 %v1289_v37, %v1289_v37  ;;  %v1325_v20 = vsel %vm912_vm2, %v1303_v33, 0.0 }
 0x2d2   :  { %v1292_v52 = vsub.f32 %v1223_v50, %v1279_v2  ;;  %v1306_v44 = vmul.f32 %v1290_v40, %v1290_v40  ;;  %v1327_v56 = vsel %vm912_vm2, %v1304_v13, 0.0  ;;  %v1293_v45 = vsub.f32 %v1228_v25, %v1279_v2 }
 0x2d3   :  { %v1318_v32 = vadd.f32 %v1317_v31, %v1316_v28  ;;  %v1307_v0 = vmul.f32 %v1291_v47, %v1291_v47  ;;  %v1329_v46 = vsel %vm912_vm2, %v1305_v42, 0.0  ;;  %v1294_v57 = vsub.f32 %v1233_v62, %v1279_v2 }
 0x2d4   :  { %v1308_v29 = vmul.f32 %v1292_v52, %v1292_v52  ;;  %v1331_v61 = vsel %vm912_vm2, %v1306_v44, 0.0  ;;  %v1295_v49 = vsub.f32 %v3926_v26, %v1279_v2  ;;  %v1309_v3 = vmul.f32 %v1293_v45, %v1293_v45 }
 0x2d5   :  { %v1320_v17 = vadd.f32 %v1319_v16, %v1318_v32  ;;  %v1333_v30 = vsel %vm912_vm2, %v1307_v0, 0.0  ;;  %v1310_v51 = vmul.f32 %v1294_v57, %v1294_v57 }
 0x2d6   :  { %v1335_v53 = vsel %vm912_vm2, %v1308_v29, 0.0  ;;  %v1311_v25 = vmul.f32 %v1295_v49, %v1295_v49  ;;  %v1337_v1 = vsel %vm912_vm2, %v1309_v3, 0.0 }
 0x2d7   :  { %v1322_v41 = vadd.f32 %v1321_v23, %v1320_v17  ;;  %v1339_v62 = vsel %vm912_vm2, %v1310_v51, 0.0 }
 0x2d8   :  { %v1341_v8 = vsel %vm912_vm2, %v1311_v25, 0.0 }
 0x2d9   :  { %v1324_v34 = vadd.f32 %v1323_v63, %v1322_v41 }
 0x2db   :  { %v1326_v48 = vadd.f32 %v1325_v20, %v1324_v34 }
 0x2dd   :  { %v1328_v60 = vadd.f32 %v1327_v56, %v1326_v48 }
 0x2df   :  { %v1330_v36 = vadd.f32 %v1329_v46, %v1328_v60 }
 0x2e1   :  { %v1332_v5 = vadd.f32 %v1331_v61, %v1330_v36 }
 0x2e3   :  { %v1334_v50 = vadd.f32 %v1333_v30, %v1332_v5 }
 0x2e5   :  { %v1336_v11 = vadd.f32 %v1335_v53, %v1334_v50 }
 0x2e7   :  { %v1338_v14 = vadd.f32 %v1337_v1, %v1336_v11 }
 0x2e9   :  { %v1340_v18 = vadd.f32 %v1339_v62, %v1338_v14 }
 0x2eb   :  { %v1342_v24 = vadd.f32 %v1341_v8, %v1340_v18 }
 0x2ed   :  { %v1343_v55 = vrot.slane %v1342_v24, 4 }
 0x2ef   :  { %v1344_v26 = vadd.f32 %v1343_v55, %v1342_v24 }
 0x2f1   :  { %v1345_v2 = vrot.slane %v1344_v26, 2 }
 0x2f3   :  { %v1346_v58 = vadd.f32 %v1345_v2, %v1344_v26 }
 0x2f5   :  { %v1347_v7 = vrot.slane %v1346_v58, 1 }
 0x2f7   :  { %v1348_v39 = vadd.f32 %v1347_v7, %v1346_v58 }
 0x2f9   :  { %v1349_v4 = vmul.f32 0.0078125, %v1348_v39 }
 0x2fb   :  { %v1350_v38 = vadd.f32 1e-05, %v1349_v4 }
 0x2fd   :  { %2908 = vrsqrt.f32 %v1350_v38 }
 0x30a   :  { %v2909_v43 = vpop.eup %2908 }
 0x30b   :  { %v3994_v54 = vmul.f32 %v2909_v43, %v3933_v59  ;;  %v3997_v28 = vmul.f32 %v2909_v43, %v3936_v35  ;;  %v1354_v9 = vmul.f32 %v2909_v43, %v3939_v19  ;;  %v1355_v31 = vmul.f32 %v2909_v43, %v3942_v21  ;;  %v2733_v59 = vld [vmem:[%s4688_s3] ss:$0 sm:$0xff]  ;;  %s2925_s3 = smov 40  }
 0x30c   :  { %v1356_v32 = vmul.f32 %v2909_v43, %v3949_v27  ;;  %v1357_v22 = vmul.f32 %v2909_v43, %v3954_v6  ;;  %v1358_v16 = vmul.f32 %v2909_v43, %v3961_v15  ;;  %v1359_v17 = vmul.f32 %v2909_v43, %v3966_v10  ;;  %v2734_v15 = vld [vmem:[%s4689_s4] ss:$0 sm:$0xff] }
 0x30d   :  { %v1360_v33 = vmul.f32 %v2909_v43, %v3972_v12  ;;  %v1361_v35 = vmul.f32 %v2909_v43, %v1289_v37  ;;  %v1362_v23 = vmul.f32 %v2909_v43, %v1290_v40  ;;  %v1363_v41 = vmul.f32 %v2909_v43, %v1291_v47 }
 0x30e   :  { %v1364_v19 = vmul.f32 %v2909_v43, %v1292_v52  ;;  %v1365_v13 = vmul.f32 %v2909_v43, %v1293_v45  ;;  %v1366_v21 = vmul.f32 %v2909_v43, %v1294_v57  ;;  %v1367_v63 = vmul.f32 %v2909_v43, %v1295_v49 }
 0x30f   :  { %v1377_v27 = vmul.f32 %v2733_v59, %v1354_v9  ;;  %v1378_v34 = vmul.f32 %v2733_v59, %v1355_v31  ;;  %v1379_v6 = vmul.f32 %v2733_v59, %v1356_v32  ;;  %v1380_v42 = vmul.f32 %v2733_v59, %v1357_v22 }
 0x310   :  { %v1381_v10 = vmul.f32 %v2733_v59, %v1358_v16  ;;  %v1382_v20 = vmul.f32 %v2733_v59, %v1359_v17  ;;  %v1383_v48 = vmul.f32 %v2733_v59, %v1360_v33  ;;  %v1384_v44 = vmul.f32 %v2733_v59, %v1361_v35 }
 0x311   :  { %v1385_v12 = vmul.f32 %v2733_v59, %v1362_v23  ;;  %v1386_v37 = vmul.f32 %v2733_v59, %v1363_v41  ;;  %v1387_v40 = vmul.f32 %v2733_v59, %v1364_v19  ;;  %v1388_v47 = vmul.f32 %v2733_v59, %v1365_v13  ;;  %v2305_v19 = vld [vmem:[%s4690_s5 + $0x40] sm:$0xff]  ;;  %v2304_v13 = vld [vmem:[%s4690_s5 + $0x38] sm:$0xff] }
 0x312   :  { %v1389_v52 = vmul.f32 %v2733_v59, %v1366_v21  ;;  %v1390_v56 = vmul.f32 %v2733_v59, %v1367_v63  ;;  %v1402_v60 = vadd.f32 %v2734_v15, %v1379_v6  ;;  %v1403_v45 = vadd.f32 %v2734_v15, %v1380_v42  ;;  %2834 = vmatprep.subr.mxu0 %v2305_v19  ;;  %v2303_v21 = vld [vmem:[%s4690_s5 + $0x30] sm:$0xff]  ;;  %v2300_v42 = vld [vmem:[%s4690_s5 + $0x18] sm:$0xff] }
 0x313   :  { %v1404_v0 = vadd.f32 %v2734_v15, %v1381_v10  ;;  %v1405_v46 = vadd.f32 %v2734_v15, %v1382_v20  ;;  %v1406_v36 = vadd.f32 %v2734_v15, %v1383_v48  ;;  %v1407_v57 = vadd.f32 %v2734_v15, %v1384_v44  ;;  %2876 = vmatprep.subr.mxu1 %v2305_v19  ;;  %v2298_v10 = vld [vmem:[%s4690_s5 + $0x8] sm:$0xff]  ;;  %v2297_v48 = vld [vmem:[%s4690_s5] sm:$0xff] }
 0x314   :  { %v1408_v29 = vadd.f32 %v2734_v15, %v1385_v12  ;;  %v1409_v61 = vadd.f32 %v2734_v15, %v1386_v37  ;;  %v1410_v5 = vadd.f32 %v2734_v15, %v1387_v40  ;;  %v1411_v49 = vadd.f32 %v2734_v15, %v1388_v47  ;;  %2835 = vmatpush3.msra.mxu0 %v2305_v19 }
 0x315   :  { %v1412_v3 = vadd.f32 %v2734_v15, %v1389_v52  ;;  %v1413_v30 = vadd.f32 %v2734_v15, %v1390_v56  ;;  %v1418_v50 = vmax.f32 %v1402_v60, 0.0  ;;  %v1419_v51 = vmax.f32 %v1403_v45, 0.0  ;;  %2885 = vmatpush3.msra.mxu1 %v2305_v19  ;;  %2836 = vmatprep.subr.mxu0 %v2304_v13  ;;  %v4133_v56 = vpop.permute.xlu0 %1669  ;;  %v4141_v45 = vpop.permute.xlu1 %1749 }
 0x316   :  { %v1420_v53 = vmax.f32 %v1404_v0, 0.0  ;;  %v1421_v11 = vmax.f32 %v1405_v46, 0.0  ;;  %v1422_v25 = vmax.f32 %v1406_v36, 0.0  ;;  %v1423_v1 = vmax.f32 %v1407_v57, 0.0  ;;  %2877 = vmatprep.subr.mxu1 %v2304_v13  ;;  %2837 = vmatpush3.msra.mxu0 %v2304_v13 }
 0x317   :  { %v1424_v14 = vmax.f32 %v1408_v29, 0.0  ;;  %v1425_v62 = vmax.f32 %v1409_v61, 0.0  ;;  %v1426_v18 = vmax.f32 %v1410_v5, 0.0  ;;  %v1427_v8 = vmax.f32 %v1411_v49, 0.0  ;;  %1496 = vst.msk [vmem:[#allocation3 + $0x80] sm:$0xff] %vm912_vm2, %v1418_v50  ;;  %1497 = vst.msk [vmem:[#allocation3 + $0x98] sm:$0xff] %vm912_vm2, %v1419_v51  ;;  %2886 = vmatpush3.msra.mxu1 %v2304_v13  ;;  %2838 = vmatprep.subr.mxu0 %v2303_v21 }
 0x318   :  { %v1428_v24 = vmax.f32 %v1412_v3, 0.0  ;;  %v1429_v55 = vmax.f32 %v1413_v30, 0.0  ;;  %1501 = vst.msk [vmem:[#allocation3 + $0x128] sm:$0xff] %vm912_vm2, %v1423_v1  ;;  %1498 = vst.msk [vmem:[#allocation3 + $0xb0] sm:$0xff] %vm912_vm2, %v1420_v53  ;;  %v1375_v26 = vmul.f32 %v2733_v59, %v3994_v54  ;;  %v1400_v2 = vadd.f32 %v2734_v15, %v1377_v27  ;;  %v2302_v27 = vld [vmem:[%s4690_s5 + $0x28] sm:$0xff]  ;;  %2878 = vmatprep.subr.mxu1 %v2303_v21 }
 0x319   :  { %1499 = vst.msk [vmem:[#allocation3 + $0xc8] sm:$0xff] %vm912_vm2, %v1421_v11  ;;  %1500 = vst.msk [vmem:[#allocation3 + $0x110] sm:$0xff] %vm912_vm2, %v1422_v25  ;;  %v1376_v58 = vmul.f32 %v2733_v59, %v3997_v28  ;;  %v1401_v7 = vadd.f32 %v2734_v15, %v1378_v34  ;;  %2839 = vmatpush3.msra.mxu0 %v2303_v21  ;;  %2887 = vmatpush3.msra.mxu1 %v2303_v21  ;;  %v2301_v34 = vld [vmem:[%s4690_s5 + $0x20] sm:$0xff]  ;;  %v4146_v46 = vpop.permute.xlu0 %1733  ;;  %v4150_v36 = vpop.permute.xlu1 %2131 }
 0x31a   :  { %1502 = vst.msk [vmem:[#allocation3 + $0x140] sm:$0xff] %vm912_vm2, %v1424_v14  ;;  %1503 = vst.msk [vmem:[#allocation3 + $0x158] sm:$0xff] %vm912_vm2, %v1425_v62  ;;  %v1398_v39 = vadd.f32 %v2734_v15, %v1375_v26  ;;  %v1416_v4 = vmax.f32 %v1400_v2, 0.0  ;;  %2840 = vmatprep.subr.mxu0 %v2302_v27  ;;  %2879 = vmatprep.subr.mxu1 %v2302_v27  ;;  %v1508_v13 = vld [vmem:[#allocation3 + $0x7] sm:$0xff] }
 0x31b   :  { %1504 = vst.msk [vmem:[#allocation3 + $0x170] sm:$0xff] %vm912_vm2, %v1426_v18  ;;  %1505 = vst.msk [vmem:[#allocation3 + $0x188] sm:$0xff] %vm912_vm2, %v1427_v8  ;;  %v1399_v38 = vadd.f32 %v2734_v15, %v1376_v58  ;;  %v1417_v43 = vmax.f32 %v1401_v7, 0.0  ;;  %2841 = vmatpush3.msra.mxu0 %v2302_v27  ;;  %2888 = vmatpush3.msra.mxu1 %v2302_v27  ;;  %v2299_v15 = vld [vmem:[%s4690_s5 + $0x10] sm:$0xff] }
 0x31c   :  { %1506 = vst.msk [vmem:[#allocation3 + $0x1a0] sm:$0xff] %vm912_vm2, %v1428_v24  ;;  %1507 = vst.msk [vmem:[#allocation3 + $0x1b8] sm:$0xff] %vm912_vm2, %v1429_v55  ;;  %v1414_v54 = vmax.f32 %v1398_v39, 0.0  ;;  %2842 = vmatprep.subr.mxu0 %v2301_v34  ;;  %2880 = vmatprep.subr.mxu1 %v2301_v34 }
 0x31d   :  { %1494 = vst.msk [vmem:[#allocation3 + $0x50] sm:$0xff] %vm912_vm2, %v1416_v4  ;;  %v1415_v9 = vmax.f32 %v1399_v38, 0.0  ;;  %1495 = vst.msk [vmem:[#allocation3 + $0x68] sm:$0xff] %vm912_vm2, %v1417_v43  ;;  %2843 = vmatpush3.msra.mxu0 %v2301_v34  ;;  %2889 = vmatpush3.msra.mxu1 %v2301_v34  ;;  %v4152_v57 = vpop.permute.xlu0 %1685  ;;  %v4156_v29 = vpop.permute.xlu1 %2019 }
 0x31e   :  { %1492 = vst.msk [vmem:[#allocation3 + $0x20] sm:$0xff] %vm912_vm2, %v1414_v54  ;;  %v1529_v6 = vld [vmem:[#allocation3 + $0x80] sm:$0xff]  ;;  %2844 = vmatprep.subr.mxu0 %v2300_v42  ;;  %2881 = vmatprep.subr.mxu1 %v2300_v42  ;;  %v4114_v12 = vld [vmem:[#allocation3 + $0x97] sm:$0xff] }
 0x31f   :  { %1493 = vst.msk [vmem:[#allocation3 + $0x38] sm:$0xff] %vm912_vm2, %v1415_v9  ;;  %2845 = vmatpush3.msra.mxu0 %v2300_v42  ;;  %2890 = vmatpush3.msra.mxu1 %v2300_v42  ;;  %v4103_v20 = vld [vmem:[#allocation3 + $0x7f] sm:$0xff]  ;;  %v1531_v40 = vld [vmem:[#allocation3 + $0xb0] sm:$0xff]  ;;  %v4174_v25 = vld [vmem:[#allocation3 + $0x127] sm:$0xff] }
 0x320   :  { %2846 = vmatprep.subr.mxu0 %v2299_v15  ;;  %2882 = vmatprep.subr.mxu1 %v2299_v15  ;;  %v1545_v44 = vld [vmem:[#allocation3 + $0x81] sm:$0xff]  ;;  %v1530_v37 = vld [vmem:[#allocation3 + $0x98] sm:$0xff]  ;;  %v4135_v60 = vld [vmem:[#allocation3 + $0xaf] sm:$0xff] }
 0x321   :  { %2847 = vmatpush3.msra.mxu0 %v2299_v15  ;;  %2891 = vmatpush3.msra.mxu1 %v2299_v15  ;;  %v1593_v47 = vld [vmem:[#allocation3 + $0x99] sm:$0xff]  ;;  %v1547_v52 = vld [vmem:[#allocation3 + $0xb1] sm:$0xff]  ;;  %v1563_v0 = vld [vmem:[#allocation3 + $0xc7] sm:$0xff]  ;;  %v4158_v61 = vpop.permute.xlu0 %2003  ;;  %v4164_v30 = vpop.permute.xlu1 %2083 }
 0x322   :  { %2848 = vmatprep.subr.mxu0 %v2298_v10  ;;  %2883 = vmatprep.subr.mxu1 %v2298_v10  ;;  %v1533_v5 = vld [vmem:[#allocation3 + $0x110] sm:$0xff]  ;;  %v1579_v3 = vld [vmem:[#allocation3 + $0xc8] sm:$0xff]  ;;  %v1535_v2 = vld [vmem:[#allocation3 + $0x140] sm:$0xff] }
 0x323   :  { %2849 = vmatpush3.msra.mxu0 %v2298_v10  ;;  %2892 = vmatpush3.msra.mxu1 %v2298_v10  ;;  %v1595_v49 = vld [vmem:[#allocation3 + $0xc9] sm:$0xff]  ;;  %v1549_v51 = vld [vmem:[#allocation3 + $0x111] sm:$0xff]  ;;  %v1551_v43 = vld [vmem:[#allocation3 + $0x141] sm:$0xff] }
 0x324   :  { %v4032_v32 = vld [vmem:[#allocation3 + $0x50] sm:$0xff]  ;;  %v4052_v35 = vld [vmem:[#allocation3 + $0x67] sm:$0xff]  ;;  %2850 = vmatprep.subr.mxu0 %v2297_v48  ;;  %2884 = vmatprep.subr.mxu1 %v2297_v48  ;;  %v4232_v21 = vld [vmem:[#allocation3 + $0x158] sm:$0xff] }
 0x325   :  { %v1541_v28 = vld [vmem:[#allocation3 + $0x21] sm:$0xff]  ;;  %v4045_v59 = vld [vmem:[#allocation3 + $0x51] sm:$0xff]  ;;  %v1544_v63 = vld [vmem:[#allocation3 + $0x69] sm:$0xff]  ;;  %2851 = vmatpush3.msra.mxu0 %v2297_v48  ;;  %2893 = vmatpush3.msra.mxu1 %v2297_v48  ;;  %v4166_v50 = vpop.permute.xlu0 %2067 }
 0x326   :  { %v1525_v31 = vld [vmem:[#allocation3 + $0x20] sm:$0xff]  ;;  %1735 = vrot.lane.b32.xlu0 %v1541_v28, %s2917_s14  ;;  %v1526_v22 = vld [vmem:[#allocation3 + $0x38] sm:$0xff]  ;;  %v4054_v23 = vld [vmem:[#allocation3 + $0x4f] sm:$0xff] }
 0x327   :  { %1671 = vrot.lane.b32.xlu1 %v1525_v31, %s2915_s0  ;;  %v4037_v16 = vld [vmem:[#allocation3 + $0x37] sm:$0xff]  ;;  %v4039_v17 = vld [vmem:[#allocation3 + $0x1f] sm:$0xff]  ;;  %v1528_v41 = vld [vmem:[#allocation3 + $0x68] sm:$0xff] }
 0x328   :  { %v1542_v33 = vld [vmem:[#allocation3 + $0x39] sm:$0xff]  ;;  %v1534_v62 = vld [vmem:[#allocation3 + $0x128] sm:$0xff] }
 0x329   :  { %v4183_v18 = vld [vmem:[#allocation3 + $0x10f] sm:$0xff] }
 0x32a   :  { %1675 = vrot.lane.b32.xlu0 %v4032_v32, %s2915_s0  ;;  %v1597_v39 = vld [vmem:[#allocation3 + $0x129] sm:$0xff] }
 0x32b   :  { %1673 = vrot.lane.b32.xlu1 %v1526_v22, %s2915_s0 }
 0x32e   :  { %1799 = vrot.lane.b32.xlu0 %v4037_v16, %s2919_s16 }
 0x32f   :  { %1797 = vrot.lane.b32.xlu1 %v4039_v17, %s2919_s16 }
 0x332   :  { %1739 = vrot.lane.b32.xlu0 %v4045_v59, %s2917_s14 }
 0x333   :  { %1737 = vrot.lane.b32.xlu1 %v1542_v33, %s2917_s14 }
 0x336   :  { %1863 = vrot.lane.b32.xlu0 %v1526_v22, %s2921_s29 }
 0x337   :  { %1861 = vrot.lane.b32.xlu1 %v1525_v31, %s2921_s29 }
 0x33a   :  { %1803 = vrot.lane.b32.xlu0 %v4052_v35, %s2919_s16 }
 0x33b   :  { %1801 = vrot.lane.b32.xlu1 %v4054_v23, %s2919_s16 }
 0x33e   :  { %1927 = vrot.lane.b32.xlu0 %v1542_v33, %s2925_s3 }
 0x33f   :  { %1925 = vrot.lane.b32.xlu1 %v1541_v28, %s2925_s3  ;;  %v4210_v28 = vld [vmem:[#allocation3 + $0x13f] sm:$0xff] }
 0x342   :  { %1677 = vrot.lane.b32.xlu0 %v1528_v41, %s2915_s0 }
 0x343   :  { %1865 = vrot.lane.b32.xlu1 %v4032_v32, %s2921_s29 }
 0x346   :  { %1929 = vrot.lane.b32.xlu0 %v4045_v59, %s2925_s3 }
 0x347   :  { %1989 = vrot.lane.b32.xlu1 %v4037_v16, %s2923_s10 }
 0x34a   :  { %2053 = vrot.lane.b32.xlu0 %v1526_v22, %s2924_s11  ;;  %v4219_v22 = vld [vmem:[#allocation3 + $0x157] sm:$0xff] }
 0x34b   :  { %1867 = vrot.lane.b32.xlu1 %v1528_v41, %s2921_s29 }
 0x34e   :  { %1741 = vrot.lane.b32.xlu0 %v1544_v63, %s2917_s14 }
 0x34f   :  { %1991 = vrot.lane.b32.xlu1 %v4054_v23, %s2923_s10 }
 0x352   :  { %1993 = vrot.lane.b32.xlu0 %v4052_v35, %s2923_s10 }
 0x353   :  { %1679 = vrot.lane.b32.xlu1 %v1529_v6, %s2915_s0 }
 0x356   :  { %2117 = vrot.lane.b32.xlu0 %v1542_v33, %s2922_s2 }
 0x357   :  { %1931 = vrot.lane.b32.xlu1 %v1544_v63, %s2925_s3 }
 0x35a   :  { %1805 = vrot.lane.b32.xlu0 %v4103_v20, %s2919_s16 }
 0x35b   :  { %2055 = vrot.lane.b32.xlu1 %v4032_v32, %s2924_s11 }
 0x35e   :  { %2057 = vrot.lane.b32.xlu0 %v1528_v41, %s2924_s11 }
 0x35f   :  { %1743 = vrot.lane.b32.xlu1 %v1545_v44, %s2917_s14 }
 0x362   :  { %1807 = vrot.lane.b32.xlu0 %v4114_v12, %s2919_s16 }
 0x363   :  { %1995 = vrot.lane.b32.xlu1 %v4103_v20, %s2923_s10 }
 0x366   :  { %2059 = vrot.lane.b32.xlu0 %v1529_v6, %s2924_s11 }
 0x367   :  { %2119 = vrot.lane.b32.xlu1 %v4045_v59, %s2922_s2 }
 0x36a   :  { %1681 = vrot.lane.b32.xlu0 %v1530_v37, %s2915_s0 }
 0x36b   :  { %1869 = vrot.lane.b32.xlu1 %v1529_v6, %s2921_s29 }
 0x36e   :  { %1933 = vrot.lane.b32.xlu0 %v1545_v44, %s2925_s3 }
 0x36f   :  { %2121 = vrot.lane.b32.xlu1 %v1544_v63, %s2922_s2  ;;  %v2165_v63 = vsel %vm912_vm2, %v1508_v13, %v4133_v56 }
 0x370   :  { %v2181_v6 = vsel %vm946_vm5, %v2165_v63, %v4146_v46  ;;  %v1599_v46 = vld [vmem:[#allocation3 + $0x159] sm:$0xff] }
 0x372   :  { %1683 = vrot.lane.b32.xlu0 %v1531_v40, %s2915_s0 }
 0x373   :  { %1871 = vrot.lane.b32.xlu1 %v1530_v37, %s2921_s29 }
 0x376   :  { %1935 = vrot.lane.b32.xlu0 %v1593_v47, %s2925_s3 }
 0x377   :  { %2123 = vrot.lane.b32.xlu1 %v1545_v44, %s2922_s2  ;;  %v1537_v44 = vld [vmem:[#allocation3 + $0x170] sm:$0xff] }
 0x37a   :  { %1747 = vrot.lane.b32.xlu0 %v1547_v52, %s2917_s14 }
 0x37b   :  { %1745 = vrot.lane.b32.xlu1 %v1593_v47, %s2917_s14 }
 0x37e   :  { %1999 = vrot.lane.b32.xlu0 %v4135_v60, %s2923_s10 }
 0x37f   :  { %1997 = vrot.lane.b32.xlu1 %v4114_v12, %s2923_s10 }
 0x382   :  { %1811 = vrot.lane.b32.xlu0 %v1563_v0, %s2919_s16 }
 0x383   :  { %1809 = vrot.lane.b32.xlu1 %v4135_v60, %s2919_s16 }
 0x386   :  { %2063 = vrot.lane.b32.xlu0 %v1531_v40, %s2924_s11 }
 0x387   :  { %2061 = vrot.lane.b32.xlu1 %v1530_v37, %s2924_s11 }
 0x38a   :  { %1937 = vrot.lane.b32.xlu0 %v1547_v52, %s2925_s3 }
 0x38b   :  { %1873 = vrot.lane.b32.xlu1 %v1531_v40, %s2921_s29 }
 0x38e   :  { %1687 = vrot.lane.b32.xlu0 %v1533_v5, %s2915_s0 }
 0x38f   :  { %2125 = vrot.lane.b32.xlu1 %v1593_v47, %s2922_s2 }
 0x392   :  { %1939 = vrot.lane.b32.xlu0 %v1595_v49, %s2925_s3 }
 0x393   :  { %1875 = vrot.lane.b32.xlu1 %v1579_v3, %s2921_s29 }
 0x396   :  { %1751 = vrot.lane.b32.xlu0 %v1549_v51, %s2917_s14 }
 0x397   :  { %2127 = vrot.lane.b32.xlu1 %v1547_v52, %s2922_s2 }
 0x398   :  { %v4172_v11 = vpop.permute.xlu0 %1735 }
 0x399   :  { %v4170_v53 = vpop.permute.xlu1 %1671 }
 0x39a   :  { %1815 = vrot.lane.b32.xlu0 %v4174_v25, %s2919_s16 }
 0x39b   :  { %2001 = vrot.lane.b32.xlu1 %v1563_v0, %s2923_s10 }
 0x39c   :  { %v4181_v14 = vpop.permute.xlu0 %1675 }
 0x39d   :  { %v4179_v1 = vpop.permute.xlu1 %1673 }
 0x39e   :  { %1689 = vrot.lane.b32.xlu0 %v1534_v62, %s2915_s0 }
 0x39f   :  { %1813 = vrot.lane.b32.xlu1 %v4183_v18, %s2919_s16 }
 0x3a0   :  { %v4188_v24 = vpop.permute.xlu0 %1799 }
 0x3a1   :  { %v1798_v8 = vpop.permute.xlu1 %1797 }
 0x3a2   :  { %1941 = vrot.lane.b32.xlu0 %v1549_v51, %s2925_s3  ;;  %v2197_v42 = vsel %vm980_vm7, %v2181_v6, %v1798_v8  ;;  %v2166_v51 = vsel %vm912_vm2, %v4039_v17, %v4170_v53  ;;  %v4284_v53 = vld [vmem:[#allocation3 + $0x187] sm:$0xff] }
 0x3a3   :  { %2065 = vrot.lane.b32.xlu1 %v1579_v3, %s2924_s11  ;;  %v4261_v3 = vld [vmem:[#allocation3 + $0x171] sm:$0xff] }
 0x3a4   :  { %v4194_v26 = vpop.permute.xlu0 %1739 }
 0x3a5   :  { %v4192_v55 = vpop.permute.xlu1 %1737 }
 0x3a6   :  { %1691 = vrot.lane.b32.xlu0 %v1535_v2, %s2915_s0 }
 0x3a7   :  { %1877 = vrot.lane.b32.xlu1 %v1533_v5, %s2921_s29 }
 0x3a8   :  { %v4198_v7 = vpop.permute.xlu0 %1863 }
 0x3a9   :  { %v1862_v58 = vpop.permute.xlu1 %1861 }
 0x3aa   :  { %1943 = vrot.lane.b32.xlu0 %v1597_v39, %s2925_s3  ;;  %v2213_v48 = vsel %vm1014_vm9, %v2197_v42, %v1862_v58  ;;  %v2182_v58 = vsel %vm946_vm5, %v2166_v51, %v4172_v11 }
 0x3ab   :  { %2129 = vrot.lane.b32.xlu1 %v1595_v49, %s2922_s2 }
 0x3ac   :  { %v4204_v38 = vpop.permute.xlu0 %1803 }
 0x3ad   :  { %v4202_v4 = vpop.permute.xlu1 %1801 }
 0x3ae   :  { %1755 = vrot.lane.b32.xlu0 %v1551_v43, %s2917_s14 }
 0x3af   :  { %1879 = vrot.lane.b32.xlu1 %v1534_v62, %s2921_s29 }
 0x3b0   :  { %v4208_v9 = vpop.permute.xlu0 %1927 }
 0x3b1   :  { %v1926_v54 = vpop.permute.xlu1 %1925 }
 0x3b2   :  { %2007 = vrot.lane.b32.xlu0 %v4210_v28, %s2923_s10  ;;  %v2230_v37 = vsel %vm2229_vm12, %v2213_v48, %v1926_v54 }
 0x3b3   :  { %1753 = vrot.lane.b32.xlu1 %v1597_v39, %s2917_s14 }
 0x3b4   :  { %v4217_v32 = vpop.permute.xlu0 %1677 }
 0x3b5   :  { %v4215_v31 = vpop.permute.xlu1 %1865 }
 0x3b6   :  { %1819 = vrot.lane.b32.xlu0 %v4219_v22, %s2919_s16 }
 0x3b7   :  { %2005 = vrot.lane.b32.xlu1 %v4174_v25, %s2923_s10 }
 0x3b8   :  { %v4225_v33 = vpop.permute.xlu0 %1929 }
 0x3b9   :  { %v1990_v59 = vpop.permute.xlu1 %1989 }
 0x3ba   :  { %2071 = vrot.lane.b32.xlu0 %v1535_v2, %s2924_s11  ;;  %v2247_v40 = vsel %vm2246_vm13, %v2230_v37, %v1990_v59 }
 0x3bb   :  { %1817 = vrot.lane.b32.xlu1 %v4210_v28, %s2919_s16 }
 0x3bc   :  { %v2054_v19 = vpop.permute.xlu0 %2053 }
 0x3bd   :  { %v4230_v41 = vpop.permute.xlu1 %1867  ;;  %v2264_v47 = vsel %vm2263_vm14, %v2247_v40, %v2054_v19 }
 0x3be   :  { %1693 = vrot.lane.b32.xlu0 %v4232_v21, %s2915_s0 }
 0x3bf   :  { %2069 = vrot.lane.b32.xlu1 %v1534_v62, %s2924_s11 }
 0x3c0   :  { %v4239_v34 = vpop.permute.xlu0 %1741 }
 0x3c1   :  { %v1992_v27 = vpop.permute.xlu1 %1991 }
 0x3c2   :  { %1945 = vrot.lane.b32.xlu0 %v1551_v43, %s2925_s3 }
 0x3c3   :  { %1881 = vrot.lane.b32.xlu1 %v1535_v2, %s2921_s29  ;;  %v4271_v2 = vld [vmem:[#allocation3 + $0x16f] sm:$0xff] }
 0x3c4   :  { %v1994_v10 = vpop.permute.xlu0 %1993 }
 0x3c5   :  { %v4246_v15 = vpop.permute.xlu1 %1679 }
 0x3c6   :  { %1695 = vrot.lane.b32.xlu0 %v1537_v44, %s2915_s0 }
 0x3c7   :  { %2133 = vrot.lane.b32.xlu1 %v1597_v39, %s2922_s2  ;;  %v2198_v39 = vsel %vm980_vm7, %v2182_v58, %v4188_v24 }
 0x3c8   :  { %v2118_v56 = vpop.permute.xlu0 %2117  ;;  %v2214_v17 = vsel %vm1014_vm9, %v2198_v39, %v4198_v7  ;;  %v2167_v7 = vsel %vm912_vm2, %v4037_v16, %v4179_v1  ;;  %v1538_v16 = vld [vmem:[#allocation3 + $0x188] sm:$0xff] }
 0x3c9   :  { %v1932_v52 = vpop.permute.xlu1 %1931  ;;  %v2281_v0 = vsel %vm2280_vm15, %v2264_v47, %v2118_v56  ;;  %v2231_v59 = vsel %vm2229_vm12, %v2214_v17, %v4208_v9  ;;  %v2183_v9 = vsel %vm946_vm5, %v2167_v7, %v4192_v55 }
 0x3ca   :  { %1947 = vrot.lane.b32.xlu0 %v1599_v46, %s2925_s3  ;;  %2852 = vmatprep.mubr.msk.f32.mxu0 %vm2313_vm0, %v2281_v0  ;;  %v2248_v11 = vsel %vm2246_vm13, %v2231_v59, %v1992_v27  ;;  %v2199_v27 = vsel %vm980_vm7, %v2183_v9, %v4202_v4 }
 0x3cb   :  { %1883 = vrot.lane.b32.xlu1 %v4232_v21, %s2921_s29  ;;  %v2215_v48 = vsel %vm1014_vm9, %v2199_v27, %v4215_v31  ;;  %v2168_v31 = vsel %vm912_vm2, %v4054_v23, %v4181_v14  ;;  %v1539_v23 = vld [vmem:[#allocation3 + $0x1a0] sm:$0xff] }
 0x3cc   :  { %v4259_v49 = vpop.permute.xlu0 %1805  ;;  %v2232_v1 = vsel %vm2229_vm12, %v2215_v48, %v4225_v33  ;;  %v2184_v33 = vsel %vm946_vm5, %v2168_v31, %v4194_v26  ;;  %v1587_v48 = vld [vmem:[#allocation3 + $0x1b8] sm:$0xff] }
 0x3cd   :  { %v2056_v5 = vpop.permute.xlu1 %2055  ;;  %v2249_v55 = vsel %vm2246_vm13, %v2232_v1, %v1994_v10 }
 0x3ce   :  { %1759 = vrot.lane.b32.xlu0 %v4261_v3, %s2917_s14  ;;  %v2265_v24 = vsel %vm2263_vm14, %v2248_v11, %v2056_v5  ;;  %v1571_v11 = vld [vmem:[#allocation3 + $0x1b7] sm:$0xff] }
 0x3cf   :  { %2135 = vrot.lane.b32.xlu1 %v1551_v43, %s2922_s2 }
 0x3d0   :  { %v2058_v8 = vpop.permute.xlu0 %2057 }
 0x3d1   :  { %v4269_v62 = vpop.permute.xlu1 %1743  ;;  %v2266_v37 = vsel %vm2263_vm14, %v2249_v55, %v2058_v8  ;;  %v1601_v8 = vld [vmem:[#allocation3 + $0x189] sm:$0xff] }
 0x3d2   :  { %2011 = vrot.lane.b32.xlu0 %v4271_v2, %s2923_s10 }
 0x3d3   :  { %1757 = vrot.lane.b32.xlu1 %v1599_v46, %s2917_s14 }
 0x3d4   :  { %v4280_v54 = vpop.permute.xlu0 %1807 }
 0x3d5   :  { %v1996_v43 = vpop.permute.xlu1 %1995 }
 0x3d6   :  { %1823 = vrot.lane.b32.xlu0 %v4284_v53, %s2919_s16 }
 0x3d7   :  { %2009 = vrot.lane.b32.xlu1 %v4219_v22, %s2923_s10 }
 0x3d8   :  { %v2060_v13 = vpop.permute.xlu0 %2059 }
 0x3d9   :  { %v2120_v19 = vpop.permute.xlu1 %2119 }
 0x3da   :  { %v2282_v63 = vsel %vm2280_vm15, %v2265_v24, %v2120_v19  ;;  %2075 = vrot.lane.b32.xlu0 %v1537_v44, %s2924_s11  ;;  %v2169_v19 = vsel %vm912_vm2, %v4052_v35, %v4217_v32 }
 0x3db   :  { %1821 = vrot.lane.b32.xlu1 %v4271_v2, %s2919_s16  ;;  %2853 = vmatmul.mubr.msk.f32.vlgmr.msra.gmra.mxu0 %vm2313_vm0, %v2282_v63 }
 0x3dc   :  { %v4306_v42 = vpop.permute.xlu0 %1681 }
 0x3dd   :  { %v1870_v6 = vpop.permute.xlu1 %1869 }
 0x3de   :  { %1697 = vrot.lane.b32.xlu0 %v1538_v16, %s2915_s0 }
 0x3df   :  { %2073 = vrot.lane.b32.xlu1 %v4232_v21, %s2924_s11  ;;  %v2200_v21 = vsel %vm980_vm7, %v2184_v33, %v4204_v38 }
 0x3e0   :  { %v1934_v40 = vpop.permute.xlu0 %1933  ;;  %v2216_v0 = vsel %vm1014_vm9, %v2200_v21, %v4230_v41 }
 0x3e1   :  { %v2122_v4 = vpop.permute.xlu1 %2121  ;;  %v2233_v14 = vsel %vm2229_vm12, %v2216_v0, %v1932_v52  ;;  %v1603_v0 = vld [vmem:[#allocation3 + $0x1b9] sm:$0xff] }
 0x3e2   :  { %v2283_v47 = vsel %vm2280_vm15, %v2266_v37, %v2122_v4  ;;  %1949 = vrot.lane.b32.xlu0 %v4261_v3, %s2925_s3  ;;  %v2250_v26 = vsel %vm2246_vm13, %v2233_v14, %v1996_v43  ;;  %v4347_v43 = vld [vmem:[#allocation3 + $0x19f] sm:$0xff]  ;;  %v1652_v14 = vld [vmem:[#allocation3 + $0x1d1] sm:$0xff] }
 0x3e3   :  { %1885 = vrot.lane.b32.xlu1 %v1537_v44, %s2921_s29  ;;  %2855 = vmatprep.mubr.msk.f32.mxu1 %vm2313_vm0, %v2283_v47  ;;  %v2267_v44 = vsel %vm2263_vm14, %v2250_v26, %v2060_v13  ;;  %v2185_v13 = vsel %vm946_vm5, %v2169_v19, %v4239_v34 }
 0x3e4   :  { %v4329_v56 = vpop.permute.xlu0 %1683  ;;  %v2201_v63 = vsel %vm980_vm7, %v2185_v13, %v4259_v49 }
 0x3e5   :  { %v1872_v10 = vpop.permute.xlu1 %1871  ;;  %v2217_v27 = vsel %vm1014_vm9, %v2201_v63, %v1870_v6  ;;  %v2170_v6 = vsel %vm912_vm2, %v4103_v20, %v4246_v15 }
 0x3e6   :  { %1699 = vrot.lane.b32.xlu0 %v1539_v23, %s2915_s0  ;;  %v2234_v1 = vsel %vm2229_vm12, %v2217_v27, %v1934_v40 }
 0x3e7   :  { %2137 = vrot.lane.b32.xlu1 %v1599_v46, %s2922_s2  ;;  %v1555_v46 = vld [vmem:[#allocation3 + $0x1a1] sm:$0xff] }
 0x3e8   :  { %v1936_v51 = vpop.permute.xlu0 %1935 }
 0x3e9   :  { %v2124_v5 = vpop.permute.xlu1 %2123 }
 0x3ea   :  { %v2284_v38 = vsel %vm2280_vm15, %v2267_v44, %v2124_v5  ;;  %1951 = vrot.lane.b32.xlu0 %v1601_v8, %s2925_s3 }
 0x3eb   :  { %1887 = vrot.lane.b32.xlu1 %v1538_v16, %s2921_s29  ;;  %2856 = vmatmul.mubr.msk.f32.vlgmr.msra.gmra.mxu1 %vm2313_vm0, %v2284_v38 }
 0x3ec   :  { %v1748_v52 = vpop.permute.xlu0 %1747 }
 0x3ed   :  { %v4342_v41 = vpop.permute.xlu1 %1745 }
 0x3ee   :  { %1763 = vrot.lane.b32.xlu0 %v1555_v46, %s2917_s14 }
 0x3ef   :  { %2139 = vrot.lane.b32.xlu1 %v4261_v3, %s2922_s2 }
 0x3f0   :  { %v2000_v39 = vpop.permute.xlu0 %1999 }
 0x3f1   :  { %v1998_v58 = vpop.permute.xlu1 %1997 }
 0x3f2   :  { %2015 = vrot.lane.b32.xlu0 %v4347_v43, %s2923_s10  ;;  %v2251_v35 = vsel %vm2246_vm13, %v2234_v1, %v1998_v58 }
 0x3f3   :  { %1761 = vrot.lane.b32.xlu1 %v1601_v8, %s2917_s14 }
 0x3f4   :  { %v1812_v59 = vpop.permute.xlu0 %1811 }
 0x3f5   :  { %v4352_v17 = vpop.permute.xlu1 %1809 }
 0x3f6   :  { %1827 = vrot.lane.b32.xlu0 %v1571_v11, %s2919_s16 }
 0x3f7   :  { %2013 = vrot.lane.b32.xlu1 %v4284_v53, %s2923_s10 }
 0x3f8   :  { %v2064_v24 = vpop.permute.xlu0 %2063 }
 0x3f9   :  { %v2062_v3 = vpop.permute.xlu1 %2061 }
 0x3fa   :  { %2079 = vrot.lane.b32.xlu0 %v1539_v23, %s2924_s11  ;;  %v2268_v32 = vsel %vm2263_vm14, %v2251_v35, %v2062_v3 }
 0x3fb   :  { %1825 = vrot.lane.b32.xlu1 %v4347_v43, %s2919_s16 }
 0x3fc   :  { %v1938_v9 = vpop.permute.xlu0 %1937 }
 0x3fd   :  { %v1874_v7 = vpop.permute.xlu1 %1873 }
 0x3fe   :  { %1891 = vrot.lane.b32.xlu0 %v1587_v48, %s2921_s29 }
 0x3ff   :  { %2077 = vrot.lane.b32.xlu1 %v1538_v16, %s2924_s11  ;;  %v2186_v16 = vsel %vm946_vm5, %v2170_v6, %v4269_v62 }
 0x400   :  { %v4373_v34 = vpop.permute.xlu0 %1687  ;;  %v2202_v37 = vsel %vm980_vm7, %v2186_v16, %v4280_v54 }
 0x401   :  { %v2126_v55 = vpop.permute.xlu1 %2125  ;;  %v2218_v47 = vsel %vm1014_vm9, %v2202_v37, %v1872_v10 }
 0x402   :  { %v2285_v49 = vsel %vm2280_vm15, %v2268_v32, %v2126_v55  ;;  %2143 = vrot.lane.b32.xlu0 %v1555_v46, %s2922_s2  ;;  %v2235_v31 = vsel %vm2229_vm12, %v2218_v47, %v1936_v51 }
 0x403   :  { %1889 = vrot.lane.b32.xlu1 %v1539_v23, %s2921_s29  ;;  %2858 = vmatprep.mubr.msk.f32.mxu1 %vm2313_vm0, %v2285_v49  ;;  %v2252_v20 = vsel %vm2246_vm13, %v2235_v31, %v2000_v39  ;;  %v2172_v23 = vsel %vm912_vm2, %v4135_v60, %v4329_v56 }
 0x404   :  { %v1940_v40 = vpop.permute.xlu0 %1939  ;;  %v2269_v15 = vsel %vm2263_vm14, %v2252_v20, %v2064_v24  ;;  %v2188_v26 = vsel %vm946_vm5, %v2172_v23, %v1748_v52 }
 0x405   :  { %v1876_v4 = vpop.permute.xlu1 %1875  ;;  %v2204_v51 = vsel %vm980_vm7, %v2188_v26, %v1812_v59 }
 0x406   :  { %2017 = vrot.lane.b32.xlu0 %v1571_v11, %s2923_s10  ;;  %v2220_v38 = vsel %vm1014_vm9, %v2204_v51, %v1876_v4 }
 0x407   :  { %2141 = vrot.lane.b32.xlu1 %v1601_v8, %s2922_s2  ;;  %v2171_v8 = vsel %vm912_vm2, %v4114_v12, %v4306_v42  ;;  %v2237_v56 = vsel %vm2229_vm12, %v2220_v38, %v1940_v40 }
 0x408   :  { %v1752_v33 = vpop.permute.xlu0 %1751  ;;  %v2187_v60 = vsel %vm946_vm5, %v2171_v8, %v4342_v41  ;;  %v2254_v59 = vsel %vm2246_vm13, %v2237_v56, %v4158_v61 }
 0x409   :  { %v2128_v62 = vpop.permute.xlu1 %2127  ;;  %v2203_v52 = vsel %vm980_vm7, %v2187_v60, %v4352_v17  ;;  %v2271_v41 = vsel %vm2263_vm14, %v2254_v59, %v4166_v50  ;;  %v1516_v50 = vld [vmem:[#allocation3 + $0xf7] sm:$0xff] }
 0x40a   :  { %v2286_v21 = vsel %vm2280_vm15, %v2269_v15, %v2128_v62  ;;  %2081 = vrot.lane.b32.xlu0 %v1587_v48, %s2924_s11  ;;  %v2219_v39 = vsel %vm1014_vm9, %v2203_v52, %v1874_v7  ;;  %v2288_v61 = vsel %vm2280_vm15, %v2271_v41, %v4150_v36  ;;  %v2173_v55 = vsel %vm912_vm2, %v1516_v50, %v4152_v57 }
 0x40b   :  { %1953 = vrot.lane.b32.xlu1 %v1555_v46, %s2925_s3  ;;  %2859 = vmatmul.mubr.msk.f32.gmra.mxu1 %vm2313_vm0, %v2286_v21  ;;  %v2236_v12 = vsel %vm2229_vm12, %v2219_v39, %v1938_v9  ;;  %v2189_v36 = vsel %vm946_vm5, %v2173_v55, %v4141_v45  ;;  %v2174_v57 = vsel %vm912_vm2, %v4183_v18, %v4373_v34 }
 0x40c   :  { %v1816_v10 = vpop.permute.xlu0 %1815  ;;  %v2190_v45 = vsel %vm946_vm5, %v2174_v57, %v1752_v33 }
 0x40d   :  { %v2002_v54 = vpop.permute.xlu1 %2001 }
 0x40e   :  { %2145 = vrot.lane.b32.xlu0 %v1603_v0, %s2922_s2  ;;  %v2253_v42 = vsel %vm2246_vm13, %v2236_v12, %v2002_v54  ;;  %v2206_v54 = vsel %vm980_vm7, %v2190_v45, %v1816_v10 }
 0x40f   :  { %1955 = vrot.lane.b32.xlu1 %v1603_v0, %s2925_s3 }
 0x410   :  { %v4402_v5 = vpop.permute.xlu0 %1689 }
 0x411   :  { %v1814_v44 = vpop.permute.xlu1 %1813  ;;  %v2175_v56 = vsel %vm912_vm2, %v4174_v25, %v4402_v5 }
 0x412   :  { %v2205_v16 = vsel %vm980_vm7, %v2189_v36, %v1814_v44 }
 0x413   :  { %2147 = vrot.lane.b32.xlu1 %v1652_v14, %s2922_s2 }
 0x414   :  { %v1942_v58 = vpop.permute.xlu0 %1941 }
 0x415   :  { %v2066_v46 = vpop.permute.xlu1 %2065 }
 0x416   :  { %v2270_v24 = vsel %vm2263_vm14, %v2253_v42, %v2066_v46 }
 0x418   :  { %v4418_v3 = vpop.permute.xlu0 %1691 }
 0x419   :  { %v1878_v11 = vpop.permute.xlu1 %1877 }
 0x41a   :  { %v2221_v37 = vsel %vm1014_vm9, %v2205_v16, %v1878_v11 }
 0x41b   :  { %v2238_v47 = vsel %vm2229_vm12, %v2221_v37, %v1942_v58 }
 0x41c   :  { %v1944_v13 = vpop.permute.xlu0 %1943 }
 0x41d   :  { %v2130_v19 = vpop.permute.xlu1 %2129 }
 0x41e   :  { %v2287_v17 = vsel %vm2280_vm15, %v2270_v24, %v2130_v19 }
 0x41f   :  { %2861 = vmatprep.mubr.msk.f32.mxu1 %vm2313_vm0, %v2287_v17 }
 0x420   :  { %2862 = vmatmul.mubr.msk.f32.gmra.mxu1 %vm2313_vm0, %v2288_v61  ;;  %v1756_v7 = vpop.permute.xlu0 %1755 }
 0x421   :  { %v1880_v63 = vpop.permute.xlu1 %1879 }
 0x422   :  { %v2222_v0 = vsel %vm1014_vm9, %v2206_v54, %v1880_v63 }
 0x423   :  { %v2239_v26 = vsel %vm2229_vm12, %v2222_v0, %v1944_v13  ;;  %v2176_v13 = vsel %vm912_vm2, %v4210_v28, %v4418_v3 }
 0x424   :  { %v2008_v27 = vpop.permute.xlu0 %2007  ;;  %v2192_v61 = vsel %vm946_vm5, %v2176_v13, %v1756_v7 }
 0x425   :  { %v1754_v9 = vpop.permute.xlu1 %1753  ;;  %v2256_v18 = vsel %vm2246_vm13, %v2239_v26, %v2008_v27 }
 0x426   :  { %v2191_v59 = vsel %vm946_vm5, %v2175_v56, %v1754_v9 }
 0x428   :  { %v1820_v1 = vpop.permute.xlu0 %1819 }
 0x429   :  { %v2006_v48 = vpop.permute.xlu1 %2005  ;;  %v2208_v9 = vsel %vm980_vm7, %v2192_v61, %v1820_v1 }
 0x42a   :  { %v2255_v31 = vsel %vm2246_vm13, %v2238_v47, %v2006_v48 }
 0x42c   :  { %v2072_v32 = vpop.permute.xlu0 %2071 }
 0x42d   :  { %v1818_v35 = vpop.permute.xlu1 %1817  ;;  %v2273_v34 = vsel %vm2263_vm14, %v2256_v18, %v2072_v32 }
 0x42e   :  { %v2207_v11 = vsel %vm980_vm7, %v2191_v59, %v1818_v35 }
 0x430   :  { %v4432_v6 = vpop.permute.xlu0 %1693 }
 0x431   :  { %v2070_v49 = vpop.permute.xlu1 %2069 }
 0x432   :  { %v2272_v20 = vsel %vm2263_vm14, %v2255_v31, %v2070_v49 }
 0x434   :  { %v1946_v40 = vpop.permute.xlu0 %1945 }
 0x435   :  { %v1882_v4 = vpop.permute.xlu1 %1881 }
 0x436   :  { %v2223_v12 = vsel %vm1014_vm9, %v2207_v11, %v1882_v4 }
 0x437   :  { %v2240_v24 = vsel %vm2229_vm12, %v2223_v12, %v1946_v40  ;;  %v2177_v40 = vsel %vm912_vm2, %v4219_v22, %v4432_v6 }
 0x438   :  { %v1696_v62 = vpop.permute.xlu0 %1695 }
 0x439   :  { %v2134_v15 = vpop.permute.xlu1 %2133  ;;  %v2178_v57 = vsel %vm912_vm2, %v4271_v2, %v1696_v62 }
 0x43a   :  { %v2289_v21 = vsel %vm2280_vm15, %v2272_v20, %v2134_v15 }
 0x43b   :  { %2864 = vmatprep.mubr.msk.f32.mxu1 %vm2313_vm0, %v2289_v21 }
 0x43c   :  { %v1948_v14 = vpop.permute.xlu0 %1947 }
 0x43d   :  { %v1884_v23 = vpop.permute.xlu1 %1883 }
 0x43e   :  { %v2224_v27 = vsel %vm1014_vm9, %v2208_v9, %v1884_v23  ;;  %v2735_v9 = vld [vmem:[%s4691_s6] ss:$0 sm:$0xff] }
 0x43f   :  { %v2241_v35 = vsel %vm2229_vm12, %v2224_v27, %v1948_v14 }
 0x440   :  { %v1760_v51 = vpop.permute.xlu0 %1759 }
 0x441   :  { %v2136_v44 = vpop.permute.xlu1 %2135  ;;  %v2194_v15 = vsel %vm946_vm5, %v2178_v57, %v1760_v51 }
 0x442   :  { %v2290_v33 = vsel %vm2280_vm15, %v2273_v34, %v2136_v44 }
 0x443   :  { %2865 = vmatmul.mubr.msk.f32.gmra.mxu1 %vm2313_vm0, %v2290_v33 }
 0x444   :  { %v2012_v10 = vpop.permute.xlu0 %2011 }
 0x445   :  { %v1758_v38 = vpop.permute.xlu1 %1757  ;;  %v2258_v28 = vsel %vm2246_vm13, %v2241_v35, %v2012_v10 }
 0x446   :  { %v2193_v20 = vsel %vm946_vm5, %v2177_v40, %v1758_v38 }
 0x448   :  { %v1824_v46 = vpop.permute.xlu0 %1823 }
 0x449   :  { %v2010_v8 = vpop.permute.xlu1 %2009  ;;  %v2210_v21 = vsel %vm980_vm7, %v2194_v15, %v1824_v46 }
 0x44a   :  { %v2257_v19 = vsel %vm2246_vm13, %v2240_v24, %v2010_v8 }
 0x44c   :  { %v2076_v60 = vpop.permute.xlu0 %2075 }
 0x44d   :  { %v1822_v58 = vpop.permute.xlu1 %1821  ;;  %v2275_v3 = vsel %vm2263_vm14, %v2258_v28, %v2076_v60 }
 0x44e   :  { %v2209_v45 = vsel %vm980_vm7, %v2193_v20, %v1822_v58 }
 0x450   :  { %v1698_v39 = vpop.permute.xlu0 %1697 }
 0x451   :  { %v2074_v52 = vpop.permute.xlu1 %2073  ;;  %v2179_v44 = vsel %vm912_vm2, %v4284_v53, %v1698_v39 }
 0x452   :  { %v2274_v25 = vsel %vm2263_vm14, %v2257_v19, %v2074_v52 }
 0x454   :  { %v1950_v41 = vpop.permute.xlu0 %1949 }
 0x455   :  { %v1886_v42 = vpop.permute.xlu1 %1885 }
 0x456   :  { %v2225_v54 = vsel %vm1014_vm9, %v2209_v45, %v1886_v42 }
 0x457   :  { %v2242_v22 = vsel %vm2229_vm12, %v2225_v54, %v1950_v41 }
 0x458   :  { %v1700_v17 = vpop.permute.xlu0 %1699 }
 0x459   :  { %v2138_v5 = vpop.permute.xlu1 %2137  ;;  %v2180_v53 = vsel %vm912_vm2, %v4347_v43, %v1700_v17 }
 0x45a   :  { %v2291_v63 = vsel %vm2280_vm15, %v2274_v25, %v2138_v5 }
 0x45b   :  { %2867 = vmatprep.mubr.msk.f32.mxu1 %vm2313_vm0, %v2291_v63 }
 0x45c   :  { %v1952_v50 = vpop.permute.xlu0 %1951 }
 0x45d   :  { %v1888_v48 = vpop.permute.xlu1 %1887 }
 0x45e   :  { %v2226_v0 = vsel %vm1014_vm9, %v2210_v21, %v1888_v48 }
 0x45f   :  { %v2243_v6 = vsel %vm2229_vm12, %v2226_v0, %v1952_v50 }
 0x460   :  { %v1764_v55 = vpop.permute.xlu0 %1763 }
 0x461   :  { %v2140_v32 = vpop.permute.xlu1 %2139  ;;  %v2196_v52 = vsel %vm946_vm5, %v2180_v53, %v1764_v55 }
 0x462   :  { %v2292_v7 = vsel %vm2280_vm15, %v2275_v3, %v2140_v32 }
 0x463   :  { %2868 = vmatmul.mubr.msk.f32.gmra.mxu1 %vm2313_vm0, %v2292_v7 }
 0x464   :  { %v2016_v1 = vpop.permute.xlu0 %2015 }
 0x465   :  { %v1762_v49 = vpop.permute.xlu1 %1761  ;;  %v2260_v62 = vsel %vm2246_vm13, %v2243_v6, %v2016_v1 }
 0x466   :  { %v2195_v38 = vsel %vm946_vm5, %v2179_v44, %v1762_v49 }
 0x468   :  { %v1828_v16 = vpop.permute.xlu0 %1827 }
 0x469   :  { %v2014_v36 = vpop.permute.xlu1 %2013  ;;  %v2212_v59 = vsel %vm980_vm7, %v2196_v52, %v1828_v16 }
 0x46a   :  { %v2259_v2 = vsel %vm2246_vm13, %v2242_v22, %v2014_v36 }
 0x46c   :  { %v2080_v4 = vpop.permute.xlu0 %2079 }
 0x46d   :  { %v1826_v37 = vpop.permute.xlu1 %1825  ;;  %v2277_v51 = vsel %vm2263_vm14, %v2260_v62, %v2080_v4 }
 0x46e   :  { %v2211_v8 = vsel %vm980_vm7, %v2195_v38, %v1826_v37 }
 0x470   :  { %v1892_v31 = vpop.permute.xlu0 %1891 }
 0x471   :  { %v2078_v47 = vpop.permute.xlu1 %2077  ;;  %v2228_v12 = vsel %vm1014_vm9, %v2212_v59, %v1892_v31 }
 0x472   :  { %v2276_v26 = vsel %vm2263_vm14, %v2259_v2, %v2078_v47 }
 0x474   :  { %v2144_v14 = vpop.permute.xlu0 %2143 }
 0x475   :  { %v1890_v23 = vpop.permute.xlu1 %1889  ;;  %v2294_v10 = vsel %vm2280_vm15, %v2277_v51, %v2144_v14 }
 0x476   :  { %v2227_v46 = vsel %vm1014_vm9, %v2211_v8, %v1890_v23 }
 0x478   :  { %v2018_v34 = vpop.permute.xlu0 %2017 }
 0x479   :  { %v2142_v18 = vpop.permute.xlu1 %2141 }
 0x47a   :  { %v2293_v33 = vsel %vm2280_vm15, %v2276_v26, %v2142_v18 }
 0x47b   :  { %2870 = vmatprep.mubr.msk.f32.mxu1 %vm2313_vm0, %v2293_v33 }
 0x47c   :  { %2871 = vmatmul.mubr.msk.f32.gmra.mxu1 %vm2313_vm0, %v2294_v10  ;;  %v2082_v60 = vpop.permute.xlu0 %2081 }
 0x47d   :  { %v1954_v58 = vpop.permute.xlu1 %1953 }
 0x47e   :  { %v2244_v56 = vsel %vm2229_vm12, %v2227_v46, %v1954_v58 }
 0x47f   :  { %v2261_v39 = vsel %vm2246_vm13, %v2244_v56, %v2018_v34 }
 0x480   :  { %v2278_v11 = vsel %vm2263_vm14, %v2261_v39, %v2082_v60  ;;  %v2146_v41 = vpop.permute.xlu0 %2145 }
 0x481   :  { %v1956_v42 = vpop.permute.xlu1 %1955  ;;  %v2295_v19 = vsel %vm2280_vm15, %v2278_v11, %v2146_v41 }
 0x482   :  { %v2245_v24 = vsel %vm2229_vm12, %v2228_v12, %v1956_v42  ;;  %2873 = vmatprep.mubr.msk.f32.mxu1 %vm2313_vm0, %v2295_v19 }
 0x483   :  { %v2262_v43 = vsel %vm2246_vm13, %v2245_v24, %v4156_v29 }
 0x484   :  { %v2279_v13 = vsel %vm2263_vm14, %v2262_v43, %v4164_v30 }
 0x485   :  { %v2148_v25 = vpop.permute.xlu1 %2147 }
 0x486   :  { %v2296_v5 = vsel %vm2280_vm15, %v2279_v13, %v2148_v25 }
 0x487   :  { %2874 = vmatmul.mubr.msk.f32.gmra.mxu1 %vm2313_vm0, %v2296_v5 }
 0x49b   :  { %v2854_v17 = vpop.f32.mrf.mxu0 }
 0x49c   :  { %v4524_v50 = vadd.f32 %v2854_v17, %v2735_v9 }
 0x49d   :  { %v2428_v63 = vpop.f32.mrf.mxu0 }
 0x49e   :  { %v4522_v48 = vadd.f32 %v2735_v9, %v2428_v63  ;;  %v2508_v3 = vsel %vm912_vm2, %v4524_v50, 0.0 }
 0x4a0   :  { %v2507_v30 = vsel %vm912_vm2, %v4522_v48, 0.0 }
 0x4a1   :  { %v2509_v55 = vadd.f32 %v2508_v3, %v2507_v30 }
 0x4ab   :  { %v2857_v61 = vpop.f32.mrf.mxu1 }
 0x4ac   :  { %v2444_v49 = vadd.f32 %v2857_v61, %v2735_v9 }
 0x4ad   :  { %v2438_v27 = vpop.f32.mrf.mxu1 }
 0x4ae   :  { %v4526_v35 = vadd.f32 %v2735_v9, %v2438_v27  ;;  %v2512_v37 = vsel %vm912_vm2, %v2444_v49, 0.0 }
 0x4b0   :  { %v2510_v32 = vsel %vm912_vm2, %v4526_v35, 0.0 }
 0x4b1   :  { %v2511_v36 = vadd.f32 %v2510_v32, %v2509_v55 }
 0x4b3   :  { %v2513_v40 = vadd.f32 %v2512_v37, %v2511_v36 }
 0x4cb   :  { %v2860_v29 = vpop.f32.mrf.mxu1 }
 0x4cc   :  { %v2454_v31 = vadd.f32 %v2860_v29, %v2735_v9 }
 0x4cd   :  { %v2448_v28 = vpop.f32.mrf.mxu1 }
 0x4ce   :  { %v2449_v1 = vadd.f32 %v2735_v9, %v2448_v28  ;;  %v2516_v45 = vsel %vm912_vm2, %v2454_v31, 0.0 }
 0x4d0   :  { %v2514_v4 = vsel %vm912_vm2, %v2449_v1, 0.0 }
 0x4d1   :  { %v2515_v20 = vadd.f32 %v2514_v4, %v2513_v40 }
 0x4d3   :  { %v2517_v54 = vadd.f32 %v2516_v45, %v2515_v20 }
 0x4e0   :  { %v2863_v7 = vpop.f32.mrf.mxu1 }
 0x4e1   :  { %v2464_v23 = vadd.f32 %v2863_v7, %v2735_v9 }
 0x4e2   :  { %v2458_v16 = vpop.f32.mrf.mxu1 }
 0x4e3   :  { %v2459_v57 = vadd.f32 %v2735_v9, %v2458_v16  ;;  %v2520_v2 = vsel %vm912_vm2, %v2464_v23, 0.0 }
 0x4e5   :  { %v2518_v21 = vsel %vm912_vm2, %v2459_v57, 0.0 }
 0x4e6   :  { %v2519_v22 = vadd.f32 %v2518_v21, %v2517_v54 }
 0x4e8   :  { %v2521_v26 = vadd.f32 %v2520_v2, %v2519_v22 }
 0x503   :  { %v2866_v47 = vpop.f32.mrf.mxu1 }
 0x504   :  { %v2474_v18 = vadd.f32 %v2866_v47, %v2735_v9 }
 0x505   :  { %v2468_v15 = vpop.f32.mrf.mxu1 }
 0x506   :  { %v2469_v14 = vadd.f32 %v2735_v9, %v2468_v15  ;;  %v2524_v33 = vsel %vm912_vm2, %v2474_v18, 0.0 }
 0x508   :  { %v2522_v62 = vsel %vm912_vm2, %v2469_v14, 0.0 }
 0x509   :  { %v2523_v44 = vadd.f32 %v2522_v62, %v2521_v26 }
 0x50b   :  { %v2525_v8 = vadd.f32 %v2524_v33, %v2523_v44 }
 0x523   :  { %v2869_v0 = vpop.f32.mrf.mxu1 }
 0x524   :  { %v2484_v46 = vadd.f32 %v2869_v0, %v2735_v9 }
 0x525   :  { %v2478_v6 = vpop.f32.mrf.mxu1 }
 0x526   :  { %v2479_v34 = vadd.f32 %v2735_v9, %v2478_v6  ;;  %v2528_v53 = vsel %vm912_vm2, %v2484_v46, 0.0 }
 0x528   :  { %v2526_v38 = vsel %vm912_vm2, %v2479_v34, 0.0 }
 0x529   :  { %v2527_v60 = vadd.f32 %v2526_v38, %v2525_v8 }
 0x52b   :  { %v2529_v52 = vadd.f32 %v2528_v53, %v2527_v60 }
 0x53c   :  { %v2872_v51 = vpop.f32.mrf.mxu1 }
 0x53d   :  { %v2494_v39 = vadd.f32 %v2872_v51, %v2735_v9 }
 0x53e   :  { %v2488_v10 = vpop.f32.mrf.mxu1 }
 0x53f   :  { %v2489_v58 = vadd.f32 %v2735_v9, %v2488_v10  ;;  %v2532_v42 = vsel %vm912_vm2, %v2494_v39, 0.0 }
 0x541   :  { %v2530_v56 = vsel %vm912_vm2, %v2489_v58, 0.0 }
 0x542   :  { %v2531_v59 = vadd.f32 %v2530_v56, %v2529_v52 }
 0x544   :  { %v2533_v19 = vadd.f32 %v2532_v42, %v2531_v59 }
 0x547   :  { %v2875_v11 = vpop.f32.mrf.mxu1 }
 0x548   :  { %v4545_v41 = vadd.f32 %v2875_v11, %v2735_v9 }
 0x549   :  { %v2498_v12 = vpop.f32.mrf.mxu1 }
 0x54a   :  { %v2499_v24 = vadd.f32 %v2735_v9, %v2498_v12  ;;  %v2536_v25 = vsel %vm912_vm2, %v4545_v41, 0.0 }
 0x54c   :  { %v2534_v43 = vsel %vm912_vm2, %v2499_v24, 0.0 }
 0x54d   :  { %v2535_v13 = vadd.f32 %v2534_v43, %v2533_v19 }
 0x54f   :  { %v2537_v5 = vadd.f32 %v2536_v25, %v2535_v13 }
 0x551   :  { %v2538_v17 = vrot.slane %v2537_v5, 4 }
 0x553   :  { %v2539_v61 = vadd.f32 %v2538_v17, %v2537_v5 }
 0x555   :  { %v2540_v63 = vrot.slane %v2539_v61, 2 }
 0x557   :  { %v2541_v27 = vadd.f32 %v2540_v63, %v2539_v61 }
 0x559   :  { %v2542_v29 = vrot.slane %v2541_v27, 1 }
 0x55b   :  { %v2543_v30 = vadd.f32 %v2542_v29, %v2541_v27 }
 0x55d   :  { %v2544_v28 = vmul.f32 0.0078125, %v2543_v30 }
 0x55f   :  { %v4551_v3 = vsub.f32 %v4522_v48, %v2544_v28  ;;  %v4554_v9 = vsub.f32 %v4524_v50, %v2544_v28  ;;  %v4557_v32 = vsub.f32 %v4526_v35, %v2544_v28  ;;  %v4559_v55 = vsub.f32 %v2444_v49, %v2544_v28 }
 0x560   :  { %v4565_v16 = vsub.f32 %v2449_v1, %v2544_v28  ;;  %v4569_v37 = vsub.f32 %v2454_v31, %v2544_v28  ;;  %v4575_v40 = vsub.f32 %v2459_v57, %v2544_v28  ;;  %v4580_v15 = vsub.f32 %v2464_v23, %v2544_v28 }
 0x561   :  { %v2561_v7 = vmul.f32 %v4551_v3, %v4551_v3  ;;  %v2562_v36 = vmul.f32 %v4554_v9, %v4554_v9  ;;  %v2563_v48 = vmul.f32 %v4557_v32, %v4557_v32  ;;  %v2564_v50 = vmul.f32 %v4559_v55, %v4559_v55 }
 0x562   :  { %v2565_v47 = vmul.f32 %v4565_v16, %v4565_v16  ;;  %v2566_v31 = vmul.f32 %v4569_v37, %v4569_v37  ;;  %v4585_v54 = vsub.f32 %v2469_v14, %v2544_v28  ;;  %v2567_v57 = vmul.f32 %v4575_v40, %v4575_v40 }
 0x563   :  { %v2577_v35 = vsel %vm912_vm2, %v2561_v7, 0.0  ;;  %v2578_v49 = vsel %vm912_vm2, %v2562_v36, 0.0  ;;  %v2580_v1 = vsel %vm912_vm2, %v2563_v48, 0.0  ;;  %v2582_v45 = vsel %vm912_vm2, %v2564_v50, 0.0 }
 0x564   :  { %v2579_v4 = vadd.f32 %v2578_v49, %v2577_v35  ;;  %v2584_v0 = vsel %vm912_vm2, %v2565_v47, 0.0  ;;  %v2554_v6 = vsub.f32 %v2474_v18, %v2544_v28  ;;  %v2568_v2 = vmul.f32 %v4580_v15, %v4580_v15 }
 0x565   :  { %v2586_v23 = vsel %vm912_vm2, %v2566_v31, 0.0  ;;  %v2555_v26 = vsub.f32 %v2479_v34, %v2544_v28  ;;  %v2569_v44 = vmul.f32 %v4585_v54, %v4585_v54  ;;  %v2588_v14 = vsel %vm912_vm2, %v2567_v57, 0.0 }
 0x566   :  { %v2581_v20 = vadd.f32 %v2580_v1, %v2579_v4  ;;  %v2556_v33 = vsub.f32 %v2484_v46, %v2544_v28  ;;  %v2570_v38 = vmul.f32 %v2554_v6, %v2554_v6  ;;  %v2590_v10 = vsel %vm912_vm2, %v2568_v2, 0.0  ;;  %v2752_v2 = vld [vmem:[%s4692_s7] ss:$0 sm:$0xff] }
 0x567   :  { %v2557_v60 = vsub.f32 %v2489_v58, %v2544_v28  ;;  %v2571_v18 = vmul.f32 %v2555_v26, %v2555_v26  ;;  %v2592_v53 = vsel %vm912_vm2, %v2569_v44, 0.0  ;;  %v2558_v52 = vsub.f32 %v2494_v39, %v2544_v28 }
 0x568   :  { %v2583_v21 = vadd.f32 %v2582_v45, %v2581_v20  ;;  %v2572_v59 = vmul.f32 %v2556_v33, %v2556_v33  ;;  %v2594_v34 = vsel %vm912_vm2, %v2570_v38, 0.0  ;;  %v2559_v12 = vsub.f32 %v2499_v24, %v2544_v28 }
 0x569   :  { %v2573_v42 = vmul.f32 %v2557_v60, %v2557_v60  ;;  %v2596_v19 = vsel %vm912_vm2, %v2571_v18, 0.0  ;;  %v2560_v46 = vsub.f32 %v4545_v41, %v2544_v28  ;;  %v2574_v13 = vmul.f32 %v2558_v52, %v2558_v52  ;;  %v2753_v18 = vld [vmem:[%s4693_s8] ss:$0 sm:$0xff] }
 0x56a   :  { %v2585_v22 = vadd.f32 %v2584_v0, %v2583_v21  ;;  %v2598_v25 = vsel %vm912_vm2, %v2572_v59, 0.0  ;;  %v2575_v5 = vmul.f32 %v2559_v12, %v2559_v12 }
 0x56b   :  { %v2600_v17 = vsel %vm912_vm2, %v2573_v42, 0.0  ;;  %v2576_v39 = vmul.f32 %v2560_v46, %v2560_v46  ;;  %v2602_v63 = vsel %vm912_vm2, %v2574_v13, 0.0 }
 0x56c   :  { %v2587_v62 = vadd.f32 %v2586_v23, %v2585_v22  ;;  %v2604_v24 = vsel %vm912_vm2, %v2575_v5, 0.0 }
 0x56d   :  { %v2606_v30 = vsel %vm912_vm2, %v2576_v39, 0.0 }
 0x56e   :  { %v2589_v51 = vadd.f32 %v2588_v14, %v2587_v62 }
 0x570   :  { %v2591_v8 = vadd.f32 %v2590_v10, %v2589_v51 }
 0x572   :  { %v2593_v56 = vadd.f32 %v2592_v53, %v2591_v8 }
 0x574   :  { %v2595_v11 = vadd.f32 %v2594_v34, %v2593_v56 }
 0x576   :  { %v2597_v43 = vadd.f32 %v2596_v19, %v2595_v11 }
 0x578   :  { %v2599_v58 = vadd.f32 %v2598_v25, %v2597_v43 }
 0x57a   :  { %v2601_v61 = vadd.f32 %v2600_v17, %v2599_v58 }
 0x57c   :  { %v2603_v27 = vadd.f32 %v2602_v63, %v2601_v61 }
 0x57e   :  { %v2605_v29 = vadd.f32 %v2604_v24, %v2603_v27 }
 0x580   :  { %v2607_v7 = vadd.f32 %v2606_v30, %v2605_v29 }
 0x582   :  { %v2608_v36 = vrot.slane %v2607_v7, 4 }
 0x584   :  { %v2609_v41 = vadd.f32 %v2608_v36, %v2607_v7 }
 0x586   :  { %v2610_v28 = vrot.slane %v2609_v41, 2 }
 0x588   :  { %v2611_v48 = vadd.f32 %v2610_v28, %v2609_v41 }
 0x58a   :  { %v2612_v50 = vrot.slane %v2611_v48, 1 }
 0x58c   :  { %v2613_v35 = vadd.f32 %v2612_v50, %v2611_v48 }
 0x58e   :  { %v2614_v49 = vmul.f32 0.0078125, %v2613_v35 }
 0x590   :  { %v2615_v4 = vadd.f32 1e-05, %v2614_v49 }
 0x592   :  { %2910 = vrsqrt.f32 %v2615_v4 }
 0x59f   :  { %v2911_v47 = vpop.eup %2910 }
 0x5a0   :  { %v2617_v1 = vmul.f32 %v2911_v47, %v4551_v3  ;;  %v2618_v20 = vmul.f32 %v2911_v47, %v4554_v9  ;;  %v2619_v31 = vmul.f32 %v2911_v47, %v4557_v32  ;;  %v2620_v45 = vmul.f32 %v2911_v47, %v4559_v55 }
 0x5a1   :  { %v2621_v21 = vmul.f32 %v2911_v47, %v4565_v16  ;;  %v2622_v57 = vmul.f32 %v2911_v47, %v4569_v37  ;;  %v2623_v0 = vmul.f32 %v2911_v47, %v4575_v40  ;;  %v2624_v22 = vmul.f32 %v2911_v47, %v4580_v15 }
 0x5a2   :  { %v2625_v3 = vmul.f32 %v2911_v47, %v4585_v54  ;;  %v2626_v23 = vmul.f32 %v2911_v47, %v2554_v6  ;;  %v2627_v9 = vmul.f32 %v2911_v47, %v2555_v26  ;;  %v2628_v62 = vmul.f32 %v2911_v47, %v2556_v33 }
 0x5a3   :  { %v2629_v32 = vmul.f32 %v2911_v47, %v2557_v60  ;;  %v2630_v44 = vmul.f32 %v2911_v47, %v2558_v52  ;;  %v2631_v55 = vmul.f32 %v2911_v47, %v2559_v12  ;;  %v2632_v14 = vmul.f32 %v2911_v47, %v2560_v46 }
 0x5a4   :  { %v2640_v16 = vmul.f32 %v2752_v2, %v2617_v1  ;;  %v2641_v51 = vmul.f32 %v2752_v2, %v2618_v20  ;;  %v2642_v37 = vmul.f32 %v2752_v2, %v2619_v31  ;;  %v2643_v38 = vmul.f32 %v2752_v2, %v2620_v45 }
 0x5a5   :  { %v2644_v40 = vmul.f32 %v2752_v2, %v2621_v21  ;;  %v2645_v10 = vmul.f32 %v2752_v2, %v2622_v57  ;;  %v2646_v15 = vmul.f32 %v2752_v2, %v2623_v0  ;;  %v2647_v8 = vmul.f32 %v2752_v2, %v2624_v22 }
 0x5a6   :  { %v2648_v54 = vmul.f32 %v2752_v2, %v2625_v3  ;;  %v2649_v6 = vmul.f32 %v2752_v2, %v2626_v23  ;;  %v2650_v26 = vmul.f32 %v2752_v2, %v2627_v9  ;;  %v2651_v33 = vmul.f32 %v2752_v2, %v2628_v62 }
 0x5a7   :  { %v2652_v60 = vmul.f32 %v2752_v2, %v2629_v32  ;;  %v2653_v53 = vmul.f32 %v2752_v2, %v2630_v44  ;;  %v2654_v56 = vmul.f32 %v2752_v2, %v2631_v55  ;;  %v2655_v52 = vmul.f32 %v2752_v2, %v2632_v14 }
 0x5a8   :  { %v2663_v59 = vadd.f32 %v2753_v18, %v2640_v16  ;;  %v2664_v34 = vadd.f32 %v2753_v18, %v2641_v51  ;;  %v2665_v11 = vadd.f32 %v2753_v18, %v2642_v37  ;;  %v2666_v12 = vadd.f32 %v2753_v18, %v2643_v38 }
 0x5a9   :  { %v2667_v42 = vadd.f32 %v2753_v18, %v2644_v40  ;;  %v2668_v19 = vadd.f32 %v2753_v18, %v2645_v10  ;;  %v2669_v43 = vadd.f32 %v2753_v18, %v2646_v15  ;;  %v2670_v46 = vadd.f32 %v2753_v18, %v2647_v8 }
 0x5aa   :  { %v2671_v13 = vadd.f32 %v2753_v18, %v2648_v54  ;;  %v2672_v25 = vadd.f32 %v2753_v18, %v2649_v6  ;;  %v2673_v58 = vadd.f32 %v2753_v18, %v2650_v26  ;;  %v2674_v5 = vadd.f32 %v2753_v18, %v2651_v33 }
 0x5ab   :  { %v2675_v17 = vadd.f32 %v2753_v18, %v2652_v60  ;;  %v2676_v61 = vadd.f32 %v2753_v18, %v2653_v53  ;;  %v2677_v39 = vadd.f32 %v2753_v18, %v2654_v56  ;;  %v2678_v63 = vadd.f32 %v2753_v18, %v2655_v52 }
 0x5ac   :  { %v2679_v27 = vmax.f32 %v2663_v59, 0.0  ;;  %v2680_v24 = vmax.f32 %v2664_v34, 0.0  ;;  %v2681_v29 = vmax.f32 %v2665_v11, 0.0  ;;  %v2682_v30 = vmax.f32 %v2666_v12, 0.0 }
 0x5ad   :  { %v2683_v7 = vmax.f32 %v2667_v42, 0.0  ;;  %v2684_v36 = vmax.f32 %v2668_v19, 0.0  ;;  %v2685_v41 = vmax.f32 %v2669_v43, 0.0  ;;  %v2686_v28 = vmax.f32 %v2670_v46, 0.0 }
 0x5ae   :  { %v2687_v48 = vmax.f32 %v2671_v13, 0.0  ;;  %v2688_v50 = vmax.f32 %v2672_v25, 0.0  ;;  %v2689_v35 = vmax.f32 %v2673_v58, 0.0  ;;  %v2690_v49 = vmax.f32 %v2674_v5, 0.0  ;;  %2695 = vst.msk [vmem:[%s4694_s9] sm:$0xff] %vm912_vm2, %v2679_v27  ;;  %2696 = vst.msk [vmem:[%s4694_s9 + $0x8] sm:$0xff] %vm912_vm2, %v2680_v24 }
 0x5af   :  { %2697 = vst.msk [vmem:[%s4694_s9 + $0x10] sm:$0xff] %vm912_vm2, %v2681_v29  ;;  %2698 = vst.msk [vmem:[%s4694_s9 + $0x18] sm:$0xff] %vm912_vm2, %v2682_v30  ;;  %v2691_v4 = vmax.f32 %v2675_v17, 0.0  ;;  %v2692_v47 = vmax.f32 %v2676_v61, 0.0  ;;  %v2693_v1 = vmax.f32 %v2677_v39, 0.0  ;;  %v2694_v20 = vmax.f32 %v2678_v63, 0.0 }
 0x5b0   :  { %2699 = vst.msk [vmem:[%s4694_s9 + $0x20] sm:$0xff] %vm912_vm2, %v2683_v7  ;;  %2700 = vst.msk [vmem:[%s4694_s9 + $0x28] sm:$0xff] %vm912_vm2, %v2684_v36 }
 0x5b1   :  { %2701 = vst.msk [vmem:[%s4694_s9 + $0x30] sm:$0xff] %vm912_vm2, %v2685_v41  ;;  %2702 = vst.msk [vmem:[%s4694_s9 + $0x38] sm:$0xff] %vm912_vm2, %v2686_v28 }
 0x5b2   :  { %2703 = vst.msk [vmem:[%s4694_s9 + $0x40] sm:$0xff] %vm912_vm2, %v2687_v48  ;;  %2704 = vst.msk [vmem:[%s4694_s9 + $0x48] sm:$0xff] %vm912_vm2, %v2688_v50 }
 0x5b3   :  { %2705 = vst.msk [vmem:[%s4694_s9 + $0x50] sm:$0xff] %vm912_vm2, %v2689_v35  ;;  %2706 = vst.msk [vmem:[%s4694_s9 + $0x58] sm:$0xff] %vm912_vm2, %v2690_v49 }
 0x5b4   :  { %2707 = vst.msk [vmem:[%s4694_s9 + $0x60] sm:$0xff] %vm912_vm2, %v2691_v4  ;;  %2708 = vst.msk [vmem:[%s4694_s9 + $0x68] sm:$0xff] %vm912_vm2, %v2692_v47 }
 0x5b5   :  { %2709 = vst.msk [vmem:[%s4694_s9 + $0x70] sm:$0xff] %vm912_vm2, %v2693_v1  ;;  %2710 = vst.msk [vmem:[%s4694_s9 + $0x78] sm:$0xff] %vm912_vm2, %v2694_v20 }

</bundles_post_ra>
